<compile_context>
chip_gen: v7x
topology: tpu7x:2x2x1
jax: 0.10.0
libtpu: 0.0.40
codegen_flags: <defaults>
</compile_context>

<pallas_src>
import functools

import jax
import jax.numpy as jnp
from jax.experimental import pallas as pl
from jax.experimental.pallas import tpu as pltpu

HIDDEN_SIZE = 128
NUM_LAYERS = 3
OUTPUT_SIZE = 2
LANE = 128       # TPU lane width; fc output is padded to this for lane-dense stores
SUBLANE = 8      # f32 sublane granularity


def _round_up(x, m):
    return (x + m - 1) // m * m


# ----------------------------------------------------------------------------
# Fused Pallas kernel: 3 LSTM layers + length mask + lane-dense fc head.
# Grid = chunks of the time axis (sequential recurrence -> "arbitrary").
# ----------------------------------------------------------------------------
def _fused_lstm_kernel(gx_ref, mask_ref, whh0_ref, wstk1_ref, b1_ref,
                       wstk2_ref, b2_ref, wfc_ref, bfc_ref, out_ref,
                       h_buf, h0, c0, h1, c1, h2, c2):
    Bp, H = h0.shape
    Tt = h_buf.shape[0] // Bp
    bf16 = jnp.bfloat16

    # Zero the recurrent state only on the first time-chunk; VMEM scratch persists
    # across grid steps, carrying h/c between chunks.
    @pl.when(pl.program_id(0) == 0)
    def _():
        for ref in (h0, c0, h1, c1, h2, c2):
            ref[...] = jnp.zeros_like(ref)

    def cell(gates, c_prev):
        # Gate columns were permuted at init to (i, f, o, g): the three sigmoid gates are
        # one contiguous 3H slice, tanh is one H slice (fewer EUP push sequences).
        sig = jax.nn.sigmoid(gates[:, : 3 * H])
        g = jnp.tanh(gates[:, 3 * H:])
        c_new = sig[:, H:2 * H] * c_prev + sig[:, :H] * g
        h_new = sig[:, 2 * H:3 * H] * jnp.tanh(c_new)
        return h_new, c_new

    def step(s, carry):
        row = pl.multiple_of(s * Bp, Bp)
        # Layer 0: x @ W_ih + b was hoisted out of the recurrence (precomputed gx);
        # only the recurrent h @ W_hh matmul sits on the serial path.
        g0 = gx_ref[pl.ds(row, Bp), :] + jnp.dot(
            h0[...].astype(bf16), whh0_ref[...], preferred_element_type=jnp.float32)
        h0n, c0n = cell(g0, c0[...])
        h0[...] = h0n
        c0[...] = c0n
        # Layers 1/2: one stacked dot on concat([layer_input, h_prev]) per step.
        in1 = jnp.concatenate([h0n, h1[...]], axis=-1).astype(bf16)
        g1 = jnp.dot(in1, wstk1_ref[...], preferred_element_type=jnp.float32) + b1_ref[...]
        h1n, c1n = cell(g1, c1[...])
        h1[...] = h1n
        c1[...] = c1n
        in2 = jnp.concatenate([h1n, h2[...]], axis=-1).astype(bf16)
        g2 = jnp.dot(in2, wstk2_ref[...], preferred_element_type=jnp.float32) + b2_ref[...]
        h2n, c2n = cell(g2, c2[...])
        h2[...] = h2n
        c2[...] = c2n
        # Accumulate layer-2 outputs in VMEM; HBM writeback happens once per chunk.
        h_buf[pl.ds(row, Bp), :] = h2n
        return carry

    jax.lax.fori_loop(0, Tt, step, 0, unroll=True)

    # Chunk epilogue: zero padded timesteps (pad_packed_sequence) + lane-dense fc head
    # as a single (Tt*Bp, H) @ (H, 128) matmul while h is still resident in VMEM.
    h_masked = h_buf[...] * mask_ref[...]
    out_ref[...] = (
        jnp.dot(h_masked.astype(bf16), wfc_ref[...], preferred_element_type=jnp.float32)
        + bfc_ref[...]
    )


def _fused_lstm_fc_call(gx0, mask, p, *, Bp, Tt, H):
    TB = gx0.shape[0]                 # = Tp * Bp
    rows = Tt * Bp                    # rows per time-chunk
    n_chunks = TB // rows
    grid_spec = pltpu.PrefetchScalarGridSpec(
        num_scalar_prefetch=0,
        grid=(n_chunks,),
        in_specs=[
            pl.BlockSpec((rows, 4 * H), lambda c: (c, 0)),     # hoisted layer-0 gates
            pl.BlockSpec((rows, 1), lambda c: (c, 0)),         # valid-timestep mask
            pl.BlockSpec((H, 4 * H), lambda c: (0, 0)),        # W_hh layer 0 (resident)
            pl.BlockSpec((2 * H, 4 * H), lambda c: (0, 0)),    # stacked W layer 1
            pl.BlockSpec((1, 4 * H), lambda c: (0, 0)),        # bias layer 1
            pl.BlockSpec((2 * H, 4 * H), lambda c: (0, 0)),    # stacked W layer 2
            pl.BlockSpec((1, 4 * H), lambda c: (0, 0)),        # bias layer 2
            pl.BlockSpec((H, LANE), lambda c: (0, 0)),         # fc weight (lane-padded)
            pl.BlockSpec((1, LANE), lambda c: (0, 0)),         # fc bias (lane-padded)
        ],
        out_specs=pl.BlockSpec((rows, LANE), lambda c: (c, 0)),
        scratch_shapes=[pltpu.VMEM((rows, H), jnp.float32)]        # per-chunk h outputs
                      + [pltpu.VMEM((Bp, H), jnp.float32)] * 6,    # h/c for the 3 layers
    )
    return pl.pallas_call(
        _fused_lstm_kernel,
        out_shape=jax.ShapeDtypeStruct((TB, LANE), jnp.float32),
        grid_spec=grid_spec,
        compiler_params=pltpu.CompilerParams(
            dimension_semantics=("arbitrary",),          # time recurrence is sequential
            vmem_limit_bytes=32 * 1024 * 1024,           # explicit; fits v7x's 64 MiB/TC
        ),
    )(gx0, mask, p["whh0"], p["wstk1"], p["b1"], p["wstk2"], p["b2"],
      p["wfc_pad"], p["bfc_pad"])


# ----------------------------------------------------------------------------
# Public forward (batch-first interface, like the PyTorch module).
# ----------------------------------------------------------------------------
def lstm_model_forward(x_btd, lengths, params, *, time_chunk=4):
    B, T, _ = x_btd.shape
    H = HIDDEN_SIZE
    Tt = min(time_chunk, T)
    Tp = _round_up(T, Tt)
    Bp = _round_up(B, SUBLANE)

    # Time-major, batch padded to the sublane granularity (padded rows are masked out).
    x_tbd = jnp.transpose(x_btd, (1, 0, 2)).astype(jnp.float32)         # (T, B, D)
    x_tbd = jnp.pad(x_tbd, ((0, Tp - T), (0, Bp - B), (0, 0)))
    lens_p = jnp.pad(lengths.astype(jnp.int32), (0, Bp - B))

    # Hoisted time-independent layer-0 input projection: one big MXU matmul (plain XLA).
    gx0 = jnp.einsum("tbd,dg->tbg", x_tbd.astype(jnp.bfloat16), params["w_ih0"],
                     preferred_element_type=jnp.float32) + params["b0"]  # (Tp, Bp, 4H)
    gx0 = gx0.reshape(Tp * Bp, 4 * H)

    # Valid-timestep mask (pad_packed_sequence zeros the padded steps).
    t_idx = jnp.arange(Tp, dtype=jnp.int32)[:, None]
    mask = (t_idx < lens_p[None, :]).astype(jnp.float32).reshape(Tp * Bp, 1)

    out2d = _fused_lstm_fc_call(gx0, mask, params, Bp=Bp, Tt=Tt, H=H)    # (Tp*Bp, 128)
    out = out2d.reshape(Tp, Bp, LANE)[:T, :B, :OUTPUT_SIZE]              # (T, B, K)
    return jnp.transpose(out, (1, 0, 2))                                 # (B, T, K)


# ----------------------------------------------------------------------------
# Parameter init (PyTorch-shaped) + kernel-layout preparation.
# ----------------------------------------------------------------------------
def init_params(key, input_size, hidden_size, num_layers, output_size):
    """Raw PyTorch-shaped params: w_ih (4H, D_in), w_hh (4H, H), biases (4H,); fc (K, H)."""
    k = 1.0 / (hidden_size ** 0.5)
    lstm = []
    for layer in range(num_layers):
        d_in = input_size if layer == 0 else hidden_size
        key, k1, k2, k3, k4 = jax.random.split(key, 5)
        w_ih = jax.random.uniform(k1, (4 * hidden_size, d_in), jnp.float32, -k, k)
        w_hh = jax.random.uniform(k2, (4 * hidden_size, hidden_size), jnp.float32, -k, k)
        b_ih = jax.random.uniform(k3, (4 * hidden_size,), jnp.float32, -k, k)
        b_hh = jax.random.uniform(k4, (4 * hidden_size,), jnp.float32, -k, k)
        lstm.append((w_ih, w_hh, b_ih, b_hh))
    key, k5, k6 = jax.random.split(key, 3)
    w_fc = jax.random.uniform(k5, (output_size, hidden_size), jnp.float32, -k, k)
    b_fc = jax.random.uniform(k6, (output_size,), jnp.float32, -k, k)
    return {"lstm": lstm, "w_fc": w_fc, "b_fc": b_fc}


def prepare_params(raw, hidden_size=HIDDEN_SIZE):
    """Transpose, permute gates (i,f,g,o)->(i,f,o,g), stack layer-1/2 weights, fold biases,
    cast matmul weights to bf16, and lane-pad the fc head."""
    H = hidden_size
    perm = jnp.concatenate([jnp.arange(0, H), jnp.arange(H, 2 * H),
                            jnp.arange(3 * H, 4 * H), jnp.arange(2 * H, 3 * H)])
    bf16 = jnp.bfloat16

    def prep_layer(w_ih, w_hh, b_ih, b_hh):
        w_ih_t = w_ih.T[:, perm]                               # (D_in|H, 4H)
        w_hh_t = w_hh.T[:, perm]                               # (H, 4H)
        b = (b_ih + b_hh)[perm].reshape(1, 4 * H)
        return w_ih_t, w_hh_t, b

    wi0, wh0, b0 = prep_layer(*raw["lstm"][0])
    wi1, wh1, b1 = prep_layer(*raw["lstm"][1])
    wi2, wh2, b2 = prep_layer(*raw["lstm"][2])

    K = raw["w_fc"].shape[0]
    wfc = raw["w_fc"].T                                        # (H, K)
    wfc_pad = jnp.zeros((H, LANE), jnp.float32).at[:, :K].set(wfc)
    bfc_pad = jnp.zeros((1, LANE), jnp.float32).at[0, :K].set(raw["b_fc"])

    return {
        "w_ih0": wi0.astype(bf16), "b0": b0, "whh0": wh0.astype(bf16),
        "wstk1": jnp.concatenate([wi1, wh1], axis=0).astype(bf16), "b1": b1,
        "wstk2": jnp.concatenate([wi2, wh2], axis=0).astype(bf16), "b2": b2,
        "wfc_pad": wfc_pad.astype(bf16), "bfc_pad": bfc_pad,
    }


# ----------------------------------------------------------------------------
# Pure-JAX reference (identical math/casts on the same prepared params).
# ----------------------------------------------------------------------------
def reference_forward(x_btd, lengths, params):
    B, T, _ = x_btd.shape
    H = HIDDEN_SIZE
    bf16 = jnp.bfloat16

    def cell(gates, c):
        i = jax.nn.sigmoid(gates[:, :H])
        f = jax.nn.sigmoid(gates[:, H:2 * H])
        o = jax.nn.sigmoid(gates[:, 2 * H:3 * H])
        g = jnp.tanh(gates[:, 3 * H:])
        c = f * c + i * g
        return o * jnp.tanh(c), c

    x_tbd = jnp.transpose(x_btd, (1, 0, 2)).astype(jnp.float32)
    gx = jnp.einsum("tbd,dg->tbg", x_tbd.astype(bf16), params["w_ih0"],
                    preferred_element_type=jnp.float32) + params["b0"]

    init = (jnp.zeros((B, H), jnp.float32), jnp.zeros((B, H), jnp.float32))

    def step0(carry, gx_t):
        h, c = carry
        gates = gx_t + jnp.dot(h.astype(bf16), params["whh0"],
                               preferred_element_type=jnp.float32)
        h, c = cell(gates, c)
        return (h, c), h

    _, h1 = jax.lax.scan(step0, init, gx)

    def make_step(wstk, b):
        def step(carry, x_t):
            h, c = carry
            gates = jnp.dot(jnp.concatenate([x_t, h], axis=-1).astype(bf16), wstk,
                            preferred_element_type=jnp.float32) + b
            h, c = cell(gates, c)
            return (h, c), h
        return step

    _, h2 = jax.lax.scan(make_step(params["wstk1"], params["b1"]), init, h1)
    _, h3 = jax.lax.scan(make_step(params["wstk2"], params["b2"]), init, h2)

    mask = (jnp.arange(T)[:, None] < lengths[None, :]).astype(jnp.float32)[:, :, None]
    out = jnp.einsum("tbh,hk->tbk", (h3 * mask).astype(bf16), params["wfc_pad"],
                     preferred_element_type=jnp.float32) + params["bfc_pad"]
    return jnp.transpose(out[:, :, :OUTPUT_SIZE], (1, 0, 2))


if __name__ == "__main__":
    B, T, INPUT_SIZE = 2, 8, 16

    key = jax.random.PRNGKey(0)
    key, kx = jax.random.split(key)
    x = jax.random.normal(kx, (B, T, INPUT_SIZE), jnp.float32)
    lengths = jnp.array([5, 8], dtype=jnp.int32)
    # mimic padding_value=-1 at padded positions (does not affect valid outputs)
    pad_mask = (jnp.arange(T)[None, :, None] >= lengths[:, None, None])
    x = jnp.where(pad_mask, -1.0, x)

    raw = init_params(key, INPUT_SIZE, HIDDEN_SIZE, NUM_LAYERS, OUTPUT_SIZE)
    params = prepare_params(raw)

    fwd = jax.jit(functools.partial(lstm_model_forward, time_chunk=4))
    out = jax.block_until_ready(fwd(x, lengths, params))
    assert out.shape == (B, T, OUTPUT_SIZE), out.shape

    ref = jax.block_until_ready(reference_forward(x, lengths, params))
    max_err = float(jnp.max(jnp.abs(out - ref)))
    assert jnp.allclose(out, ref, atol=3e-3, rtol=3e-3), max_err

    print("KERNEL_OK")
</pallas_src>

<mosaic_0001>
module attributes {stable_mosaic.version = 11 : i64} {
  func.func @_fused_lstm_kernel(%arg0: i32, %arg1: memref<32x512xf32, #tpu.memory_space<vmem>>, %arg2: memref<32x1xf32, #tpu.memory_space<vmem>>, %arg3: memref<128x512xbf16, #tpu.memory_space<vmem>>, %arg4: memref<256x512xbf16, #tpu.memory_space<vmem>>, %arg5: memref<1x512xf32, #tpu.memory_space<vmem>>, %arg6: memref<256x512xbf16, #tpu.memory_space<vmem>>, %arg7: memref<1x512xf32, #tpu.memory_space<vmem>>, %arg8: memref<128x128xbf16, #tpu.memory_space<vmem>>, %arg9: memref<1x128xf32, #tpu.memory_space<vmem>>, %arg10: memref<32x128xf32, #tpu.memory_space<vmem>>, %arg11: memref<32x128xf32, #tpu.memory_space<vmem>>, %arg12: memref<8x128xf32, #tpu.memory_space<vmem>>, %arg13: memref<8x128xf32, #tpu.memory_space<vmem>>, %arg14: memref<8x128xf32, #tpu.memory_space<vmem>>, %arg15: memref<8x128xf32, #tpu.memory_space<vmem>>, %arg16: memref<8x128xf32, #tpu.memory_space<vmem>>, %arg17: memref<8x128xf32, #tpu.memory_space<vmem>>) attributes {dimension_semantics = [#tpu.dimension_semantics<arbitrary>], iteration_bounds = array<i64: 2>, scalar_prefetch = 0 : i64, scratch_operands = 7 : i64, tpu.core_type = #tpu.core_type<tc>, window_params = [{transform_indices = @transform_0, window_bounds = array<i64: 32, 512>}, {transform_indices = @transform_1, window_bounds = array<i64: 32, 1>}, {pipeline_mode = #tpu.pipeline_mode<synchronous>, transform_indices = @transform_2, window_bounds = array<i64: 128, 512>}, {pipeline_mode = #tpu.pipeline_mode<synchronous>, transform_indices = @transform_3, window_bounds = array<i64: 256, 512>}, {pipeline_mode = #tpu.pipeline_mode<synchronous>, transform_indices = @transform_4, window_bounds = array<i64: 1, 512>}, {pipeline_mode = #tpu.pipeline_mode<synchronous>, transform_indices = @transform_5, window_bounds = array<i64: 256, 512>}, {pipeline_mode = #tpu.pipeline_mode<synchronous>, transform_indices = @transform_6, window_bounds = array<i64: 1, 512>}, {pipeline_mode = #tpu.pipeline_mode<synchronous>, transform_indices = @transform_7, window_bounds = array<i64: 128, 128>}, {pipeline_mode = #tpu.pipeline_mode<synchronous>, transform_indices = @transform_8, window_bounds = array<i64: 1, 128>}, {transform_indices = @transform_9, window_bounds = array<i64: 32, 128>}]} {
    %c0_i32 = arith.constant 0 : i32
    %0 = arith.cmpi eq, %arg0, %c0_i32 : i32
    %1 = arith.extui %0 : i1 to i32
    %c0_i32_0 = arith.constant 0 : i32
    %2 = arith.cmpi ne, %1, %c0_i32_0 : i32
    scf.if %2 {
      %cst_182 = arith.constant 0.000000e+00 : f32
      %350 = vector.broadcast %cst_182 : f32 to vector<8x128xf32>
      %c0_183 = arith.constant 0 : index
      %c0_184 = arith.constant 0 : index
      %351 = vector.load %arg12[%c0_183, %c0_184] : memref<8x128xf32, #tpu.memory_space<vmem>>, vector<8x128xf32>
      tpu.vector_store %arg12[%c0_183, %c0_184], %350 {strides = array<i32>} : memref<8x128xf32, #tpu.memory_space<vmem>>, vector<8x128xf32>,
      %cst_185 = arith.constant 0.000000e+00 : f32
      %352 = vector.broadcast %cst_185 : f32 to vector<8x128xf32>
      %c0_186 = arith.constant 0 : index
      %c0_187 = arith.constant 0 : index
      %353 = vector.load %arg13[%c0_186, %c0_187] : memref<8x128xf32, #tpu.memory_space<vmem>>, vector<8x128xf32>
      tpu.vector_store %arg13[%c0_186, %c0_187], %352 {strides = array<i32>} : memref<8x128xf32, #tpu.memory_space<vmem>>, vector<8x128xf32>,
      %cst_188 = arith.constant 0.000000e+00 : f32
      %354 = vector.broadcast %cst_188 : f32 to vector<8x128xf32>
      %c0_189 = arith.constant 0 : index
      %c0_190 = arith.constant 0 : index
      %355 = vector.load %arg14[%c0_189, %c0_190] : memref<8x128xf32, #tpu.memory_space<vmem>>, vector<8x128xf32>
      tpu.vector_store %arg14[%c0_189, %c0_190], %354 {strides = array<i32>} : memref<8x128xf32, #tpu.memory_space<vmem>>, vector<8x128xf32>,
      %cst_191 = arith.constant 0.000000e+00 : f32
      %356 = vector.broadcast %cst_191 : f32 to vector<8x128xf32>
      %c0_192 = arith.constant 0 : index
      %c0_193 = arith.constant 0 : index
      %357 = vector.load %arg15[%c0_192, %c0_193] : memref<8x128xf32, #tpu.memory_space<vmem>>, vector<8x128xf32>
      tpu.vector_store %arg15[%c0_192, %c0_193], %356 {strides = array<i32>} : memref<8x128xf32, #tpu.memory_space<vmem>>, vector<8x128xf32>,
      %cst_194 = arith.constant 0.000000e+00 : f32
      %358 = vector.broadcast %cst_194 : f32 to vector<8x128xf32>
      %c0_195 = arith.constant 0 : index
      %c0_196 = arith.constant 0 : index
      %359 = vector.load %arg16[%c0_195, %c0_196] : memref<8x128xf32, #tpu.memory_space<vmem>>, vector<8x128xf32>
      tpu.vector_store %arg16[%c0_195, %c0_196], %358 {strides = array<i32>} : memref<8x128xf32, #tpu.memory_space<vmem>>, vector<8x128xf32>,
      %cst_197 = arith.constant 0.000000e+00 : f32
      %360 = vector.broadcast %cst_197 : f32 to vector<8x128xf32>
      %c0_198 = arith.constant 0 : index
      %c0_199 = arith.constant 0 : index
      %361 = vector.load %arg17[%c0_198, %c0_199] : memref<8x128xf32, #tpu.memory_space<vmem>>, vector<8x128xf32>
      tpu.vector_store %arg17[%c0_198, %c0_199], %360 {strides = array<i32>} : memref<8x128xf32, #tpu.memory_space<vmem>>, vector<8x128xf32>,
    } else {
    }
    %c0_i32_1 = arith.constant 0 : i32
    %c8_i32 = arith.constant 8 : i32
    %3 = arith.muli %c0_i32_1, %c8_i32 : i32
    %4 = tpu.assume_multiple %3, 8 : i32
    %5 = arith.index_cast %4 : i32 to index
    %c0 = arith.constant 0 : index
    %6 = vector.load %arg1[%5, %c0] : memref<32x512xf32, #tpu.memory_space<vmem>>, vector<8x512xf32>
    %c0_2 = arith.constant 0 : index
    %c0_3 = arith.constant 0 : index
    %7 = vector.load %arg12[%c0_2, %c0_3] : memref<8x128xf32, #tpu.memory_space<vmem>>, vector<8x128xf32>
    %8 = arith.truncf %7 : vector<8x128xf32> to vector<8x128xbf16>
    %c0_4 = arith.constant 0 : index
    %c0_5 = arith.constant 0 : index
    %9 = vector.load %arg3[%c0_4, %c0_5] : memref<128x512xbf16, #tpu.memory_space<vmem>>, vector<128x512xbf16>
    %cst = arith.constant dense<0.000000e+00> : vector<8x512xf32>
    %10 = tpu.matmul %8, %9, %cst {dimension_numbers = #tpu.dot_dimension_numbers<[1], [0], [0], [1], [0, 0, 1, 1], [], []>} : vector<8x128xbf16>, vector<128x512xbf16>, vector<8x512xf32> -> vector<8x512xf32>
    %11 = arith.addf %6, %10 : vector<8x512xf32>
    %c0_6 = arith.constant 0 : index
    %c0_7 = arith.constant 0 : index
    %12 = vector.load %arg13[%c0_6, %c0_7] : memref<8x128xf32, #tpu.memory_space<vmem>>, vector<8x128xf32>
    %13 = vector.extract_strided_slice %11 {offsets = [0, 0], sizes = [8, 384], strides = [1, 1]} : vector<8x512xf32> to vector<8x384xf32>
    %14 = arith.negf %13 : vector<8x384xf32>
    %15 = math.exp %14 : vector<8x384xf32>
    %cst_8 = arith.constant 1.000000e+00 : f32
    %16 = vector.broadcast %cst_8 : f32 to vector<8x384xf32>
    %17 = arith.addf %16, %15 : vector<8x384xf32>
    %18 = arith.divf %16, %17 : vector<8x384xf32>
    %19 = vector.extract_strided_slice %11 {offsets = [0, 384], sizes = [8, 128], strides = [1, 1]} : vector<8x512xf32> to vector<8x128xf32>
    %20 = math.tanh %19 : vector<8x128xf32>
    %21 = vector.extract_strided_slice %18 {offsets = [0, 128], sizes = [8, 128], strides = [1, 1]} : vector<8x384xf32> to vector<8x128xf32>
    %22 = arith.mulf %21, %12 : vector<8x128xf32>
    %23 = vector.extract_strided_slice %18 {offsets = [0, 0], sizes = [8, 128], strides = [1, 1]} : vector<8x384xf32> to vector<8x128xf32>
    %24 = arith.mulf %23, %20 : vector<8x128xf32>
    %25 = arith.addf %22, %24 : vector<8x128xf32>
    %26 = vector.extract_strided_slice %18 {offsets = [0, 256], sizes = [8, 128], strides = [1, 1]} : vector<8x384xf32> to vector<8x128xf32>
    %27 = math.tanh %25 : vector<8x128xf32>
    %28 = arith.mulf %26, %27 : vector<8x128xf32>
    %c0_9 = arith.constant 0 : index
    %c0_10 = arith.constant 0 : index
    %29 = vector.load %arg12[%c0_9, %c0_10] : memref<8x128xf32, #tpu.memory_space<vmem>>, vector<8x128xf32>
    tpu.vector_store %arg12[%c0_9, %c0_10], %28 {strides = array<i32>} : memref<8x128xf32, #tpu.memory_space<vmem>>, vector<8x128xf32>,
    %c0_11 = arith.constant 0 : index
    %c0_12 = arith.constant 0 : index
    %30 = vector.load %arg13[%c0_11, %c0_12] : memref<8x128xf32, #tpu.memory_space<vmem>>, vector<8x128xf32>
    tpu.vector_store %arg13[%c0_11, %c0_12], %25 {strides = array<i32>} : memref<8x128xf32, #tpu.memory_space<vmem>>, vector<8x128xf32>,
    %c0_13 = arith.constant 0 : index
    %c0_14 = arith.constant 0 : index
    %31 = vector.load %arg14[%c0_13, %c0_14] : memref<8x128xf32, #tpu.memory_space<vmem>>, vector<8x128xf32>
    %32 = tpu.concatenate %28, %31 in 1 : vector<8x128xf32>, vector<8x128xf32> -> vector<8x256xf32>
    %33 = arith.truncf %32 : vector<8x256xf32> to vector<8x256xbf16>
    %c0_15 = arith.constant 0 : index
    %c0_16 = arith.constant 0 : index
    %34 = vector.load %arg4[%c0_15, %c0_16] : memref<256x512xbf16, #tpu.memory_space<vmem>>, vector<256x512xbf16>
    %cst_17 = arith.constant dense<0.000000e+00> : vector<8x512xf32>
    %35 = tpu.matmul %33, %34, %cst_17 {dimension_numbers = #tpu.dot_dimension_numbers<[1], [0], [0], [1], [0, 0, 1, 1], [], []>} : vector<8x256xbf16>, vector<256x512xbf16>, vector<8x512xf32> -> vector<8x512xf32>
    %c0_18 = arith.constant 0 : index
    %c0_19 = arith.constant 0 : index
    %36 = vector.load %arg5[%c0_18, %c0_19] : memref<1x512xf32, #tpu.memory_space<vmem>>, vector<1x512xf32>
    %37 = vector.broadcast %36 : vector<1x512xf32> to vector<8x512xf32>
    %38 = arith.addf %35, %37 : vector<8x512xf32>
    %c0_20 = arith.constant 0 : index
    %c0_21 = arith.constant 0 : index
    %39 = vector.load %arg15[%c0_20, %c0_21] : memref<8x128xf32, #tpu.memory_space<vmem>>, vector<8x128xf32>
    %40 = vector.extract_strided_slice %38 {offsets = [0, 0], sizes = [8, 384], strides = [1, 1]} : vector<8x512xf32> to vector<8x384xf32>
    %41 = arith.negf %40 : vector<8x384xf32>
    %42 = math.exp %41 : vector<8x384xf32>
    %cst_22 = arith.constant 1.000000e+00 : f32
    %43 = vector.broadcast %cst_22 : f32 to vector<8x384xf32>
    %44 = arith.addf %43, %42 : vector<8x384xf32>
    %45 = arith.divf %43, %44 : vector<8x384xf32>
    %46 = vector.extract_strided_slice %38 {offsets = [0, 384], sizes = [8, 128], strides = [1, 1]} : vector<8x512xf32> to vector<8x128xf32>
    %47 = math.tanh %46 : vector<8x128xf32>
    %48 = vector.extract_strided_slice %45 {offsets = [0, 128], sizes = [8, 128], strides = [1, 1]} : vector<8x384xf32> to vector<8x128xf32>
    %49 = arith.mulf %48, %39 : vector<8x128xf32>
    %50 = vector.extract_strided_slice %45 {offsets = [0, 0], sizes = [8, 128], strides = [1, 1]} : vector<8x384xf32> to vector<8x128xf32>
    %51 = arith.mulf %50, %47 : vector<8x128xf32>
    %52 = arith.addf %49, %51 : vector<8x128xf32>
    %53 = vector.extract_strided_slice %45 {offsets = [0, 256], sizes = [8, 128], strides = [1, 1]} : vector<8x384xf32> to vector<8x128xf32>
    %54 = math.tanh %52 : vector<8x128xf32>
    %55 = arith.mulf %53, %54 : vector<8x128xf32>
    %c0_23 = arith.constant 0 : index
    %c0_24 = arith.constant 0 : index
    %56 = vector.load %arg14[%c0_23, %c0_24] : memref<8x128xf32, #tpu.memory_space<vmem>>, vector<8x128xf32>
    tpu.vector_store %arg14[%c0_23, %c0_24], %55 {strides = array<i32>} : memref<8x128xf32, #tpu.memory_space<vmem>>, vector<8x128xf32>,
    %c0_25 = arith.constant 0 : index
    %c0_26 = arith.constant 0 : index
    %57 = vector.load %arg15[%c0_25, %c0_26] : memref<8x128xf32, #tpu.memory_space<vmem>>, vector<8x128xf32>
    tpu.vector_store %arg15[%c0_25, %c0_26], %52 {strides = array<i32>} : memref<8x128xf32, #tpu.memory_space<vmem>>, vector<8x128xf32>,
    %c0_27 = arith.constant 0 : index
    %c0_28 = arith.constant 0 : index
    %58 = vector.load %arg16[%c0_27, %c0_28] : memref<8x128xf32, #tpu.memory_space<vmem>>, vector<8x128xf32>
    %59 = tpu.concatenate %55, %58 in 1 : vector<8x128xf32>, vector<8x128xf32> -> vector<8x256xf32>
    %60 = arith.truncf %59 : vector<8x256xf32> to vector<8x256xbf16>
    %c0_29 = arith.constant 0 : index
    %c0_30 = arith.constant 0 : index
    %61 = vector.load %arg6[%c0_29, %c0_30] : memref<256x512xbf16, #tpu.memory_space<vmem>>, vector<256x512xbf16>
    %cst_31 = arith.constant dense<0.000000e+00> : vector<8x512xf32>
    %62 = tpu.matmul %60, %61, %cst_31 {dimension_numbers = #tpu.dot_dimension_numbers<[1], [0], [0], [1], [0, 0, 1, 1], [], []>} : vector<8x256xbf16>, vector<256x512xbf16>, vector<8x512xf32> -> vector<8x512xf32>
    %c0_32 = arith.constant 0 : index
    %c0_33 = arith.constant 0 : index
    %63 = vector.load %arg7[%c0_32, %c0_33] : memref<1x512xf32, #tpu.memory_space<vmem>>, vector<1x512xf32>
    %64 = vector.broadcast %63 : vector<1x512xf32> to vector<8x512xf32>
    %65 = arith.addf %62, %64 : vector<8x512xf32>
    %c0_34 = arith.constant 0 : index
    %c0_35 = arith.constant 0 : index
    %66 = vector.load %arg17[%c0_34, %c0_35] : memref<8x128xf32, #tpu.memory_space<vmem>>, vector<8x128xf32>
    %67 = vector.extract_strided_slice %65 {offsets = [0, 0], sizes = [8, 384], strides = [1, 1]} : vector<8x512xf32> to vector<8x384xf32>
    %68 = arith.negf %67 : vector<8x384xf32>
    %69 = math.exp %68 : vector<8x384xf32>
    %cst_36 = arith.constant 1.000000e+00 : f32
    %70 = vector.broadcast %cst_36 : f32 to vector<8x384xf32>
    %71 = arith.addf %70, %69 : vector<8x384xf32>
    %72 = arith.divf %70, %71 : vector<8x384xf32>
    %73 = vector.extract_strided_slice %65 {offsets = [0, 384], sizes = [8, 128], strides = [1, 1]} : vector<8x512xf32> to vector<8x128xf32>
    %74 = math.tanh %73 : vector<8x128xf32>
    %75 = vector.extract_strided_slice %72 {offsets = [0, 128], sizes = [8, 128], strides = [1, 1]} : vector<8x384xf32> to vector<8x128xf32>
    %76 = arith.mulf %75, %66 : vector<8x128xf32>
    %77 = vector.extract_strided_slice %72 {offsets = [0, 0], sizes = [8, 128], strides = [1, 1]} : vector<8x384xf32> to vector<8x128xf32>
    %78 = arith.mulf %77, %74 : vector<8x128xf32>
    %79 = arith.addf %76, %78 : vector<8x128xf32>
    %80 = vector.extract_strided_slice %72 {offsets = [0, 256], sizes = [8, 128], strides = [1, 1]} : vector<8x384xf32> to vector<8x128xf32>
    %81 = math.tanh %79 : vector<8x128xf32>
    %82 = arith.mulf %80, %81 : vector<8x128xf32>
    %c0_37 = arith.constant 0 : index
    %c0_38 = arith.constant 0 : index
    %83 = vector.load %arg16[%c0_37, %c0_38] : memref<8x128xf32, #tpu.memory_space<vmem>>, vector<8x128xf32>
    tpu.vector_store %arg16[%c0_37, %c0_38], %82 {strides = array<i32>} : memref<8x128xf32, #tpu.memory_space<vmem>>, vector<8x128xf32>,
    %c0_39 = arith.constant 0 : index
    %c0_40 = arith.constant 0 : index
    %84 = vector.load %arg17[%c0_39, %c0_40] : memref<8x128xf32, #tpu.memory_space<vmem>>, vector<8x128xf32>
    tpu.vector_store %arg17[%c0_39, %c0_40], %79 {strides = array<i32>} : memref<8x128xf32, #tpu.memory_space<vmem>>, vector<8x128xf32>,
    %85 = arith.index_cast %4 : i32 to index
    %c0_41 = arith.constant 0 : index
    %86 = vector.load %arg11[%85, %c0_41] : memref<32x128xf32, #tpu.memory_space<vmem>>, vector<8x128xf32>
    tpu.vector_store %arg11[%85, %c0_41], %82 {strides = array<i32>} : memref<32x128xf32, #tpu.memory_space<vmem>>, vector<8x128xf32>,
    %c1_i32 = arith.constant 1 : i32
    %c8_i32_42 = arith.constant 8 : i32
    %87 = arith.muli %c1_i32, %c8_i32_42 : i32
    %88 = tpu.assume_multiple %87, 8 : i32
    %89 = arith.index_cast %88 : i32 to index
    %c0_43 = arith.constant 0 : index
    %90 = vector.load %arg1[%89, %c0_43] : memref<32x512xf32, #tpu.memory_space<vmem>>, vector<8x512xf32>
    %c0_44 = arith.constant 0 : index
    %c0_45 = arith.constant 0 : index
    %91 = vector.load %arg12[%c0_44, %c0_45] : memref<8x128xf32, #tpu.memory_space<vmem>>, vector<8x128xf32>
    %92 = arith.truncf %91 : vector<8x128xf32> to vector<8x128xbf16>
    %c0_46 = arith.constant 0 : index
    %c0_47 = arith.constant 0 : index
    %93 = vector.load %arg3[%c0_46, %c0_47] : memref<128x512xbf16, #tpu.memory_space<vmem>>, vector<128x512xbf16>
    %cst_48 = arith.constant dense<0.000000e+00> : vector<8x512xf32>
    %94 = tpu.matmul %92, %93, %cst_48 {dimension_numbers = #tpu.dot_dimension_numbers<[1], [0], [0], [1], [0, 0, 1, 1], [], []>} : vector<8x128xbf16>, vector<128x512xbf16>, vector<8x512xf32> -> vector<8x512xf32>
    %95 = arith.addf %90, %94 : vector<8x512xf32>
    %c0_49 = arith.constant 0 : index
    %c0_50 = arith.constant 0 : index
    %96 = vector.load %arg13[%c0_49, %c0_50] : memref<8x128xf32, #tpu.memory_space<vmem>>, vector<8x128xf32>
    %97 = vector.extract_strided_slice %95 {offsets = [0, 0], sizes = [8, 384], strides = [1, 1]} : vector<8x512xf32> to vector<8x384xf32>
    %98 = arith.negf %97 : vector<8x384xf32>
    %99 = math.exp %98 : vector<8x384xf32>
    %cst_51 = arith.constant 1.000000e+00 : f32
    %100 = vector.broadcast %cst_51 : f32 to vector<8x384xf32>
    %101 = arith.addf %100, %99 : vector<8x384xf32>
    %102 = arith.divf %100, %101 : vector<8x384xf32>
    %103 = vector.extract_strided_slice %95 {offsets = [0, 384], sizes = [8, 128], strides = [1, 1]} : vector<8x512xf32> to vector<8x128xf32>
    %104 = math.tanh %103 : vector<8x128xf32>
    %105 = vector.extract_strided_slice %102 {offsets = [0, 128], sizes = [8, 128], strides = [1, 1]} : vector<8x384xf32> to vector<8x128xf32>
    %106 = arith.mulf %105, %96 : vector<8x128xf32>
    %107 = vector.extract_strided_slice %102 {offsets = [0, 0], sizes = [8, 128], strides = [1, 1]} : vector<8x384xf32> to vector<8x128xf32>
    %108 = arith.mulf %107, %104 : vector<8x128xf32>
    %109 = arith.addf %106, %108 : vector<8x128xf32>
    %110 = vector.extract_strided_slice %102 {offsets = [0, 256], sizes = [8, 128], strides = [1, 1]} : vector<8x384xf32> to vector<8x128xf32>
    %111 = math.tanh %109 : vector<8x128xf32>
    %112 = arith.mulf %110, %111 : vector<8x128xf32>
    %c0_52 = arith.constant 0 : index
    %c0_53 = arith.constant 0 : index
    %113 = vector.load %arg12[%c0_52, %c0_53] : memref<8x128xf32, #tpu.memory_space<vmem>>, vector<8x128xf32>
    tpu.vector_store %arg12[%c0_52, %c0_53], %112 {strides = array<i32>} : memref<8x128xf32, #tpu.memory_space<vmem>>, vector<8x128xf32>,
    %c0_54 = arith.constant 0 : index
    %c0_55 = arith.constant 0 : index
    %114 = vector.load %arg13[%c0_54, %c0_55] : memref<8x128xf32, #tpu.memory_space<vmem>>, vector<8x128xf32>
    tpu.vector_store %arg13[%c0_54, %c0_55], %109 {strides = array<i32>} : memref<8x128xf32, #tpu.memory_space<vmem>>, vector<8x128xf32>,
    %c0_56 = arith.constant 0 : index
    %c0_57 = arith.constant 0 : index
    %115 = vector.load %arg14[%c0_56, %c0_57] : memref<8x128xf32, #tpu.memory_space<vmem>>, vector<8x128xf32>
    %116 = tpu.concatenate %112, %115 in 1 : vector<8x128xf32>, vector<8x128xf32> -> vector<8x256xf32>
    %117 = arith.truncf %116 : vector<8x256xf32> to vector<8x256xbf16>
    %c0_58 = arith.constant 0 : index
    %c0_59 = arith.constant 0 : index
    %118 = vector.load %arg4[%c0_58, %c0_59] : memref<256x512xbf16, #tpu.memory_space<vmem>>, vector<256x512xbf16>
    %cst_60 = arith.constant dense<0.000000e+00> : vector<8x512xf32>
    %119 = tpu.matmul %117, %118, %cst_60 {dimension_numbers = #tpu.dot_dimension_numbers<[1], [0], [0], [1], [0, 0, 1, 1], [], []>} : vector<8x256xbf16>, vector<256x512xbf16>, vector<8x512xf32> -> vector<8x512xf32>
    %c0_61 = arith.constant 0 : index
    %c0_62 = arith.constant 0 : index
    %120 = vector.load %arg5[%c0_61, %c0_62] : memref<1x512xf32, #tpu.memory_space<vmem>>, vector<1x512xf32>
    %121 = vector.broadcast %120 : vector<1x512xf32> to vector<8x512xf32>
    %122 = arith.addf %119, %121 : vector<8x512xf32>
    %c0_63 = arith.constant 0 : index
    %c0_64 = arith.constant 0 : index
    %123 = vector.load %arg15[%c0_63, %c0_64] : memref<8x128xf32, #tpu.memory_space<vmem>>, vector<8x128xf32>
    %124 = vector.extract_strided_slice %122 {offsets = [0, 0], sizes = [8, 384], strides = [1, 1]} : vector<8x512xf32> to vector<8x384xf32>
    %125 = arith.negf %124 : vector<8x384xf32>
    %126 = math.exp %125 : vector<8x384xf32>
    %cst_65 = arith.constant 1.000000e+00 : f32
    %127 = vector.broadcast %cst_65 : f32 to vector<8x384xf32>
    %128 = arith.addf %127, %126 : vector<8x384xf32>
    %129 = arith.divf %127, %128 : vector<8x384xf32>
    %130 = vector.extract_strided_slice %122 {offsets = [0, 384], sizes = [8, 128], strides = [1, 1]} : vector<8x512xf32> to vector<8x128xf32>
    %131 = math.tanh %130 : vector<8x128xf32>
    %132 = vector.extract_strided_slice %129 {offsets = [0, 128], sizes = [8, 128], strides = [1, 1]} : vector<8x384xf32> to vector<8x128xf32>
    %133 = arith.mulf %132, %123 : vector<8x128xf32>
    %134 = vector.extract_strided_slice %129 {offsets = [0, 0], sizes = [8, 128], strides = [1, 1]} : vector<8x384xf32> to vector<8x128xf32>
    %135 = arith.mulf %134, %131 : vector<8x128xf32>
    %136 = arith.addf %133, %135 : vector<8x128xf32>
    %137 = vector.extract_strided_slice %129 {offsets = [0, 256], sizes = [8, 128], strides = [1, 1]} : vector<8x384xf32> to vector<8x128xf32>
    %138 = math.tanh %136 : vector<8x128xf32>
    %139 = arith.mulf %137, %138 : vector<8x128xf32>
    %c0_66 = arith.constant 0 : index
    %c0_67 = arith.constant 0 : index
    %140 = vector.load %arg14[%c0_66, %c0_67] : memref<8x128xf32, #tpu.memory_space<vmem>>, vector<8x128xf32>
    tpu.vector_store %arg14[%c0_66, %c0_67], %139 {strides = array<i32>} : memref<8x128xf32, #tpu.memory_space<vmem>>, vector<8x128xf32>,
    %c0_68 = arith.constant 0 : index
    %c0_69 = arith.constant 0 : index
    %141 = vector.load %arg15[%c0_68, %c0_69] : memref<8x128xf32, #tpu.memory_space<vmem>>, vector<8x128xf32>
    tpu.vector_store %arg15[%c0_68, %c0_69], %136 {strides = array<i32>} : memref<8x128xf32, #tpu.memory_space<vmem>>, vector<8x128xf32>,
    %c0_70 = arith.constant 0 : index
    %c0_71 = arith.constant 0 : index
    %142 = vector.load %arg16[%c0_70, %c0_71] : memref<8x128xf32, #tpu.memory_space<vmem>>, vector<8x128xf32>
    %143 = tpu.concatenate %139, %142 in 1 : vector<8x128xf32>, vector<8x128xf32> -> vector<8x256xf32>
    %144 = arith.truncf %143 : vector<8x256xf32> to vector<8x256xbf16>
    %c0_72 = arith.constant 0 : index
    %c0_73 = arith.constant 0 : index
    %145 = vector.load %arg6[%c0_72, %c0_73] : memref<256x512xbf16, #tpu.memory_space<vmem>>, vector<256x512xbf16>
    %cst_74 = arith.constant dense<0.000000e+00> : vector<8x512xf32>
    %146 = tpu.matmul %144, %145, %cst_74 {dimension_numbers = #tpu.dot_dimension_numbers<[1], [0], [0], [1], [0, 0, 1, 1], [], []>} : vector<8x256xbf16>, vector<256x512xbf16>, vector<8x512xf32> -> vector<8x512xf32>
    %c0_75 = arith.constant 0 : index
    %c0_76 = arith.constant 0 : index
    %147 = vector.load %arg7[%c0_75, %c0_76] : memref<1x512xf32, #tpu.memory_space<vmem>>, vector<1x512xf32>
    %148 = vector.broadcast %147 : vector<1x512xf32> to vector<8x512xf32>
    %149 = arith.addf %146, %148 : vector<8x512xf32>
    %c0_77 = arith.constant 0 : index
    %c0_78 = arith.constant 0 : index
    %150 = vector.load %arg17[%c0_77, %c0_78] : memref<8x128xf32, #tpu.memory_space<vmem>>, vector<8x128xf32>
    %151 = vector.extract_strided_slice %149 {offsets = [0, 0], sizes = [8, 384], strides = [1, 1]} : vector<8x512xf32> to vector<8x384xf32>
    %152 = arith.negf %151 : vector<8x384xf32>
    %153 = math.exp %152 : vector<8x384xf32>
    %cst_79 = arith.constant 1.000000e+00 : f32
    %154 = vector.broadcast %cst_79 : f32 to vector<8x384xf32>
    %155 = arith.addf %154, %153 : vector<8x384xf32>
    %156 = arith.divf %154, %155 : vector<8x384xf32>
    %157 = vector.extract_strided_slice %149 {offsets = [0, 384], sizes = [8, 128], strides = [1, 1]} : vector<8x512xf32> to vector<8x128xf32>
    %158 = math.tanh %157 : vector<8x128xf32>
    %159 = vector.extract_strided_slice %156 {offsets = [0, 128], sizes = [8, 128], strides = [1, 1]} : vector<8x384xf32> to vector<8x128xf32>
    %160 = arith.mulf %159, %150 : vector<8x128xf32>
    %161 = vector.extract_strided_slice %156 {offsets = [0, 0], sizes = [8, 128], strides = [1, 1]} : vector<8x384xf32> to vector<8x128xf32>
    %162 = arith.mulf %161, %158 : vector<8x128xf32>
    %163 = arith.addf %160, %162 : vector<8x128xf32>
    %164 = vector.extract_strided_slice %156 {offsets = [0, 256], sizes = [8, 128], strides = [1, 1]} : vector<8x384xf32> to vector<8x128xf32>
    %165 = math.tanh %163 : vector<8x128xf32>
    %166 = arith.mulf %164, %165 : vector<8x128xf32>
    %c0_80 = arith.constant 0 : index
    %c0_81 = arith.constant 0 : index
    %167 = vector.load %arg16[%c0_80, %c0_81] : memref<8x128xf32, #tpu.memory_space<vmem>>, vector<8x128xf32>
    tpu.vector_store %arg16[%c0_80, %c0_81], %166 {strides = array<i32>} : memref<8x128xf32, #tpu.memory_space<vmem>>, vector<8x128xf32>,
    %c0_82 = arith.constant 0 : index
    %c0_83 = arith.constant 0 : index
    %168 = vector.load %arg17[%c0_82, %c0_83] : memref<8x128xf32, #tpu.memory_space<vmem>>, vector<8x128xf32>
    tpu.vector_store %arg17[%c0_82, %c0_83], %163 {strides = array<i32>} : memref<8x128xf32, #tpu.memory_space<vmem>>, vector<8x128xf32>,
    %169 = arith.index_cast %88 : i32 to index
    %c0_84 = arith.constant 0 : index
    %170 = vector.load %arg11[%169, %c0_84] : memref<32x128xf32, #tpu.memory_space<vmem>>, vector<8x128xf32>
    tpu.vector_store %arg11[%169, %c0_84], %166 {strides = array<i32>} : memref<32x128xf32, #tpu.memory_space<vmem>>, vector<8x128xf32>,
    %c2_i32 = arith.constant 2 : i32
    %c8_i32_85 = arith.constant 8 : i32
    %171 = arith.muli %c2_i32, %c8_i32_85 : i32
    %172 = tpu.assume_multiple %171, 8 : i32
    %173 = arith.index_cast %172 : i32 to index
    %c0_86 = arith.constant 0 : index
    %174 = vector.load %arg1[%173, %c0_86] : memref<32x512xf32, #tpu.memory_space<vmem>>, vector<8x512xf32>
    %c0_87 = arith.constant 0 : index
    %c0_88 = arith.constant 0 : index
    %175 = vector.load %arg12[%c0_87, %c0_88] : memref<8x128xf32, #tpu.memory_space<vmem>>, vector<8x128xf32>
    %176 = arith.truncf %175 : vector<8x128xf32> to vector<8x128xbf16>
    %c0_89 = arith.constant 0 : index
    %c0_90 = arith.constant 0 : index
    %177 = vector.load %arg3[%c0_89, %c0_90] : memref<128x512xbf16, #tpu.memory_space<vmem>>, vector<128x512xbf16>
    %cst_91 = arith.constant dense<0.000000e+00> : vector<8x512xf32>
    %178 = tpu.matmul %176, %177, %cst_91 {dimension_numbers = #tpu.dot_dimension_numbers<[1], [0], [0], [1], [0, 0, 1, 1], [], []>} : vector<8x128xbf16>, vector<128x512xbf16>, vector<8x512xf32> -> vector<8x512xf32>
    %179 = arith.addf %174, %178 : vector<8x512xf32>
    %c0_92 = arith.constant 0 : index
    %c0_93 = arith.constant 0 : index
    %180 = vector.load %arg13[%c0_92, %c0_93] : memref<8x128xf32, #tpu.memory_space<vmem>>, vector<8x128xf32>
    %181 = vector.extract_strided_slice %179 {offsets = [0, 0], sizes = [8, 384], strides = [1, 1]} : vector<8x512xf32> to vector<8x384xf32>
    %182 = arith.negf %181 : vector<8x384xf32>
    %183 = math.exp %182 : vector<8x384xf32>
    %cst_94 = arith.constant 1.000000e+00 : f32
    %184 = vector.broadcast %cst_94 : f32 to vector<8x384xf32>
    %185 = arith.addf %184, %183 : vector<8x384xf32>
    %186 = arith.divf %184, %185 : vector<8x384xf32>
    %187 = vector.extract_strided_slice %179 {offsets = [0, 384], sizes = [8, 128], strides = [1, 1]} : vector<8x512xf32> to vector<8x128xf32>
    %188 = math.tanh %187 : vector<8x128xf32>
    %189 = vector.extract_strided_slice %186 {offsets = [0, 128], sizes = [8, 128], strides = [1, 1]} : vector<8x384xf32> to vector<8x128xf32>
    %190 = arith.mulf %189, %180 : vector<8x128xf32>
    %191 = vector.extract_strided_slice %186 {offsets = [0, 0], sizes = [8, 128], strides = [1, 1]} : vector<8x384xf32> to vector<8x128xf32>
    %192 = arith.mulf %191, %188 : vector<8x128xf32>
    %193 = arith.addf %190, %192 : vector<8x128xf32>
    %194 = vector.extract_strided_slice %186 {offsets = [0, 256], sizes = [8, 128], strides = [1, 1]} : vector<8x384xf32> to vector<8x128xf32>
    %195 = math.tanh %193 : vector<8x128xf32>
    %196 = arith.mulf %194, %195 : vector<8x128xf32>
    %c0_95 = arith.constant 0 : index
    %c0_96 = arith.constant 0 : index
    %197 = vector.load %arg12[%c0_95, %c0_96] : memref<8x128xf32, #tpu.memory_space<vmem>>, vector<8x128xf32>
    tpu.vector_store %arg12[%c0_95, %c0_96], %196 {strides = array<i32>} : memref<8x128xf32, #tpu.memory_space<vmem>>, vector<8x128xf32>,
    %c0_97 = arith.constant 0 : index
    %c0_98 = arith.constant 0 : index
    %198 = vector.load %arg13[%c0_97, %c0_98] : memref<8x128xf32, #tpu.memory_space<vmem>>, vector<8x128xf32>
    tpu.vector_store %arg13[%c0_97, %c0_98], %193 {strides = array<i32>} : memref<8x128xf32, #tpu.memory_space<vmem>>, vector<8x128xf32>,
    %c0_99 = arith.constant 0 : index
    %c0_100 = arith.constant 0 : index
    %199 = vector.load %arg14[%c0_99, %c0_100] : memref<8x128xf32, #tpu.memory_space<vmem>>, vector<8x128xf32>
    %200 = tpu.concatenate %196, %199 in 1 : vector<8x128xf32>, vector<8x128xf32> -> vector<8x256xf32>
    %201 = arith.truncf %200 : vector<8x256xf32> to vector<8x256xbf16>
    %c0_101 = arith.constant 0 : index
    %c0_102 = arith.constant 0 : index
    %202 = vector.load %arg4[%c0_101, %c0_102] : memref<256x512xbf16, #tpu.memory_space<vmem>>, vector<256x512xbf16>
    %cst_103 = arith.constant dense<0.000000e+00> : vector<8x512xf32>
    %203 = tpu.matmul %201, %202, %cst_103 {dimension_numbers = #tpu.dot_dimension_numbers<[1], [0], [0], [1], [0, 0, 1, 1], [], []>} : vector<8x256xbf16>, vector<256x512xbf16>, vector<8x512xf32> -> vector<8x512xf32>
    %c0_104 = arith.constant 0 : index
    %c0_105 = arith.constant 0 : index
    %204 = vector.load %arg5[%c0_104, %c0_105] : memref<1x512xf32, #tpu.memory_space<vmem>>, vector<1x512xf32>
    %205 = vector.broadcast %204 : vector<1x512xf32> to vector<8x512xf32>
    %206 = arith.addf %203, %205 : vector<8x512xf32>
    %c0_106 = arith.constant 0 : index
    %c0_107 = arith.constant 0 : index
    %207 = vector.load %arg15[%c0_106, %c0_107] : memref<8x128xf32, #tpu.memory_space<vmem>>, vector<8x128xf32>
    %208 = vector.extract_strided_slice %206 {offsets = [0, 0], sizes = [8, 384], strides = [1, 1]} : vector<8x512xf32> to vector<8x384xf32>
    %209 = arith.negf %208 : vector<8x384xf32>
    %210 = math.exp %209 : vector<8x384xf32>
    %cst_108 = arith.constant 1.000000e+00 : f32
    %211 = vector.broadcast %cst_108 : f32 to vector<8x384xf32>
    %212 = arith.addf %211, %210 : vector<8x384xf32>
    %213 = arith.divf %211, %212 : vector<8x384xf32>
    %214 = vector.extract_strided_slice %206 {offsets = [0, 384], sizes = [8, 128], strides = [1, 1]} : vector<8x512xf32> to vector<8x128xf32>
    %215 = math.tanh %214 : vector<8x128xf32>
    %216 = vector.extract_strided_slice %213 {offsets = [0, 128], sizes = [8, 128], strides = [1, 1]} : vector<8x384xf32> to vector<8x128xf32>
    %217 = arith.mulf %216, %207 : vector<8x128xf32>
    %218 = vector.extract_strided_slice %213 {offsets = [0, 0], sizes = [8, 128], strides = [1, 1]} : vector<8x384xf32> to vector<8x128xf32>
    %219 = arith.mulf %218, %215 : vector<8x128xf32>
    %220 = arith.addf %217, %219 : vector<8x128xf32>
    %221 = vector.extract_strided_slice %213 {offsets = [0, 256], sizes = [8, 128], strides = [1, 1]} : vector<8x384xf32> to vector<8x128xf32>
    %222 = math.tanh %220 : vector<8x128xf32>
    %223 = arith.mulf %221, %222 : vector<8x128xf32>
    %c0_109 = arith.constant 0 : index
    %c0_110 = arith.constant 0 : index
    %224 = vector.load %arg14[%c0_109, %c0_110] : memref<8x128xf32, #tpu.memory_space<vmem>>, vector<8x128xf32>
    tpu.vector_store %arg14[%c0_109, %c0_110], %223 {strides = array<i32>} : memref<8x128xf32, #tpu.memory_space<vmem>>, vector<8x128xf32>,
    %c0_111 = arith.constant 0 : index
    %c0_112 = arith.constant 0 : index
    %225 = vector.load %arg15[%c0_111, %c0_112] : memref<8x128xf32, #tpu.memory_space<vmem>>, vector<8x128xf32>
    tpu.vector_store %arg15[%c0_111, %c0_112], %220 {strides = array<i32>} : memref<8x128xf32, #tpu.memory_space<vmem>>, vector<8x128xf32>,
    %c0_113 = arith.constant 0 : index
    %c0_114 = arith.constant 0 : index
    %226 = vector.load %arg16[%c0_113, %c0_114] : memref<8x128xf32, #tpu.memory_space<vmem>>, vector<8x128xf32>
    %227 = tpu.concatenate %223, %226 in 1 : vector<8x128xf32>, vector<8x128xf32> -> vector<8x256xf32>
    %228 = arith.truncf %227 : vector<8x256xf32> to vector<8x256xbf16>
    %c0_115 = arith.constant 0 : index
    %c0_116 = arith.constant 0 : index
    %229 = vector.load %arg6[%c0_115, %c0_116] : memref<256x512xbf16, #tpu.memory_space<vmem>>, vector<256x512xbf16>
    %cst_117 = arith.constant dense<0.000000e+00> : vector<8x512xf32>
    %230 = tpu.matmul %228, %229, %cst_117 {dimension_numbers = #tpu.dot_dimension_numbers<[1], [0], [0], [1], [0, 0, 1, 1], [], []>} : vector<8x256xbf16>, vector<256x512xbf16>, vector<8x512xf32> -> vector<8x512xf32>
    %c0_118 = arith.constant 0 : index
    %c0_119 = arith.constant 0 : index
    %231 = vector.load %arg7[%c0_118, %c0_119] : memref<1x512xf32, #tpu.memory_space<vmem>>, vector<1x512xf32>
    %232 = vector.broadcast %231 : vector<1x512xf32> to vector<8x512xf32>
    %233 = arith.addf %230, %232 : vector<8x512xf32>
    %c0_120 = arith.constant 0 : index
    %c0_121 = arith.constant 0 : index
    %234 = vector.load %arg17[%c0_120, %c0_121] : memref<8x128xf32, #tpu.memory_space<vmem>>, vector<8x128xf32>
    %235 = vector.extract_strided_slice %233 {offsets = [0, 0], sizes = [8, 384], strides = [1, 1]} : vector<8x512xf32> to vector<8x384xf32>
    %236 = arith.negf %235 : vector<8x384xf32>
    %237 = math.exp %236 : vector<8x384xf32>
    %cst_122 = arith.constant 1.000000e+00 : f32
    %238 = vector.broadcast %cst_122 : f32 to vector<8x384xf32>
    %239 = arith.addf %238, %237 : vector<8x384xf32>
    %240 = arith.divf %238, %239 : vector<8x384xf32>
    %241 = vector.extract_strided_slice %233 {offsets = [0, 384], sizes = [8, 128], strides = [1, 1]} : vector<8x512xf32> to vector<8x128xf32>
    %242 = math.tanh %241 : vector<8x128xf32>
    %243 = vector.extract_strided_slice %240 {offsets = [0, 128], sizes = [8, 128], strides = [1, 1]} : vector<8x384xf32> to vector<8x128xf32>
    %244 = arith.mulf %243, %234 : vector<8x128xf32>
    %245 = vector.extract_strided_slice %240 {offsets = [0, 0], sizes = [8, 128], strides = [1, 1]} : vector<8x384xf32> to vector<8x128xf32>
    %246 = arith.mulf %245, %242 : vector<8x128xf32>
    %247 = arith.addf %244, %246 : vector<8x128xf32>
    %248 = vector.extract_strided_slice %240 {offsets = [0, 256], sizes = [8, 128], strides = [1, 1]} : vector<8x384xf32> to vector<8x128xf32>
    %249 = math.tanh %247 : vector<8x128xf32>
    %250 = arith.mulf %248, %249 : vector<8x128xf32>
    %c0_123 = arith.constant 0 : index
    %c0_124 = arith.constant 0 : index
    %251 = vector.load %arg16[%c0_123, %c0_124] : memref<8x128xf32, #tpu.memory_space<vmem>>, vector<8x128xf32>
    tpu.vector_store %arg16[%c0_123, %c0_124], %250 {strides = array<i32>} : memref<8x128xf32, #tpu.memory_space<vmem>>, vector<8x128xf32>,
    %c0_125 = arith.constant 0 : index
    %c0_126 = arith.constant 0 : index
    %252 = vector.load %arg17[%c0_125, %c0_126] : memref<8x128xf32, #tpu.memory_space<vmem>>, vector<8x128xf32>
    tpu.vector_store %arg17[%c0_125, %c0_126], %247 {strides = array<i32>} : memref<8x128xf32, #tpu.memory_space<vmem>>, vector<8x128xf32>,
    %253 = arith.index_cast %172 : i32 to index
    %c0_127 = arith.constant 0 : index
    %254 = vector.load %arg11[%253, %c0_127] : memref<32x128xf32, #tpu.memory_space<vmem>>, vector<8x128xf32>
    tpu.vector_store %arg11[%253, %c0_127], %250 {strides = array<i32>} : memref<32x128xf32, #tpu.memory_space<vmem>>, vector<8x128xf32>,
    %c3_i32 = arith.constant 3 : i32
    %c8_i32_128 = arith.constant 8 : i32
    %255 = arith.muli %c3_i32, %c8_i32_128 : i32
    %256 = tpu.assume_multiple %255, 8 : i32
    %257 = arith.index_cast %256 : i32 to index
    %c0_129 = arith.constant 0 : index
    %258 = vector.load %arg1[%257, %c0_129] : memref<32x512xf32, #tpu.memory_space<vmem>>, vector<8x512xf32>
    %c0_130 = arith.constant 0 : index
    %c0_131 = arith.constant 0 : index
    %259 = vector.load %arg12[%c0_130, %c0_131] : memref<8x128xf32, #tpu.memory_space<vmem>>, vector<8x128xf32>
    %260 = arith.truncf %259 : vector<8x128xf32> to vector<8x128xbf16>
    %c0_132 = arith.constant 0 : index
    %c0_133 = arith.constant 0 : index
    %261 = vector.load %arg3[%c0_132, %c0_133] : memref<128x512xbf16, #tpu.memory_space<vmem>>, vector<128x512xbf16>
    %cst_134 = arith.constant dense<0.000000e+00> : vector<8x512xf32>
    %262 = tpu.matmul %260, %261, %cst_134 {dimension_numbers = #tpu.dot_dimension_numbers<[1], [0], [0], [1], [0, 0, 1, 1], [], []>} : vector<8x128xbf16>, vector<128x512xbf16>, vector<8x512xf32> -> vector<8x512xf32>
    %263 = arith.addf %258, %262 : vector<8x512xf32>
    %c0_135 = arith.constant 0 : index
    %c0_136 = arith.constant 0 : index
    %264 = vector.load %arg13[%c0_135, %c0_136] : memref<8x128xf32, #tpu.memory_space<vmem>>, vector<8x128xf32>
    %265 = vector.extract_strided_slice %263 {offsets = [0, 0], sizes = [8, 384], strides = [1, 1]} : vector<8x512xf32> to vector<8x384xf32>
    %266 = arith.negf %265 : vector<8x384xf32>
    %267 = math.exp %266 : vector<8x384xf32>
    %cst_137 = arith.constant 1.000000e+00 : f32
    %268 = vector.broadcast %cst_137 : f32 to vector<8x384xf32>
    %269 = arith.addf %268, %267 : vector<8x384xf32>
    %270 = arith.divf %268, %269 : vector<8x384xf32>
    %271 = vector.extract_strided_slice %263 {offsets = [0, 384], sizes = [8, 128], strides = [1, 1]} : vector<8x512xf32> to vector<8x128xf32>
    %272 = math.tanh %271 : vector<8x128xf32>
    %273 = vector.extract_strided_slice %270 {offsets = [0, 128], sizes = [8, 128], strides = [1, 1]} : vector<8x384xf32> to vector<8x128xf32>
    %274 = arith.mulf %273, %264 : vector<8x128xf32>
    %275 = vector.extract_strided_slice %270 {offsets = [0, 0], sizes = [8, 128], strides = [1, 1]} : vector<8x384xf32> to vector<8x128xf32>
    %276 = arith.mulf %275, %272 : vector<8x128xf32>
    %277 = arith.addf %274, %276 : vector<8x128xf32>
    %278 = vector.extract_strided_slice %270 {offsets = [0, 256], sizes = [8, 128], strides = [1, 1]} : vector<8x384xf32> to vector<8x128xf32>
    %279 = math.tanh %277 : vector<8x128xf32>
    %280 = arith.mulf %278, %279 : vector<8x128xf32>
    %c0_138 = arith.constant 0 : index
    %c0_139 = arith.constant 0 : index
    %281 = vector.load %arg12[%c0_138, %c0_139] : memref<8x128xf32, #tpu.memory_space<vmem>>, vector<8x128xf32>
    tpu.vector_store %arg12[%c0_138, %c0_139], %280 {strides = array<i32>} : memref<8x128xf32, #tpu.memory_space<vmem>>, vector<8x128xf32>,
    %c0_140 = arith.constant 0 : index
    %c0_141 = arith.constant 0 : index
    %282 = vector.load %arg13[%c0_140, %c0_141] : memref<8x128xf32, #tpu.memory_space<vmem>>, vector<8x128xf32>
    tpu.vector_store %arg13[%c0_140, %c0_141], %277 {strides = array<i32>} : memref<8x128xf32, #tpu.memory_space<vmem>>, vector<8x128xf32>,
    %c0_142 = arith.constant 0 : index
    %c0_143 = arith.constant 0 : index
    %283 = vector.load %arg14[%c0_142, %c0_143] : memref<8x128xf32, #tpu.memory_space<vmem>>, vector<8x128xf32>
    %284 = tpu.concatenate %280, %283 in 1 : vector<8x128xf32>, vector<8x128xf32> -> vector<8x256xf32>
    %285 = arith.truncf %284 : vector<8x256xf32> to vector<8x256xbf16>
    %c0_144 = arith.constant 0 : index
    %c0_145 = arith.constant 0 : index
    %286 = vector.load %arg4[%c0_144, %c0_145] : memref<256x512xbf16, #tpu.memory_space<vmem>>, vector<256x512xbf16>
    %cst_146 = arith.constant dense<0.000000e+00> : vector<8x512xf32>
    %287 = tpu.matmul %285, %286, %cst_146 {dimension_numbers = #tpu.dot_dimension_numbers<[1], [0], [0], [1], [0, 0, 1, 1], [], []>} : vector<8x256xbf16>, vector<256x512xbf16>, vector<8x512xf32> -> vector<8x512xf32>
    %c0_147 = arith.constant 0 : index
    %c0_148 = arith.constant 0 : index
    %288 = vector.load %arg5[%c0_147, %c0_148] : memref<1x512xf32, #tpu.memory_space<vmem>>, vector<1x512xf32>
    %289 = vector.broadcast %288 : vector<1x512xf32> to vector<8x512xf32>
    %290 = arith.addf %287, %289 : vector<8x512xf32>
    %c0_149 = arith.constant 0 : index
    %c0_150 = arith.constant 0 : index
    %291 = vector.load %arg15[%c0_149, %c0_150] : memref<8x128xf32, #tpu.memory_space<vmem>>, vector<8x128xf32>
    %292 = vector.extract_strided_slice %290 {offsets = [0, 0], sizes = [8, 384], strides = [1, 1]} : vector<8x512xf32> to vector<8x384xf32>
    %293 = arith.negf %292 : vector<8x384xf32>
    %294 = math.exp %293 : vector<8x384xf32>
    %cst_151 = arith.constant 1.000000e+00 : f32
    %295 = vector.broadcast %cst_151 : f32 to vector<8x384xf32>
    %296 = arith.addf %295, %294 : vector<8x384xf32>
    %297 = arith.divf %295, %296 : vector<8x384xf32>
    %298 = vector.extract_strided_slice %290 {offsets = [0, 384], sizes = [8, 128], strides = [1, 1]} : vector<8x512xf32> to vector<8x128xf32>
    %299 = math.tanh %298 : vector<8x128xf32>
    %300 = vector.extract_strided_slice %297 {offsets = [0, 128], sizes = [8, 128], strides = [1, 1]} : vector<8x384xf32> to vector<8x128xf32>
    %301 = arith.mulf %300, %291 : vector<8x128xf32>
    %302 = vector.extract_strided_slice %297 {offsets = [0, 0], sizes = [8, 128], strides = [1, 1]} : vector<8x384xf32> to vector<8x128xf32>
    %303 = arith.mulf %302, %299 : vector<8x128xf32>
    %304 = arith.addf %301, %303 : vector<8x128xf32>
    %305 = vector.extract_strided_slice %297 {offsets = [0, 256], sizes = [8, 128], strides = [1, 1]} : vector<8x384xf32> to vector<8x128xf32>
    %306 = math.tanh %304 : vector<8x128xf32>
    %307 = arith.mulf %305, %306 : vector<8x128xf32>
    %c0_152 = arith.constant 0 : index
    %c0_153 = arith.constant 0 : index
    %308 = vector.load %arg14[%c0_152, %c0_153] : memref<8x128xf32, #tpu.memory_space<vmem>>, vector<8x128xf32>
    tpu.vector_store %arg14[%c0_152, %c0_153], %307 {strides = array<i32>} : memref<8x128xf32, #tpu.memory_space<vmem>>, vector<8x128xf32>,
    %c0_154 = arith.constant 0 : index
    %c0_155 = arith.constant 0 : index
    %309 = vector.load %arg15[%c0_154, %c0_155] : memref<8x128xf32, #tpu.memory_space<vmem>>, vector<8x128xf32>
    tpu.vector_store %arg15[%c0_154, %c0_155], %304 {strides = array<i32>} : memref<8x128xf32, #tpu.memory_space<vmem>>, vector<8x128xf32>,
    %c0_156 = arith.constant 0 : index
    %c0_157 = arith.constant 0 : index
    %310 = vector.load %arg16[%c0_156, %c0_157] : memref<8x128xf32, #tpu.memory_space<vmem>>, vector<8x128xf32>
    %311 = tpu.concatenate %307, %310 in 1 : vector<8x128xf32>, vector<8x128xf32> -> vector<8x256xf32>
    %312 = arith.truncf %311 : vector<8x256xf32> to vector<8x256xbf16>
    %c0_158 = arith.constant 0 : index
    %c0_159 = arith.constant 0 : index
    %313 = vector.load %arg6[%c0_158, %c0_159] : memref<256x512xbf16, #tpu.memory_space<vmem>>, vector<256x512xbf16>
    %cst_160 = arith.constant dense<0.000000e+00> : vector<8x512xf32>
    %314 = tpu.matmul %312, %313, %cst_160 {dimension_numbers = #tpu.dot_dimension_numbers<[1], [0], [0], [1], [0, 0, 1, 1], [], []>} : vector<8x256xbf16>, vector<256x512xbf16>, vector<8x512xf32> -> vector<8x512xf32>
    %c0_161 = arith.constant 0 : index
    %c0_162 = arith.constant 0 : index
    %315 = vector.load %arg7[%c0_161, %c0_162] : memref<1x512xf32, #tpu.memory_space<vmem>>, vector<1x512xf32>
    %316 = vector.broadcast %315 : vector<1x512xf32> to vector<8x512xf32>
    %317 = arith.addf %314, %316 : vector<8x512xf32>
    %c0_163 = arith.constant 0 : index
    %c0_164 = arith.constant 0 : index
    %318 = vector.load %arg17[%c0_163, %c0_164] : memref<8x128xf32, #tpu.memory_space<vmem>>, vector<8x128xf32>
    %319 = vector.extract_strided_slice %317 {offsets = [0, 0], sizes = [8, 384], strides = [1, 1]} : vector<8x512xf32> to vector<8x384xf32>
    %320 = arith.negf %319 : vector<8x384xf32>
    %321 = math.exp %320 : vector<8x384xf32>
    %cst_165 = arith.constant 1.000000e+00 : f32
    %322 = vector.broadcast %cst_165 : f32 to vector<8x384xf32>
    %323 = arith.addf %322, %321 : vector<8x384xf32>
    %324 = arith.divf %322, %323 : vector<8x384xf32>
    %325 = vector.extract_strided_slice %317 {offsets = [0, 384], sizes = [8, 128], strides = [1, 1]} : vector<8x512xf32> to vector<8x128xf32>
    %326 = math.tanh %325 : vector<8x128xf32>
    %327 = vector.extract_strided_slice %324 {offsets = [0, 128], sizes = [8, 128], strides = [1, 1]} : vector<8x384xf32> to vector<8x128xf32>
    %328 = arith.mulf %327, %318 : vector<8x128xf32>
    %329 = vector.extract_strided_slice %324 {offsets = [0, 0], sizes = [8, 128], strides = [1, 1]} : vector<8x384xf32> to vector<8x128xf32>
    %330 = arith.mulf %329, %326 : vector<8x128xf32>
    %331 = arith.addf %328, %330 : vector<8x128xf32>
    %332 = vector.extract_strided_slice %324 {offsets = [0, 256], sizes = [8, 128], strides = [1, 1]} : vector<8x384xf32> to vector<8x128xf32>
    %333 = math.tanh %331 : vector<8x128xf32>
    %334 = arith.mulf %332, %333 : vector<8x128xf32>
    %c0_166 = arith.constant 0 : index
    %c0_167 = arith.constant 0 : index
    %335 = vector.load %arg16[%c0_166, %c0_167] : memref<8x128xf32, #tpu.memory_space<vmem>>, vector<8x128xf32>
    tpu.vector_store %arg16[%c0_166, %c0_167], %334 {strides = array<i32>} : memref<8x128xf32, #tpu.memory_space<vmem>>, vector<8x128xf32>,
    %c0_168 = arith.constant 0 : index
    %c0_169 = arith.constant 0 : index
    %336 = vector.load %arg17[%c0_168, %c0_169] : memref<8x128xf32, #tpu.memory_space<vmem>>, vector<8x128xf32>
    tpu.vector_store %arg17[%c0_168, %c0_169], %331 {strides = array<i32>} : memref<8x128xf32, #tpu.memory_space<vmem>>, vector<8x128xf32>,
    %337 = arith.index_cast %256 : i32 to index
    %c0_170 = arith.constant 0 : index
    %338 = vector.load %arg11[%337, %c0_170] : memref<32x128xf32, #tpu.memory_space<vmem>>, vector<8x128xf32>
    tpu.vector_store %arg11[%337, %c0_170], %334 {strides = array<i32>} : memref<32x128xf32, #tpu.memory_space<vmem>>, vector<8x128xf32>,
    %c4_i32 = arith.constant 4 : i32
    %c0_171 = arith.constant 0 : index
    %c0_172 = arith.constant 0 : index
    %339 = vector.load %arg11[%c0_171, %c0_172] : memref<32x128xf32, #tpu.memory_space<vmem>>, vector<32x128xf32>
    %c0_173 = arith.constant 0 : index
    %c0_174 = arith.constant 0 : index
    %340 = vector.load %arg2[%c0_173, %c0_174] : memref<32x1xf32, #tpu.memory_space<vmem>>, vector<32x1xf32>
    %341 = vector.broadcast %340 : vector<32x1xf32> to vector<32x128xf32>
    %342 = arith.mulf %339, %341 : vector<32x128xf32>
    %343 = arith.truncf %342 : vector<32x128xf32> to vector<32x128xbf16>
    %c0_175 = arith.constant 0 : index
    %c0_176 = arith.constant 0 : index
    %344 = vector.load %arg8[%c0_175, %c0_176] : memref<128x128xbf16, #tpu.memory_space<vmem>>, vector<128x128xbf16>
    %cst_177 = arith.constant dense<0.000000e+00> : vector<32x128xf32>
    %345 = tpu.matmul %343, %344, %cst_177 {dimension_numbers = #tpu.dot_dimension_numbers<[1], [0], [0], [1], [0, 0, 1, 1], [], []>} : vector<32x128xbf16>, vector<128x128xbf16>, vector<32x128xf32> -> vector<32x128xf32>
    %c0_178 = arith.constant 0 : index
    %c0_179 = arith.constant 0 : index
    %346 = vector.load %arg9[%c0_178, %c0_179] : memref<1x128xf32, #tpu.memory_space<vmem>>, vector<1x128xf32>
    %347 = vector.broadcast %346 : vector<1x128xf32> to vector<32x128xf32>
    %348 = arith.addf %345, %347 : vector<32x128xf32>
    %c0_180 = arith.constant 0 : index
    %c0_181 = arith.constant 0 : index
    %349 = vector.load %arg10[%c0_180, %c0_181] : memref<32x128xf32, #tpu.memory_space<vmem>>, vector<32x128xf32>
    tpu.vector_store %arg10[%c0_180, %c0_181], %348 {strides = array<i32>} : memref<32x128xf32, #tpu.memory_space<vmem>>, vector<32x128xf32>,
    return
  }
  func.func @transform_0(%arg0: i32) -> (i32, i32) {
    %c0_i32 = arith.constant 0 : i32
    %c0_i32_0 = arith.constant 0 : i32
    return %arg0, %c0_i32 : i32, i32
  }
  func.func @transform_1(%arg0: i32) -> (i32, i32) {
    %c0_i32 = arith.constant 0 : i32
    %c0_i32_0 = arith.constant 0 : i32
    return %arg0, %c0_i32 : i32, i32
  }
  func.func @transform_2(%arg0: i32) -> (i32, i32) {
    %c0_i32 = arith.constant 0 : i32
    %c0_i32_0 = arith.constant 0 : i32
    %c0_i32_1 = arith.constant 0 : i32
    return %c0_i32, %c0_i32_0 : i32, i32
  }
  func.func @transform_3(%arg0: i32) -> (i32, i32) {
    %c0_i32 = arith.constant 0 : i32
    %c0_i32_0 = arith.constant 0 : i32
    %c0_i32_1 = arith.constant 0 : i32
    return %c0_i32, %c0_i32_0 : i32, i32
  }
  func.func @transform_4(%arg0: i32) -> (i32, i32) {
    %c0_i32 = arith.constant 0 : i32
    %c0_i32_0 = arith.constant 0 : i32
    %c0_i32_1 = arith.constant 0 : i32
    return %c0_i32, %c0_i32_0 : i32, i32
  }
  func.func @transform_5(%arg0: i32) -> (i32, i32) {
    %c0_i32 = arith.constant 0 : i32
    %c0_i32_0 = arith.constant 0 : i32
    %c0_i32_1 = arith.constant 0 : i32
    return %c0_i32, %c0_i32_0 : i32, i32
  }
  func.func @transform_6(%arg0: i32) -> (i32, i32) {
    %c0_i32 = arith.constant 0 : i32
    %c0_i32_0 = arith.constant 0 : i32
    %c0_i32_1 = arith.constant 0 : i32
    return %c0_i32, %c0_i32_0 : i32, i32
  }
  func.func @transform_7(%arg0: i32) -> (i32, i32) {
    %c0_i32 = arith.constant 0 : i32
    %c0_i32_0 = arith.constant 0 : i32
    %c0_i32_1 = arith.constant 0 : i32
    return %c0_i32, %c0_i32_0 : i32, i32
  }
  func.func @transform_8(%arg0: i32) -> (i32, i32) {
    %c0_i32 = arith.constant 0 : i32
    %c0_i32_0 = arith.constant 0 : i32
    %c0_i32_1 = arith.constant 0 : i32
    return %c0_i32, %c0_i32_0 : i32, i32
  }
  func.func @transform_9(%arg0: i32) -> (i32, i32) {
    %c0_i32 = arith.constant 0 : i32
    %c0_i32_0 = arith.constant 0 : i32
    return %arg0, %c0_i32 : i32, i32
  }
}

</mosaic_0001>

<bundles_post_ra>
// kernel: lstm_model_forward.1
= control target key start
LH: loop header
LB: loop body
LE: loop exit
PB: predicated region body
PF: predicated region fallthrough
CT: control target
= control target key end

     0   :  { %14 = vsyncpa [#allocation10], 0  ;;  %s8802_s0 = inlined_call_operand.vmem [shape: f32[64,512], index: 0, kind: input, shape index: {}]   ;;  %s8803_s1 = inlined_call_operand.vmem [shape: f32[64,1], index: 1, kind: input, shape index: {}]   ;;  %s8804_s2 = inlined_call_operand.vmem [shape: bf16[128,512], index: 2, kind: input, shape index: {}]   ;;  %s8805_s3 = inlined_call_operand.hbm [shape: bf16[256,512], index: 3, kind: input, shape index: {}]   ;;  %s8806_s4 = inlined_call_operand.vmem [shape: f32[1,512], index: 4, kind: input, shape index: {}]   ;;  %s8807_s5 = inlined_call_operand.hbm [shape: bf16[256,512], index: 5, kind: input, shape index: {}]   ;;  %s8808_s6 = inlined_call_operand.vmem [shape: f32[1,512], index: 6, kind: input, shape index: {}]   ;;  %s8809_s7 = inlined_call_operand.vmem [shape: bf16[128,128], index: 7, kind: input, shape index: {}]   ;;  %s8810_s8 = inlined_call_operand.vmem [shape: f32[1,128], index: 8, kind: input, shape index: {}]   ;;  %s8811_s9 = inlined_call_operand.vmem [shape: f32[64,128], index: 9, kind: output, shape index: {}]  }
   0x1   :  { %15 = vsyncpa [#allocation12], 0  ;;  %s8130_s30 = smov 0  }
   0x2 LB: > { %s8136_s10 = sadd.s32 4294967295, %s8072_s30   ;;  %p6062_p0 = scmp.ge.s32.totalorder %s8072_s30, 1  ;;  %s8072_s30 = sphi %s8130_s30, %s21_s30  }
   0x3   : > { %p251_p1 = scmp.lt.s32.totalorder %s8072_s30, 3  ;;  %s8074_s11 = smov [#allocation9]  }
   0x4   : > { %s266_s12 = sshll.u32 %s8074_s11, 4  ;;  %p8812_p4 = scmp.eq.s32.totalorder %s8136_s10, 0  ;;  %s267_s12 = int_to_ptr.vmem [resolvable:$true] %s266_s12 }
   0x5   : > { %p8141_p3 = pnand %p6062_p0, %p251_p1  ;;  %s8075_s14 = smov [#allocation11]  }
   0x6   : > { %s282_s15 = sshll.u32 %s8075_s14, 4  ;;  %s8002_s19 = scalar_lea.hbm %s8805_s3, 8192  ;;  %s8154_s15 = int_to_ptr.vmem [resolvable:$true] %s282_s15 }
   0x7   : > { %s8814_s13 = scalar_select %p8141_p3, 1, 0 }
   0x8   : > { %p6815_p5 = pneg %p8141_p3  ;;  %p8003_p7 = scmp.ne.s32.totalorder %s8805_s3, %s8002_s19 }
   0x9   : > { %p8009_p11 = scmp.lt.u32.totalorder %s8002_s19, %s8805_s3 }
   0xa   : > { %p8150_p6 = pnand %p8812_p4, %p6815_p5 }
   0xc   : > { %p8004_p8 = pneg %p8150_p6 }
   0xe   : > { %p8005_p9 = pnand %p8004_p8, %p8003_p7 }
  0x10   : > { %p8006_p10 = pneg %p8005_p9 }
  0x12   : > { %p8011_p12 = pnand %p8009_p11, %p8006_p10 }
  0x14   : > { %8014 = shalt.err (!%p8011_p12)
}
  0x15   : > { %s8015_s24 = scalar_lea.vmem %s267_s12, 8192  ;;  %p8023_p5 = scmp.lt.s32.totalorder %s267_s12, %s267_s12 }
  0x16   : > { %p8016_p13 = scmp.ne.s32.totalorder %s267_s12, %s8015_s24  ;;  %p8024_p2 = scmp.lt.s32.totalorder %s8015_s24, %s8015_s24 }
  0x18   : > { %p8018_p0 = pnand %p8016_p13, %p8004_p8  ;;  %p8025_p4 = por %p8024_p2, %p8023_p5 }
  0x1a   : > { %p8019_p1 = pneg %p8018_p0 }
  0x1c   : > { %p8026_p3 = pnand %p8025_p4, %p8019_p1 }
  0x1e   : > { %8029 = shalt.err (!%p8026_p3)
}
  0x1f   : > { %s8076_s25 = smov 256   ;;  %s8077_s26 = smov 16  }
  0x20   : > { %6818 = dma.hbm_to_vmem [thread:$0]  (!%p8150_p6), %s8805_s3, 8192, %s267_s12, [#allocation10], %s8076_s25, %s8076_s25, %s8077_s26  }
  0x21   : > { %s8030_s14 = scalar_lea.hbm %s8807_s5, 8192 }
  0x22   : > { %p8031_p7 = scmp.ne.s32.totalorder %s8807_s5, %s8030_s14  ;;  %p8037_p4 = scmp.lt.u32.totalorder %s8030_s14, %s8807_s5 }
  0x24   : > { %p8033_p2 = pnand %p8031_p7, %p8004_p8 }
  0x26   : > { %p8034_p3 = pneg %p8033_p2 }
  0x28   : > { %p8039_p9 = pnand %p8037_p4, %p8034_p3 }
  0x2a   : > { %8042 = shalt.err (!%p8039_p9)
}
  0x2b   : > { %s8043_s12 = scalar_lea.vmem %s8154_s15, 8192  ;;  %p8051_p13 = scmp.lt.s32.totalorder %s8154_s15, %s8154_s15 }
  0x2c   : > { %p8044_p10 = scmp.ne.s32.totalorder %s8154_s15, %s8043_s12  ;;  %p8052_p0 = scmp.lt.s32.totalorder %s8043_s12, %s8043_s12 }
  0x2e   : > { %p8046_p11 = pnand %p8044_p10, %p8004_p8  ;;  %p8053_p1 = por %p8052_p0, %p8051_p13 }
  0x30   : > { %p8047_p12 = pneg %p8046_p11 }
  0x32   : > { %p8054_p5 = pnand %p8053_p1, %p8047_p12 }
  0x34   : > { %8057 = shalt.err (!%p8054_p5)
}
  0x35   : > { %6821 = dma.hbm_to_vmem [thread:$0]  (!%p8150_p6), %s8807_s5, 8192, %s8154_s15, [#allocation12], %s8076_s25, %s8076_s25, %s8077_s26  }
  0x36   : > { %p8816_p7 = scmp.ne.s32.totalorder %s8814_s13, 0 }
  0x37   : > { %p8817_p2 = scmp.eq.s32.totalorder (!%p8816_p7), %s8136_s10, 0 }
  0x38   : > { %326 = sbr.rel (%p8816_p7) target bundleno = 2766 (0xace), region = 56 }
  0x3f   : > { %8063 = dma.done.wait (%p8817_p2), [#allocation10], 8192   ;;  %p8818_p8 = pmov %p8817_p2 }
  0x40   : > { %p8819_p3 = pmov %p8817_p2 }
  0x41   : > { %8065 = vsyncadd (%p8818_p8), [#allocation10], 4294959104 }
  0x42   : > { %8067 = dma.done.wait (%p8819_p3), [#allocation12], 8192   ;;  %p8820_p4 = pmov %p8817_p2 }
  0x43   : > { %s6069_s16 = sshll.u32 %s8136_s10, 2  ;;  %p8821_p6 = scmp.ne.s32.totalorder %s8136_s10, 0 }
  0x44   : > { %8069 = vsyncadd (%p8820_p4), [#allocation12], 4294959104  ;;  %p373_p9 = scmp.lt.s32.totalorder %s6069_s16, 7  ;;  %v8078_v0 = vmov (!%p8821_p6), 0.0  }
  0x45   : > { %395 = sbr.rel (%p8821_p6) target bundleno = 76 (0x4c), region = 68  ;;  %396 = vst [vmem:[#allocation3] sm:$0xff] (!%p8821_p6), %v8078_v0  ;;  %397 = vst [vmem:[#allocation4] sm:$0xff] (!%p8821_p6), %v8078_v0 }
  0x46   : > { %s8823_s16 = smov (!%p373_p9, %s6069_s16), 7  ;;  %398 = vst [vmem:[#allocation5] sm:$0xff] (!%p8821_p6), %v8078_v0  ;;  %399 = vst [vmem:[#allocation6] sm:$0xff] (!%p8821_p6), %v8078_v0 }
  0x47   : > { %s6776_s15 = sshll.u32 %s8823_s16, 5  ;;  %s6073_s23 = sshll.u32 %s8823_s16, 3  ;;  %400 = vst [vmem:[#allocation7] sm:$0xff] (!%p8821_p6), %v8078_v0  ;;  %401 = vst [vmem:[#allocation8] sm:$0xff] (!%p8821_p6), %v8078_v0 }
  0x48   : > { %s8217_s25 = scalar_lea.vmem %s8802_s0, %s6776_s15  ;;  %s8222_s28 = scalar_lea.vmem %s8803_s1, %s6073_s23 }
  0x49   : > { %s8227_s14 = scalar_lea.vmem %s8811_s9, %s6073_s23 }
  0x4c PF: > { %v6842_v1 = vld [vmem:[%s8804_s2 + $0x4] ss:$16 sps:$4 sm:$0xff]   ;;  %v6844_v2 = vld [vmem:[%s8804_s2] ss:$16 sps:$4 sm:$0xff]   ;;  %v8079_v3 = vmov 0  }
  0x4d   : > { %635 = vmatprep.mubr.bf16.mxu0 %v8079_v3  ;;  %676 = vmatprep.mubr.bf16.mxu1 %v8079_v3  ;;  %v6845_v4 = vld [vmem:[%s8804_s2 + $0x24] ss:$16 sps:$4 sm:$0xff]   ;;  %v6847_v5 = vld [vmem:[%s8804_s2 + $0x20] ss:$16 sps:$4 sm:$0xff]   ;;  %v6853_v7 = vld [vmem:[%s8804_s2 + $0xc] ss:$16 sps:$4 sm:$0xff]  }
  0x4e   : > { %603 = vmatprep.subr.bf16.mxu0 %v6842_v1  ;;  %6840 = vset.pattern.permute.xlu0 %v8079_v3  ;;  %v6848_v6 = vld [vmem:[%s8804_s2 + $0x44] ss:$16 sps:$4 sm:$0xff]   ;;  %v6856_v8 = vld [vmem:[%s8804_s2 + $0x8] ss:$16 sps:$4 sm:$0xff]   ;;  %v6850_v9 = vld [vmem:[%s8804_s2 + $0x40] ss:$16 sps:$4 sm:$0xff]  }
  0x4f   : > { %604 = vmatpush1.bf16.msra.mxu0 %v6844_v2  ;;  %6841 = vset.pattern.permute.xlu1 %v8079_v3  ;;  %v6851_v10 = vld [vmem:[%s8804_s2 + $0x64] ss:$16 sps:$4 sm:$0xff]   ;;  %v6859_v11 = vld [vmem:[%s8804_s2 + $0x2c] ss:$16 sps:$4 sm:$0xff]   ;;  %v6862_v12 = vld [vmem:[%s8804_s2 + $0x28] ss:$16 sps:$4 sm:$0xff]  }
  0x50   : > { %605 = vmatprep.subr.bf16.mxu0 %v6845_v4  ;;  %644 = vmatprep.subr.bf16.mxu1 %v6853_v7  ;;  %v6855_v13 = vld [vmem:[%s8804_s2 + $0x60] ss:$16 sps:$4 sm:$0xff]   ;;  %v6857_v14 = vld [vmem:[%s8804_s2 + $0x84] ss:$16 sps:$4 sm:$0xff]   ;;  %v6865_v15 = vld [vmem:[%s8804_s2 + $0x4c] ss:$16 sps:$4 sm:$0xff]  }
  0x51   : > { %645 = vmatpush1.bf16.msra.mxu1 %v6856_v8  ;;  %v6868_v16 = vld [vmem:[%s8804_s2 + $0x48] ss:$16 sps:$4 sm:$0xff]   ;;  %v6871_v17 = vld [vmem:[%s8804_s2 + $0x6c] ss:$16 sps:$4 sm:$0xff]   ;;  %v6861_v18 = vld [vmem:[%s8804_s2 + $0x80] ss:$16 sps:$4 sm:$0xff]  }
  0x52   : > { %646 = vmatprep.subr.bf16.mxu1 %v6859_v11  ;;  %v6863_v19 = vld [vmem:[%s8804_s2 + $0xa4] ss:$16 sps:$4 sm:$0xff]   ;;  %v6874_v20 = vld [vmem:[%s8804_s2 + $0x68] ss:$16 sps:$4 sm:$0xff]   ;;  %v6877_v21 = vld [vmem:[%s8804_s2 + $0x8c] ss:$16 sps:$4 sm:$0xff]  }
  0x53   : > { %606 = vmatpush1.bf16.msra.mxu0 %v6847_v5  ;;  %v6867_v22 = vld [vmem:[%s8804_s2 + $0xa0] ss:$16 sps:$4 sm:$0xff]   ;;  %v6869_v23 = vld [vmem:[%s8804_s2 + $0xc4] ss:$16 sps:$4 sm:$0xff]   ;;  %v6880_v24 = vld [vmem:[%s8804_s2 + $0x88] ss:$16 sps:$4 sm:$0xff]  }
  0x54   : > { %607 = vmatprep.subr.bf16.mxu0 %v6848_v6  ;;  %v6881_v25 = vld [vmem:[%s8804_s2 + $0xac] ss:$16 sps:$4 sm:$0xff]   ;;  %v6873_v26 = vld [vmem:[%s8804_s2 + $0xc0] ss:$16 sps:$4 sm:$0xff]   ;;  %v6875_v27 = vld [vmem:[%s8804_s2 + $0xe4] ss:$16 sps:$4 sm:$0xff]  }
  0x55   : > { %647 = vmatpush1.bf16.msra.mxu1 %v6862_v12  ;;  %v6883_v28 = vld [vmem:[%s8804_s2 + $0xa8] ss:$16 sps:$4 sm:$0xff]   ;;  %v6884_v29 = vld [vmem:[%s8804_s2 + $0xcc] ss:$16 sps:$4 sm:$0xff]   ;;  %v6879_v30 = vld [vmem:[%s8804_s2 + $0xe0] ss:$16 sps:$4 sm:$0xff]  }
  0x56   : > { %648 = vmatprep.subr.bf16.mxu1 %v6865_v15  ;;  %v409_v31 = vld [vmem:[#allocation3] sm:$0xff]  ;;  %v6886_v32 = vld [vmem:[%s8804_s2 + $0xc8] ss:$16 sps:$4 sm:$0xff]   ;;  %v6887_v34 = vld [vmem:[%s8804_s2 + $0xec] ss:$16 sps:$4 sm:$0xff]  }
  0x57   : > { %608 = vmatpush1.bf16.msra.mxu0 %v6850_v9  ;;  %v6892_v33 = vld [vmem:[#allocation9 + $0x4] ss:$16 sps:$4 sm:$0xff]   ;;  %v410_v35 = vpack.c.bf16 %v409_v31, %v409_v31  ;;  %v6889_v36 = vld [vmem:[%s8804_s2 + $0xe8] ss:$16 sps:$4 sm:$0xff]   ;;  %v6890_v37 = vld [vmem:[#allocation9] ss:$16 sps:$4 sm:$0xff]  }
  0x58   : > { %609 = vmatprep.subr.bf16.mxu0 %v6851_v10  ;;  %v6895_v38 = vld [vmem:[#allocation9 + $0xc] ss:$16 sps:$4 sm:$0xff]   ;;  %v6898_v39 = vld [vmem:[#allocation9 + $0x24] ss:$16 sps:$4 sm:$0xff]   ;;  %v6896_v40 = vld [vmem:[#allocation9 + $0x20] ss:$16 sps:$4 sm:$0xff]  }
  0x59   : > { %649 = vmatpush1.bf16.msra.mxu1 %v6868_v16  ;;  %v6893_v41 = vld [vmem:[#allocation9 + $0x8] ss:$16 sps:$4 sm:$0xff]   ;;  %v6904_v42 = vld [vmem:[#allocation9 + $0x44] ss:$16 sps:$4 sm:$0xff]   ;;  %v6901_v43 = vld [vmem:[#allocation9 + $0x2c] ss:$16 sps:$4 sm:$0xff]  }
  0x5a   : > { %650 = vmatprep.subr.bf16.mxu1 %v6871_v17  ;;  %v6902_v44 = vld [vmem:[#allocation9 + $0x40] ss:$16 sps:$4 sm:$0xff]   ;;  %v6899_v45 = vld [vmem:[#allocation9 + $0x28] ss:$16 sps:$4 sm:$0xff]   ;;  %v6910_v46 = vld [vmem:[#allocation9 + $0x64] ss:$16 sps:$4 sm:$0xff]  }
  0x5b   : > { %610 = vmatpush1.bf16.msra.mxu0 %v6855_v13  ;;  %v6907_v47 = vld [vmem:[#allocation9 + $0x4c] ss:$16 sps:$4 sm:$0xff]   ;;  %v6908_v48 = vld [vmem:[#allocation9 + $0x60] ss:$16 sps:$4 sm:$0xff]   ;;  %v6905_v49 = vld [vmem:[#allocation9 + $0x48] ss:$16 sps:$4 sm:$0xff]  }
  0x5c   : > { %611 = vmatprep.subr.bf16.mxu0 %v6857_v14  ;;  %v6913_v50 = vld [vmem:[#allocation9 + $0x6c] ss:$16 sps:$4 sm:$0xff]   ;;  %v6911_v51 = vld [vmem:[#allocation9 + $0x68] ss:$16 sps:$4 sm:$0xff]   ;;  %v6916_v52 = vld [vmem:[#allocation9 + $0x84] ss:$16 sps:$4 sm:$0xff]  }
  0x5d   : > { %651 = vmatpush1.bf16.msra.mxu1 %v6874_v20  ;;  %v6919_v53 = vld [vmem:[#allocation9 + $0x8c] ss:$16 sps:$4 sm:$0xff]   ;;  %v6914_v54 = vld [vmem:[#allocation9 + $0x80] ss:$16 sps:$4 sm:$0xff]   ;;  %v6917_v55 = vld [vmem:[#allocation9 + $0x88] ss:$16 sps:$4 sm:$0xff]  }
  0x5e   : > { %652 = vmatprep.subr.bf16.mxu1 %v6877_v21  ;;  %v6922_v56 = vld [vmem:[#allocation9 + $0xa4] ss:$16 sps:$4 sm:$0xff]   ;;  %v6925_v57 = vld [vmem:[#allocation9 + $0xac] ss:$16 sps:$4 sm:$0xff]   ;;  %v6920_v58 = vld [vmem:[#allocation9 + $0xa0] ss:$16 sps:$4 sm:$0xff]  }
  0x5f   : > { %612 = vmatpush1.bf16.msra.mxu0 %v6861_v18  ;;  %v6923_v59 = vld [vmem:[#allocation9 + $0xa8] ss:$16 sps:$4 sm:$0xff]   ;;  %v6928_v60 = vld [vmem:[#allocation9 + $0xc4] ss:$16 sps:$4 sm:$0xff]   ;;  %v6931_v61 = vld [vmem:[#allocation9 + $0xcc] ss:$16 sps:$4 sm:$0xff]  }
  0x60   : > { %613 = vmatprep.subr.bf16.mxu0 %v6863_v19  ;;  %v6926_v62 = vld [vmem:[#allocation9 + $0xc0] ss:$16 sps:$4 sm:$0xff]   ;;  %v6929_v63 = vld [vmem:[#allocation9 + $0xc8] ss:$16 sps:$4 sm:$0xff]   ;;  %v6934_v0 = vld [vmem:[#allocation9 + $0xe4] ss:$16 sps:$4 sm:$0xff]  }
  0x61   : > { %653 = vmatpush1.bf16.msra.mxu1 %v6880_v24  ;;  %v6937_v1 = vld [vmem:[#allocation9 + $0xec] ss:$16 sps:$4 sm:$0xff]   ;;  %v6932_v2 = vld [vmem:[#allocation9 + $0xe0] ss:$16 sps:$4 sm:$0xff]   ;;  %v6935_v4 = vld [vmem:[#allocation9 + $0xe8] ss:$16 sps:$4 sm:$0xff]  }
  0x62   : > { %654 = vmatprep.subr.bf16.mxu1 %v6881_v25  ;;  %v6940_v5 = vld [vmem:[#allocation9 + $0x104] ss:$16 sps:$4 sm:$0xff]   ;;  %v6938_v6 = vld [vmem:[#allocation9 + $0x100] ss:$16 sps:$4 sm:$0xff]   ;;  %v6941_v7 = vld [vmem:[#allocation9 + $0x108] ss:$16 sps:$4 sm:$0xff]  }
  0x63   : > { %614 = vmatpush1.bf16.msra.mxu0 %v6867_v22  ;;  %v6943_v8 = vld [vmem:[#allocation9 + $0x10c] ss:$16 sps:$4 sm:$0xff]   ;;  %v6946_v9 = vld [vmem:[#allocation9 + $0x124] ss:$16 sps:$4 sm:$0xff]   ;;  %v6944_v11 = vld [vmem:[#allocation9 + $0x120] ss:$16 sps:$4 sm:$0xff]  }
  0x64   : > { %615 = vmatprep.subr.bf16.mxu0 %v6869_v23  ;;  %v6949_v10 = vld [vmem:[#allocation9 + $0x12c] ss:$16 sps:$4 sm:$0xff]   ;;  %v6947_v12 = vld [vmem:[#allocation9 + $0x128] ss:$16 sps:$4 sm:$0xff]   ;;  %v6952_v13 = vld [vmem:[#allocation9 + $0x144] ss:$16 sps:$4 sm:$0xff]  }
  0x65   : > { %655 = vmatpush1.bf16.msra.mxu1 %v6883_v28  ;;  %v6955_v14 = vld [vmem:[#allocation9 + $0x14c] ss:$16 sps:$4 sm:$0xff]   ;;  %v6950_v15 = vld [vmem:[#allocation9 + $0x140] ss:$16 sps:$4 sm:$0xff]   ;;  %v6953_v16 = vld [vmem:[#allocation9 + $0x148] ss:$16 sps:$4 sm:$0xff]  }
  0x66   : > { %656 = vmatprep.subr.bf16.mxu1 %v6884_v29  ;;  %v6958_v17 = vld [vmem:[#allocation9 + $0x164] ss:$16 sps:$4 sm:$0xff]   ;;  %v6961_v18 = vld [vmem:[#allocation9 + $0x16c] ss:$16 sps:$4 sm:$0xff]   ;;  %v6956_v19 = vld [vmem:[#allocation9 + $0x160] ss:$16 sps:$4 sm:$0xff]  }
  0x67   : > { %616 = vmatpush1.bf16.msra.mxu0 %v6873_v26  ;;  %v6959_v20 = vld [vmem:[#allocation9 + $0x168] ss:$16 sps:$4 sm:$0xff]   ;;  %v6964_v21 = vld [vmem:[#allocation9 + $0x184] ss:$16 sps:$4 sm:$0xff]   ;;  %v6967_v22 = vld [vmem:[#allocation9 + $0x18c] ss:$16 sps:$4 sm:$0xff]  }
  0x68   : > { %617 = vmatprep.subr.bf16.mxu0 %v6875_v27  ;;  %v6962_v23 = vld [vmem:[#allocation9 + $0x180] ss:$16 sps:$4 sm:$0xff]   ;;  %v6965_v24 = vld [vmem:[#allocation9 + $0x188] ss:$16 sps:$4 sm:$0xff]   ;;  %v6970_v26 = vld [vmem:[#allocation9 + $0x1a4] ss:$16 sps:$4 sm:$0xff]  }
  0x69   : > { %657 = vmatpush1.bf16.msra.mxu1 %v6886_v32  ;;  %v6968_v25 = vld [vmem:[#allocation9 + $0x1a0] ss:$16 sps:$4 sm:$0xff]   ;;  %v6971_v27 = vld [vmem:[#allocation9 + $0x1a8] ss:$16 sps:$4 sm:$0xff]   ;;  %v6973_v28 = vld [vmem:[#allocation9 + $0x1ac] ss:$16 sps:$4 sm:$0xff]  }
  0x6a   : > { %658 = vmatprep.subr.bf16.mxu1 %v6887_v34  ;;  %v6976_v29 = vld [vmem:[#allocation9 + $0x1c4] ss:$16 sps:$4 sm:$0xff]   ;;  %v6974_v31 = vld [vmem:[#allocation9 + $0x1c0] ss:$16 sps:$4 sm:$0xff]   ;;  %v6977_v32 = vld [vmem:[#allocation9 + $0x1c8] ss:$16 sps:$4 sm:$0xff]  }
  0x6b   : > { %618 = vmatpush1.bf16.msra.mxu0 %v6879_v30  ;;  %v6979_v30 = vld [vmem:[#allocation9 + $0x1cc] ss:$16 sps:$4 sm:$0xff]  }
  0x6c   : > { %1125 = vmatprep.subr.bf16.mxu0 %v6892_v33  ;;  %v6982_v33 = vld [vmem:[#allocation9 + $0x1e4] ss:$16 sps:$4 sm:$0xff]   ;;  %v6985_v34 = vld [vmem:[#allocation9 + $0x1ec] ss:$16 sps:$4 sm:$0xff]  }
  0x6d   : > { %659 = vmatpush1.bf16.msra.mxu1 %v6889_v36 }
  0x6e   : > { %636 = vmatmul.mubr.bf16.vlgmr.msra.gmra.mrb[0].mxu0 %v410_v35  ;;  %1166 = vmatprep.subr.bf16.mxu1 %v6895_v38  ;;  %v6983_v38 = vld [vmem:[#allocation9 + $0x1e8] ss:$16 sps:$4 sm:$0xff]  }
  0x6f   : > { %1126 = vmatpush1.bf16.msra.mxu0 %v6890_v37  ;;  %v6980_v37 = vld [vmem:[#allocation9 + $0x1e0] ss:$16 sps:$4 sm:$0xff]  }
  0x70   : > { %1127 = vmatprep.subr.bf16.mxu0 %v6898_v39  ;;  %677 = vmatmul.mubr.bf16.vlgmr.msra.gmra.mrb[0].mxu1 %v410_v35  ;;  %v716_v35 = vld [vmem:[#allocation5] sm:$0xff] }
  0x71   : > { %1167 = vmatpush1.bf16.msra.mxu1 %v6893_v41  ;;  %v718_v36 = vpack.c.bf16 %v716_v35, %v716_v35  ;;  %v6988_v39 = vld [vmem:[#allocation11 + $0x4] ss:$16 sps:$4 sm:$0xff]   ;;  %v7019_v35 = vld [vmem:[#allocation11 + $0xa8] ss:$16 sps:$4 sm:$0xff]  }
  0x72   : > { %1168 = vmatprep.subr.bf16.mxu1 %v6901_v43  ;;  %v405_v41 = vld [vmem:[%s8217_s25] sm:$0xff] }
  0x73   : > { %1128 = vmatpush1.bf16.msra.mxu0 %v6896_v40  ;;  %1157 = vmatprep.mubr.bf16.mxu0 %v718_v36  ;;  %v6991_v40 = vld [vmem:[#allocation11 + $0xc] ss:$16 sps:$4 sm:$0xff]  }
  0x74   : > { %1129 = vmatprep.subr.bf16.mxu0 %v6904_v42  ;;  %1198 = vmatprep.mubr.bf16.mxu1 %v718_v36  ;;  %v406_v42 = vld [vmem:[%s8217_s25 + $0x8] sm:$0xff]  ;;  %v7024_v36 = vld [vmem:[#allocation11 + $0xc4] ss:$16 sps:$4 sm:$0xff]  }
  0x75   : > { %1169 = vmatpush1.bf16.msra.mxu1 %v6899_v45 }
  0x76   : > { %1170 = vmatprep.subr.bf16.mxu1 %v6907_v47 }
  0x77   : > { %1130 = vmatpush1.bf16.msra.mxu0 %v6902_v44 }
  0x78   : > { %1131 = vmatprep.subr.bf16.mxu0 %v6910_v46  ;;  %v407_v46 = vld [vmem:[%s8217_s25 + $0x10] sm:$0xff] }
  0x79   : > { %1171 = vmatpush1.bf16.msra.mxu1 %v6905_v49 }
  0x7a   : > { %1172 = vmatprep.subr.bf16.mxu1 %v6913_v50 }
  0x7b   : > { %1132 = vmatpush1.bf16.msra.mxu0 %v6908_v48 }
  0x7c   : > { %1133 = vmatprep.subr.bf16.mxu0 %v6916_v52 }
  0x7d   : > { %1173 = vmatpush1.bf16.msra.mxu1 %v6911_v51 }
  0x7e   : > { %1174 = vmatprep.subr.bf16.mxu1 %v6919_v53 }
  0x7f   : > { %1134 = vmatpush1.bf16.msra.mxu0 %v6914_v54 }
  0x80   : > { %1135 = vmatprep.subr.bf16.mxu0 %v6922_v56 }
  0x81   : > { %1175 = vmatpush1.bf16.msra.mxu1 %v6917_v55  ;;  %v408_v55 = vld [vmem:[%s8217_s25 + $0x18] sm:$0xff] }
  0x82   : > { %1176 = vmatprep.subr.bf16.mxu1 %v6925_v57 }
  0x83   : > { %1136 = vmatpush1.bf16.msra.mxu0 %v6920_v58 }
  0x84   : > { %1137 = vmatprep.subr.bf16.mxu0 %v6928_v60 }
  0x85   : > { %1177 = vmatpush1.bf16.msra.mxu1 %v6923_v59 }
  0x86   : > { %1178 = vmatprep.subr.bf16.mxu1 %v6931_v61 }
  0x87   : > { %1138 = vmatpush1.bf16.msra.mxu0 %v6926_v62 }
  0x88   : > { %1139 = vmatprep.subr.bf16.mxu0 %v6934_v0 }
  0x89   : > { %1179 = vmatpush1.bf16.msra.mxu1 %v6929_v63 }
  0x8a   : > { %1180 = vmatprep.subr.bf16.mxu1 %v6937_v1 }
  0x8b   : > { %1140 = vmatpush1.bf16.msra.mxu0 %v6932_v2  ;;  %v689_v2 = vld [vmem:[#allocation4] sm:$0xff] }
  0x8c   : > { %1141 = vmatprep.subr.bf16.mxu0 %v6940_v5 }
  0x8d   : > { %1181 = vmatpush1.bf16.msra.mxu1 %v6935_v4 }
  0x8e   : > { %1182 = vmatprep.subr.bf16.mxu1 %v6943_v8 }
  0x8f   : > { %1142 = vmatpush1.bf16.msra.mxu0 %v6938_v6 }
  0x90   : > { %1143 = vmatprep.subr.bf16.mxu0 %v6946_v9 }
  0x91   : > { %1183 = vmatpush1.bf16.msra.mxu1 %v6941_v7 }
  0x92   : > { %1184 = vmatprep.subr.bf16.mxu1 %v6949_v10 }
  0x93   : > { %1144 = vmatpush1.bf16.msra.mxu0 %v6944_v11 }
  0x94   : > { %1145 = vmatprep.subr.bf16.mxu0 %v6952_v13  ;;  %v6986_v13 = vld [vmem:[#allocation11] ss:$16 sps:$4 sm:$0xff]  }
  0x95   : > { %1185 = vmatpush1.bf16.msra.mxu1 %v6947_v12 }
  0x96   : > { %1186 = vmatprep.subr.bf16.mxu1 %v6955_v14  ;;  %v6989_v14 = vld [vmem:[#allocation11 + $0x8] ss:$16 sps:$4 sm:$0xff]  }
  0x97   : > { %1146 = vmatpush1.bf16.msra.mxu0 %v6950_v15 }
  0x98   : > { %1147 = vmatprep.subr.bf16.mxu0 %v6958_v17  ;;  %v6997_v17 = vld [vmem:[#allocation11 + $0x2c] ss:$16 sps:$4 sm:$0xff]  }
  0x99   : > { %1187 = vmatpush1.bf16.msra.mxu1 %v6953_v16  ;;  %v6994_v16 = vld [vmem:[#allocation11 + $0x24] ss:$16 sps:$4 sm:$0xff]  }
  0x9a   : > { %1188 = vmatprep.subr.bf16.mxu1 %v6961_v18  ;;  %v6992_v18 = vld [vmem:[#allocation11 + $0x20] ss:$16 sps:$4 sm:$0xff]  }
  0x9b   : > { %1148 = vmatpush1.bf16.msra.mxu0 %v6956_v19  ;;  %v6995_v19 = vld [vmem:[#allocation11 + $0x28] ss:$16 sps:$4 sm:$0xff]  }
  0x9c   : > { %1149 = vmatprep.subr.bf16.mxu0 %v6964_v21  ;;  %v7003_v21 = vld [vmem:[#allocation11 + $0x4c] ss:$16 sps:$4 sm:$0xff]  }
  0x9d   : > { %1189 = vmatpush1.bf16.msra.mxu1 %v6959_v20  ;;  %v7000_v20 = vld [vmem:[#allocation11 + $0x44] ss:$16 sps:$4 sm:$0xff]  }
  0x9e   : > { %1190 = vmatprep.subr.bf16.mxu1 %v6967_v22  ;;  %v6998_v22 = vld [vmem:[#allocation11 + $0x40] ss:$16 sps:$4 sm:$0xff]  }
  0x9f   : > { %1150 = vmatpush1.bf16.msra.mxu0 %v6962_v23  ;;  %v7001_v23 = vld [vmem:[#allocation11 + $0x48] ss:$16 sps:$4 sm:$0xff]  }
  0xa0   : > { %1151 = vmatprep.subr.bf16.mxu0 %v6970_v26  ;;  %v7004_v26 = vld [vmem:[#allocation11 + $0x60] ss:$16 sps:$4 sm:$0xff]  }
  0xa1   : > { %1191 = vmatpush1.bf16.msra.mxu1 %v6965_v24  ;;  %v7006_v24 = vld [vmem:[#allocation11 + $0x64] ss:$16 sps:$4 sm:$0xff]  }
  0xa2   : > { %1192 = vmatprep.subr.bf16.mxu1 %v6973_v28  ;;  %v7012_v28 = vld [vmem:[#allocation11 + $0x84] ss:$16 sps:$4 sm:$0xff]  }
  0xa3   : > { %1152 = vmatpush1.bf16.msra.mxu0 %v6968_v25  ;;  %v7009_v25 = vld [vmem:[#allocation11 + $0x6c] ss:$16 sps:$4 sm:$0xff]  }
  0xa4   : > { %1153 = vmatprep.subr.bf16.mxu0 %v6976_v29  ;;  %v7015_v29 = vld [vmem:[#allocation11 + $0x8c] ss:$16 sps:$4 sm:$0xff]  }
  0xa5   : > { %1193 = vmatpush1.bf16.msra.mxu1 %v6971_v27  ;;  %v7007_v27 = vld [vmem:[#allocation11 + $0x68] ss:$16 sps:$4 sm:$0xff]  }
  0xa6   : > { %1194 = vmatprep.subr.bf16.mxu1 %v6979_v30  ;;  %v7010_v30 = vld [vmem:[#allocation11 + $0x80] ss:$16 sps:$4 sm:$0xff]  }
  0xa7   : > { %1154 = vmatpush1.bf16.msra.mxu0 %v6974_v31  ;;  %v7013_v31 = vld [vmem:[#allocation11 + $0x88] ss:$16 sps:$4 sm:$0xff]  }
  0xa8   : > { %1155 = vmatprep.subr.bf16.mxu0 %v6982_v33  ;;  %v7021_v33 = vld [vmem:[#allocation11 + $0xac] ss:$16 sps:$4 sm:$0xff]  }
  0xa9   : > { %1195 = vmatpush1.bf16.msra.mxu1 %v6977_v32  ;;  %v7018_v32 = vld [vmem:[#allocation11 + $0xa4] ss:$16 sps:$4 sm:$0xff]  }
  0xaa   : > { %1196 = vmatprep.subr.bf16.mxu1 %v6985_v34  ;;  %v7016_v34 = vld [vmem:[#allocation11 + $0xa0] ss:$16 sps:$4 sm:$0xff]  }
  0xab   : > { %1156 = vmatpush1.bf16.msra.mxu0 %v6980_v37  ;;  %v7027_v37 = vld [vmem:[#allocation11 + $0xcc] ss:$16 sps:$4 sm:$0xff]  }
  0xac   : > { %1643 = vmatprep.subr.bf16.mxu0 %v6988_v39  ;;  %v7025_v39 = vld [vmem:[#allocation11 + $0xc8] ss:$16 sps:$4 sm:$0xff]  }
  0xad   : > { %1197 = vmatpush1.bf16.msra.mxu1 %v6983_v38  ;;  %v7022_v38 = vld [vmem:[#allocation11 + $0xc0] ss:$16 sps:$4 sm:$0xff]  }
  0xae   : > { %1684 = vmatprep.subr.bf16.mxu1 %v6991_v40  ;;  %v7030_v40 = vld [vmem:[#allocation11 + $0xe4] ss:$16 sps:$4 sm:$0xff]  }
 0x141   : > { %v637_v43 = vpop.f32.mrb[0].mxu0 }
 0x142   : > { %v685_v44 = vadd.f32 %v637_v43, %v405_v41  ;;  %v639_v45 = vpop.f32.mrb[1].mxu0  ;;  %v7033_v41 = vld [vmem:[#allocation11 + $0xec] ss:$16 sps:$4 sm:$0xff]   ;;  %v7031_v43 = vld [vmem:[#allocation11 + $0xe8] ss:$16 sps:$4 sm:$0xff]  }
 0x143   : > { %v686_v47 = vadd.f32 %v639_v45, %v406_v42  ;;  %v641_v48 = vpop.f32.mrb[2].mxu0  ;;  %v678_v52 = vpop.f32.mrb[0].mxu1  ;;  %v7028_v42 = vld [vmem:[#allocation11 + $0xe0] ss:$16 sps:$4 sm:$0xff]   ;;  %v7039_v45 = vld [vmem:[#allocation11 + $0x10c] ss:$16 sps:$4 sm:$0xff]  }
 0x144   : > { %v6109_v49 = vmul.f32 -1.442695, %v685_v44  ;;  %v642_v50 = vpop.f32.mrb[3].mxu0  ;;  %v687_v53 = vadd.f32 %v678_v52, %v407_v46  ;;  %v680_v54 = vpop.f32.mrb[1].mxu1  ;;  %v7036_v44 = vld [vmem:[#allocation11 + $0x104] ss:$16 sps:$4 sm:$0xff]  }
 0x145   : > { %v6110_v51 = vmul.f32 -1.442695, %v686_v47  ;;  %v682_v56 = vpop.f32.mrb[2].mxu1  ;;  %v688_v59 = vadd.f32 %v680_v54, %v408_v55  ;;  %v7034_v46 = vld [vmem:[#allocation11 + $0x100] ss:$16 sps:$4 sm:$0xff]  }
 0x146   : > { %7810 = vpow2.f32 %v6109_v49  ;;  %v6111_v57 = vmul.f32 -1.442695, %v687_v53  ;;  %v683_v58 = vpop.f32.mrb[3].mxu1  ;;  %v7037_v47 = vld [vmem:[#allocation11 + $0x108] ss:$16 sps:$4 sm:$0xff]  }
 0x147   : > { %7812 = vpow2.f32 %v6110_v51  ;;  %v7042_v48 = vld [vmem:[#allocation11 + $0x124] ss:$16 sps:$4 sm:$0xff]   ;;  %v7045_v49 = vld [vmem:[#allocation11 + $0x12c] ss:$16 sps:$4 sm:$0xff]   ;;  %v7040_v50 = vld [vmem:[#allocation11 + $0x120] ss:$16 sps:$4 sm:$0xff]  }
 0x148   : > { %7814 = vpow2.f32 %v6111_v57  ;;  %v7043_v51 = vld [vmem:[#allocation11 + $0x128] ss:$16 sps:$4 sm:$0xff]   ;;  %v7048_v52 = vld [vmem:[#allocation11 + $0x144] ss:$16 sps:$4 sm:$0xff]   ;;  %v7051_v53 = vld [vmem:[#allocation11 + $0x14c] ss:$16 sps:$4 sm:$0xff]  }
 0x149   : > { %7816 = vtanh.f32 %v688_v59  ;;  %v7046_v54 = vld [vmem:[#allocation11 + $0x140] ss:$16 sps:$4 sm:$0xff]   ;;  %v7049_v55 = vld [vmem:[#allocation11 + $0x148] ss:$16 sps:$4 sm:$0xff]   ;;  %v7054_v56 = vld [vmem:[#allocation11 + $0x164] ss:$16 sps:$4 sm:$0xff]  }
 0x14a   : > { %v7057_v57 = vld [vmem:[#allocation11 + $0x16c] ss:$16 sps:$4 sm:$0xff]   ;;  %v7052_v58 = vld [vmem:[#allocation11 + $0x160] ss:$16 sps:$4 sm:$0xff]   ;;  %v7055_v59 = vld [vmem:[#allocation11 + $0x168] ss:$16 sps:$4 sm:$0xff]  }
 0x150   : > { %v7811_v60 = vpop.eup %7810 }
 0x151   : > { %v7813_v61 = vpop.eup %7812  ;;  %v699_v62 = vadd.f32 1.0, %v7811_v60  ;;  %v7060_v60 = vld [vmem:[#allocation11 + $0x184] ss:$16 sps:$4 sm:$0xff]  }
 0x152   : > { %v700_v63 = vadd.f32 1.0, %v7813_v61  ;;  %v7815_v0 = vpop.eup %7814  ;;  %v7063_v61 = vld [vmem:[#allocation11 + $0x18c] ss:$16 sps:$4 sm:$0xff]  }
 0x153   : > { %7818 = vrcp.f32 %v699_v62  ;;  %v7817_v1 = vpop.eup %7816  ;;  %v701_v5 = vadd.f32 1.0, %v7815_v0  ;;  %v7058_v62 = vld [vmem:[#allocation11 + $0x180] ss:$16 sps:$4 sm:$0xff]  }
 0x154   : > { %7820 = vrcp.f32 %v700_v63  ;;  %v7061_v63 = vld [vmem:[#allocation11 + $0x188] ss:$16 sps:$4 sm:$0xff]   ;;  %v7064_v0 = vld [vmem:[#allocation11 + $0x1a0] ss:$16 sps:$4 sm:$0xff]  }
 0x155   : > { %7822 = vrcp.f32 %v701_v5  ;;  %v7072_v5 = vld [vmem:[#allocation11 + $0x1c4] ss:$16 sps:$4 sm:$0xff]  }
 0x15d   : > { %v7819_v4 = vpop.eup %7818 }
 0x15e   : > { %v7821_v6 = vpop.eup %7820  ;;  %v710_v7 = vmul.f32 %v7819_v4, %v7817_v1  ;;  %v7066_v1 = vld [vmem:[#allocation11 + $0x1a4] ss:$16 sps:$4 sm:$0xff]   ;;  %v7069_v4 = vld [vmem:[#allocation11 + $0x1ac] ss:$16 sps:$4 sm:$0xff]  }
 0x15f   : > { %v709_v8 = vmul.f32 %v7821_v6, %v689_v2  ;;  %v7823_v10 = vpop.eup %7822  ;;  %v7067_v2 = vld [vmem:[#allocation11 + $0x1a8] ss:$16 sps:$4 sm:$0xff]   ;;  %v7075_v6 = vld [vmem:[#allocation11 + $0x1cc] ss:$16 sps:$4 sm:$0xff]  }
 0x161   : > { %v711_v9 = vadd.f32 %v710_v7, %v709_v8  ;;  %v7070_v7 = vld [vmem:[#allocation11 + $0x1c0] ss:$16 sps:$4 sm:$0xff]   ;;  %v7073_v8 = vld [vmem:[#allocation11 + $0x1c8] ss:$16 sps:$4 sm:$0xff]  }
 0x163   : > { %7824 = vtanh.f32 %v711_v9  ;;  %715 = vst [vmem:[#allocation4] sm:$0xff] %v711_v9  ;;  %v7078_v9 = vld [vmem:[#allocation11 + $0x1e4] ss:$16 sps:$4 sm:$0xff]  }
 0x16d   : > { %v7825_v11 = vpop.eup %7824 }
 0x16e   : > { %v713_v12 = vmul.f32 %v7825_v11, %v7823_v10  ;;  %v1234_v10 = vld [vmem:[#allocation7] sm:$0xff]  ;;  %v7081_v11 = vld [vmem:[#allocation11 + $0x1ec] ss:$16 sps:$4 sm:$0xff]  }
 0x170   : > { %v8335_v15 = vpack.c.bf16 %v713_v12, %v713_v12  ;;  %v1236_v12 = vpack.c.bf16 %v1234_v10, %v1234_v10  ;;  %v7105_v10 = vld [vmem:[%s8804_s2 + $0x6c] ss:$16 sps:$4 sm:$0xff]  }
 0x172   : > { %1158 = vmatmul.mubr.bf16.vlgmr.msra.gmra.mrb[4].mxu0 %v8335_v15  ;;  %1199 = vmatmul.mubr.bf16.vlgmr.msra.gmra.mrb[4].mxu1 %v8335_v15 }
 0x173   : > { %1644 = vmatpush1.bf16.msra.mxu0 %v6986_v13  ;;  %1685 = vmatpush1.bf16.msra.mxu1 %v6989_v14  ;;  %v7076_v13 = vld [vmem:[#allocation11 + $0x1e0] ss:$16 sps:$4 sm:$0xff]   ;;  %v7079_v14 = vld [vmem:[#allocation11 + $0x1e8] ss:$16 sps:$4 sm:$0xff]  }
 0x174   : > { %1645 = vmatprep.subr.bf16.mxu0 %v6994_v16  ;;  %1686 = vmatprep.subr.bf16.mxu1 %v6997_v17  ;;  %v7084_v16 = vld [vmem:[%s8804_s2 + $0x4] ss:$16 sps:$4 sm:$0xff]   ;;  %v7087_v17 = vld [vmem:[%s8804_s2 + $0xc] ss:$16 sps:$4 sm:$0xff]  }
 0x175   : > { %1675 = vmatprep.mubr.bf16.mxu0 %v1236_v12  ;;  %1716 = vmatprep.mubr.bf16.mxu1 %v1236_v12  ;;  %v7103_v12 = vld [vmem:[%s8804_s2 + $0x68] ss:$16 sps:$4 sm:$0xff]  }
 0x177   : > { %1646 = vmatpush1.bf16.msra.mxu0 %v6992_v18  ;;  %1687 = vmatpush1.bf16.msra.mxu1 %v6995_v19  ;;  %v5813_v18 = vld [vmem:[%s8222_s28] sm:$0xff]  ;;  %v785_v19 = vlaneseq }
 0x178   : > { %1647 = vmatprep.subr.bf16.mxu0 %v7000_v20  ;;  %1688 = vmatprep.subr.bf16.mxu1 %v7003_v21 }
 0x179   : > { %5819 = vperm.xlu0 %6840, %v5813_v18   ;;  %v786_v20 = vshrl.u32 %v785_v19, 7  ;;  %v7114_v18 = vld [vmem:[%s8804_s2 + $0xa4] ss:$16 sps:$4 sm:$0xff]   ;;  %v7117_v19 = vld [vmem:[%s8804_s2 + $0xac] ss:$16 sps:$4 sm:$0xff]  }
 0x17b   : > { %1648 = vmatpush1.bf16.msra.mxu0 %v6998_v22  ;;  %1689 = vmatpush1.bf16.msra.mxu1 %v7001_v23  ;;  %v8346_v21 = vsub.s32 0, %v786_v20  ;;  %v783_v22 = vld [vmem:[%s8806_s4] sm:$0xf]  ;;  %v8351_v23 = vsub.s32 1, %v786_v20 }
 0x17c   : > { %1649 = vmatprep.subr.bf16.mxu0 %v7006_v24  ;;  %1690 = vmatprep.subr.bf16.mxu1 %v7009_v25 }
 0x17d   : > { %v788_v24 = vrot.slane %v783_v22, %v8346_v21  ;;  %v792_v25 = vrot.slane %v783_v22, %v8351_v23 }
 0x17f   : > { %1650 = vmatpush1.bf16.msra.mxu0 %v7004_v26  ;;  %1691 = vmatpush1.bf16.msra.mxu1 %v7007_v27 }
 0x180   : > { %1651 = vmatprep.subr.bf16.mxu0 %v7012_v28  ;;  %1692 = vmatprep.subr.bf16.mxu1 %v7015_v29  ;;  %v8355_v29 = vsub.s32 2, %v786_v20 }
 0x183   : > { %1652 = vmatpush1.bf16.msra.mxu0 %v7010_v30  ;;  %1693 = vmatpush1.bf16.msra.mxu1 %v7013_v31 }
 0x184   : > { %1653 = vmatprep.subr.bf16.mxu0 %v7018_v32  ;;  %1694 = vmatprep.subr.bf16.mxu1 %v7021_v33 }
 0x187   : > { %1654 = vmatpush1.bf16.msra.mxu0 %v7016_v34  ;;  %1695 = vmatpush1.bf16.msra.mxu1 %v7019_v35 }
 0x188   : > { %1655 = vmatprep.subr.bf16.mxu0 %v7024_v36  ;;  %1696 = vmatprep.subr.bf16.mxu1 %v7027_v37 }
 0x18b   : > { %1656 = vmatpush1.bf16.msra.mxu0 %v7022_v38  ;;  %1697 = vmatpush1.bf16.msra.mxu1 %v7025_v39  ;;  %v8357_v39 = vsub.s32 3, %v786_v20  ;;  %v7112_v20 = vld [vmem:[%s8804_s2 + $0xa0] ss:$16 sps:$4 sm:$0xff]  }
 0x18c   : > { %1657 = vmatprep.subr.bf16.mxu0 %v7030_v40  ;;  %1698 = vmatprep.subr.bf16.mxu1 %v7033_v41  ;;  %v796_v40 = vrot.slane %v783_v22, %v8355_v29 }
 0x18d   : > { %v800_v41 = vrot.slane %v783_v22, %v8357_v39  ;;  %v7115_v22 = vld [vmem:[%s8804_s2 + $0xa8] ss:$16 sps:$4 sm:$0xff]  }
 0x18f   : > { %1658 = vmatpush1.bf16.msra.mxu0 %v7028_v42  ;;  %1699 = vmatpush1.bf16.msra.mxu1 %v7031_v43 }
 0x190   : > { %1659 = vmatprep.subr.bf16.mxu0 %v7036_v44  ;;  %1700 = vmatprep.subr.bf16.mxu1 %v7039_v45 }
 0x193   : > { %1660 = vmatpush1.bf16.msra.mxu0 %v7034_v46  ;;  %1701 = vmatpush1.bf16.msra.mxu1 %v7037_v47 }
 0x194   : > { %1661 = vmatprep.subr.bf16.mxu0 %v7042_v48  ;;  %1702 = vmatprep.subr.bf16.mxu1 %v7045_v49 }
 0x197   : > { %1662 = vmatpush1.bf16.msra.mxu0 %v7040_v50  ;;  %1703 = vmatpush1.bf16.msra.mxu1 %v7043_v51 }
 0x198   : > { %1663 = vmatprep.subr.bf16.mxu0 %v7048_v52  ;;  %1704 = vmatprep.subr.bf16.mxu1 %v7051_v53  ;;  %v1207_v52 = vld [vmem:[#allocation6] sm:$0xff] }
 0x19b   : > { %1664 = vmatpush1.bf16.msra.mxu0 %v7046_v54  ;;  %1705 = vmatpush1.bf16.msra.mxu1 %v7049_v55 }
 0x19c   : > { %1665 = vmatprep.subr.bf16.mxu0 %v7054_v56  ;;  %1706 = vmatprep.subr.bf16.mxu1 %v7057_v57 }
 0x19f   : > { %1666 = vmatpush1.bf16.msra.mxu0 %v7052_v58  ;;  %1707 = vmatpush1.bf16.msra.mxu1 %v7055_v59 }
 0x1a0   : > { %1667 = vmatprep.subr.bf16.mxu0 %v7060_v60  ;;  %1708 = vmatprep.subr.bf16.mxu1 %v7063_v61  ;;  %v7082_v61 = vld [vmem:[%s8804_s2] ss:$16 sps:$4 sm:$0xff]  }
 0x1a3   : > { %1668 = vmatpush1.bf16.msra.mxu0 %v7058_v62  ;;  %1709 = vmatpush1.bf16.msra.mxu1 %v7061_v63  ;;  %v7085_v62 = vld [vmem:[%s8804_s2 + $0x8] ss:$16 sps:$4 sm:$0xff]  }
 0x1a4   : > { %1669 = vmatprep.subr.bf16.mxu0 %v7066_v1  ;;  %1710 = vmatprep.subr.bf16.mxu1 %v7069_v4  ;;  %v7093_v1 = vld [vmem:[%s8804_s2 + $0x2c] ss:$16 sps:$4 sm:$0xff]   ;;  %v7091_v4 = vld [vmem:[%s8804_s2 + $0x28] ss:$16 sps:$4 sm:$0xff]  }
 0x1a7   : > { %1670 = vmatpush1.bf16.msra.mxu0 %v7064_v0  ;;  %1711 = vmatpush1.bf16.msra.mxu1 %v7067_v2  ;;  %v7090_v0 = vld [vmem:[%s8804_s2 + $0x24] ss:$16 sps:$4 sm:$0xff]   ;;  %v7088_v2 = vld [vmem:[%s8804_s2 + $0x20] ss:$16 sps:$4 sm:$0xff]  }
 0x1a8   : > { %1671 = vmatprep.subr.bf16.mxu0 %v7072_v5  ;;  %1712 = vmatprep.subr.bf16.mxu1 %v7075_v6  ;;  %v7096_v5 = vld [vmem:[%s8804_s2 + $0x44] ss:$16 sps:$4 sm:$0xff]   ;;  %v7099_v6 = vld [vmem:[%s8804_s2 + $0x4c] ss:$16 sps:$4 sm:$0xff]  }
 0x1ab   : > { %1672 = vmatpush1.bf16.msra.mxu0 %v7070_v7  ;;  %1713 = vmatpush1.bf16.msra.mxu1 %v7073_v8  ;;  %v7094_v7 = vld [vmem:[%s8804_s2 + $0x40] ss:$16 sps:$4 sm:$0xff]   ;;  %v7097_v8 = vld [vmem:[%s8804_s2 + $0x48] ss:$16 sps:$4 sm:$0xff]  }
 0x1ac   : > { %1673 = vmatprep.subr.bf16.mxu0 %v7078_v9  ;;  %1714 = vmatprep.subr.bf16.mxu1 %v7081_v11  ;;  %v7102_v9 = vld [vmem:[%s8804_s2 + $0x64] ss:$16 sps:$4 sm:$0xff]   ;;  %v7100_v11 = vld [vmem:[%s8804_s2 + $0x60] ss:$16 sps:$4 sm:$0xff]  }
 0x1af   : > { %1674 = vmatpush1.bf16.msra.mxu0 %v7076_v13  ;;  %1715 = vmatpush1.bf16.msra.mxu1 %v7079_v14  ;;  %v7108_v13 = vld [vmem:[%s8804_s2 + $0x84] ss:$16 sps:$4 sm:$0xff]   ;;  %v7111_v14 = vld [vmem:[%s8804_s2 + $0x8c] ss:$16 sps:$4 sm:$0xff]  }
 0x1b0   : > { %1954 = vmatprep.subr.bf16.mxu0 %v7084_v16  ;;  %1995 = vmatprep.subr.bf16.mxu1 %v7087_v17  ;;  %v7106_v16 = vld [vmem:[%s8804_s2 + $0x80] ss:$16 sps:$4 sm:$0xff]   ;;  %v7109_v17 = vld [vmem:[%s8804_s2 + $0x88] ss:$16 sps:$4 sm:$0xff]  }
 0x245   : > { %v1159_v26 = vpop.f32.mrb[4].mxu0  ;;  %v1200_v27 = vpop.f32.mrb[4].mxu1 }
 0x246   : > { %v1160_v28 = vadd.f32 %v1159_v26, %v788_v24  ;;  %v1161_v30 = vpop.f32.mrb[5].mxu0  ;;  %v1202_v31 = vpop.f32.mrb[5].mxu1  ;;  %v1201_v42 = vadd.f32 %v1200_v27, %v796_v40  ;;  %v7120_v24 = vld [vmem:[%s8804_s2 + $0xc4] ss:$16 sps:$4 sm:$0xff]   ;;  %v7118_v26 = vld [vmem:[%s8804_s2 + $0xc0] ss:$16 sps:$4 sm:$0xff]  }
 0x247   : > { %v1162_v32 = vadd.f32 %v1161_v30, %v792_v25  ;;  %v1163_v33 = vpop.f32.mrb[6].mxu0  ;;  %v1204_v34 = vpop.f32.mrb[6].mxu1  ;;  %v1203_v43 = vadd.f32 %v1202_v31, %v800_v41  ;;  %v7123_v25 = vld [vmem:[%s8804_s2 + $0xcc] ss:$16 sps:$4 sm:$0xff]   ;;  %v7121_v27 = vld [vmem:[%s8804_s2 + $0xc8] ss:$16 sps:$4 sm:$0xff]  }
 0x248   : > { %v6176_v35 = vmul.f32 -1.442695, %v1160_v28  ;;  %v1164_v36 = vpop.f32.mrb[7].mxu0  ;;  %v1205_v37 = vpop.f32.mrb[7].mxu1  ;;  %v6178_v44 = vmul.f32 -1.442695, %v1201_v42 }
 0x249   : > { %v6177_v38 = vmul.f32 -1.442695, %v1162_v32  ;;  %v7126_v28 = vld [vmem:[%s8804_s2 + $0xe4] ss:$16 sps:$4 sm:$0xff]   ;;  %v7129_v30 = vld [vmem:[%s8804_s2 + $0xec] ss:$16 sps:$4 sm:$0xff]  }
 0x24a   : > { %7826 = vpow2.f32 %v6176_v35  ;;  %v7124_v31 = vld [vmem:[%s8804_s2 + $0xe0] ss:$16 sps:$4 sm:$0xff]   ;;  %v7127_v32 = vld [vmem:[%s8804_s2 + $0xe8] ss:$16 sps:$4 sm:$0xff]   ;;  %v7132_v33 = vld [vmem:[#allocation9 + $0x4] ss:$16 sps:$4 sm:$0xff]  }
 0x24b   : > { %7828 = vpow2.f32 %v6177_v38  ;;  %v7135_v34 = vld [vmem:[#allocation9 + $0xc] ss:$16 sps:$4 sm:$0xff]   ;;  %v7130_v35 = vld [vmem:[#allocation9] ss:$16 sps:$4 sm:$0xff]   ;;  %v7133_v36 = vld [vmem:[#allocation9 + $0x8] ss:$16 sps:$4 sm:$0xff]  }
 0x24c   : > { %7830 = vtanh.f32 %v1203_v43  ;;  %v7138_v37 = vld [vmem:[#allocation9 + $0x24] ss:$16 sps:$4 sm:$0xff]   ;;  %v7141_v38 = vld [vmem:[#allocation9 + $0x2c] ss:$16 sps:$4 sm:$0xff]   ;;  %v7136_v40 = vld [vmem:[#allocation9 + $0x20] ss:$16 sps:$4 sm:$0xff]  }
 0x24d   : > { %7832 = vpow2.f32 %v6178_v44  ;;  %v7139_v41 = vld [vmem:[#allocation9 + $0x28] ss:$16 sps:$4 sm:$0xff]   ;;  %v7147_v42 = vld [vmem:[#allocation9 + $0x4c] ss:$16 sps:$4 sm:$0xff]   ;;  %v7142_v43 = vld [vmem:[#allocation9 + $0x40] ss:$16 sps:$4 sm:$0xff]  }
 0x24e   : > { %v7145_v44 = vld [vmem:[#allocation9 + $0x48] ss:$16 sps:$4 sm:$0xff]  }
 0x254   : > { %v7827_v45 = vpop.eup %7826 }
 0x255   : > { %v1217_v46 = vadd.f32 1.0, %v7827_v45  ;;  %v7829_v47 = vpop.eup %7828  ;;  %v7150_v45 = vld [vmem:[#allocation9 + $0x64] ss:$16 sps:$4 sm:$0xff]  }
 0x256   : > { %v1218_v48 = vadd.f32 1.0, %v7829_v47  ;;  %v7831_v49 = vpop.eup %7830  ;;  %v7148_v47 = vld [vmem:[#allocation9 + $0x60] ss:$16 sps:$4 sm:$0xff]  }
 0x257   : > { %7834 = vrcp.f32 %v1217_v46  ;;  %v7833_v50 = vpop.eup %7832  ;;  %v7153_v46 = vld [vmem:[#allocation9 + $0x6c] ss:$16 sps:$4 sm:$0xff]  }
 0x258   : > { %7836 = vrcp.f32 %v1218_v48  ;;  %v1219_v55 = vadd.f32 1.0, %v7833_v50  ;;  %v7151_v48 = vld [vmem:[#allocation9 + $0x68] ss:$16 sps:$4 sm:$0xff]   ;;  %v7154_v50 = vld [vmem:[#allocation9 + $0x80] ss:$16 sps:$4 sm:$0xff]  }
 0x25a   : > { %7838 = vrcp.f32 %v1219_v55  ;;  %v7160_v55 = vld [vmem:[#allocation9 + $0xa0] ss:$16 sps:$4 sm:$0xff]  }
 0x261   : > { %v7835_v51 = vpop.eup %7834 }
 0x262   : > { %v1228_v53 = vmul.f32 %v7835_v51, %v7831_v49  ;;  %v7837_v54 = vpop.eup %7836  ;;  %v7156_v49 = vld [vmem:[#allocation9 + $0x84] ss:$16 sps:$4 sm:$0xff]   ;;  %v7157_v51 = vld [vmem:[#allocation9 + $0x88] ss:$16 sps:$4 sm:$0xff]  }
 0x263   : > { %v1227_v56 = vmul.f32 %v7837_v54, %v1207_v52  ;;  %v7159_v52 = vld [vmem:[#allocation9 + $0x8c] ss:$16 sps:$4 sm:$0xff]  }
 0x264   : > { %v7839_v58 = vpop.eup %7838  ;;  %v7165_v54 = vld [vmem:[#allocation9 + $0xac] ss:$16 sps:$4 sm:$0xff]  }
 0x265   : > { %v1229_v57 = vadd.f32 %v1228_v53, %v1227_v56  ;;  %v7162_v53 = vld [vmem:[#allocation9 + $0xa4] ss:$16 sps:$4 sm:$0xff]   ;;  %v7163_v56 = vld [vmem:[#allocation9 + $0xa8] ss:$16 sps:$4 sm:$0xff]  }
 0x267   : > { %7840 = vtanh.f32 %v1229_v57  ;;  %1233 = vst [vmem:[#allocation6] sm:$0xff] %v1229_v57  ;;  %v7168_v57 = vld [vmem:[#allocation9 + $0xc4] ss:$16 sps:$4 sm:$0xff]  }
 0x271   : > { %v7841_v59 = vpop.eup %7840 }
 0x272   : > { %v1231_v60 = vmul.f32 %v7841_v59, %v7839_v58  ;;  %v7171_v58 = vld [vmem:[#allocation9 + $0xcc] ss:$16 sps:$4 sm:$0xff]   ;;  %v7166_v59 = vld [vmem:[#allocation9 + $0xc0] ss:$16 sps:$4 sm:$0xff]  }
 0x274   : > { %v8367_v63 = vpack.c.bf16 %v1231_v60, %v1231_v60  ;;  %v7169_v60 = vld [vmem:[#allocation9 + $0xc8] ss:$16 sps:$4 sm:$0xff]  }
 0x276   : > { %1676 = vmatmul.mubr.bf16.vlgmr.msra.gmra.mrb[8].mxu0 %v8367_v63  ;;  %1717 = vmatmul.mubr.bf16.vlgmr.msra.gmra.mrb[8].mxu1 %v8367_v63 }
 0x277   : > { %1955 = vmatpush1.bf16.msra.mxu0 %v7082_v61  ;;  %1996 = vmatpush1.bf16.msra.mxu1 %v7085_v62  ;;  %v7174_v61 = vld [vmem:[#allocation9 + $0xe4] ss:$16 sps:$4 sm:$0xff]   ;;  %v7177_v62 = vld [vmem:[#allocation9 + $0xec] ss:$16 sps:$4 sm:$0xff]  }
 0x278   : > { %1956 = vmatprep.subr.bf16.mxu0 %v7090_v0  ;;  %1997 = vmatprep.subr.bf16.mxu1 %v7093_v1  ;;  %v7175_v0 = vld [vmem:[#allocation9 + $0xe8] ss:$16 sps:$4 sm:$0xff]   ;;  %v7180_v1 = vld [vmem:[#allocation9 + $0x104] ss:$16 sps:$4 sm:$0xff]  }
 0x279   : > { %1986 = vmatprep.mubr.bf16.mxu0 %v8079_v3  ;;  %2027 = vmatprep.mubr.bf16.mxu1 %v8079_v3 }
 0x27b   : > { %1957 = vmatpush1.bf16.msra.mxu0 %v7088_v2  ;;  %1998 = vmatpush1.bf16.msra.mxu1 %v7091_v4  ;;  %v7183_v2 = vld [vmem:[#allocation9 + $0x10c] ss:$16 sps:$4 sm:$0xff]   ;;  %v7178_v4 = vld [vmem:[#allocation9 + $0x100] ss:$16 sps:$4 sm:$0xff]  }
 0x27c   : > { %1958 = vmatprep.subr.bf16.mxu0 %v7096_v5  ;;  %1999 = vmatprep.subr.bf16.mxu1 %v7099_v6  ;;  %v7181_v5 = vld [vmem:[#allocation9 + $0x108] ss:$16 sps:$4 sm:$0xff]   ;;  %v7186_v6 = vld [vmem:[#allocation9 + $0x124] ss:$16 sps:$4 sm:$0xff]  }
 0x27f   : > { %1959 = vmatpush1.bf16.msra.mxu0 %v7094_v7  ;;  %2000 = vmatpush1.bf16.msra.mxu1 %v7097_v8  ;;  %v7189_v7 = vld [vmem:[#allocation9 + $0x12c] ss:$16 sps:$4 sm:$0xff]   ;;  %v7184_v8 = vld [vmem:[#allocation9 + $0x120] ss:$16 sps:$4 sm:$0xff]  }
 0x280   : > { %1960 = vmatprep.subr.bf16.mxu0 %v7102_v9  ;;  %2001 = vmatprep.subr.bf16.mxu1 %v7105_v10  ;;  %v7187_v9 = vld [vmem:[#allocation9 + $0x128] ss:$16 sps:$4 sm:$0xff]   ;;  %v7192_v10 = vld [vmem:[#allocation9 + $0x144] ss:$16 sps:$4 sm:$0xff]  }
 0x283   : > { %1961 = vmatpush1.bf16.msra.mxu0 %v7100_v11  ;;  %2002 = vmatpush1.bf16.msra.mxu1 %v7103_v12  ;;  %v7195_v11 = vld [vmem:[#allocation9 + $0x14c] ss:$16 sps:$4 sm:$0xff]   ;;  %v7190_v12 = vld [vmem:[#allocation9 + $0x140] ss:$16 sps:$4 sm:$0xff]  }
 0x284   : > { %1962 = vmatprep.subr.bf16.mxu0 %v7108_v13  ;;  %2003 = vmatprep.subr.bf16.mxu1 %v7111_v14  ;;  %v7193_v13 = vld [vmem:[#allocation9 + $0x148] ss:$16 sps:$4 sm:$0xff]   ;;  %v7198_v14 = vld [vmem:[#allocation9 + $0x164] ss:$16 sps:$4 sm:$0xff]  }
 0x287   : > { %1963 = vmatpush1.bf16.msra.mxu0 %v7106_v16  ;;  %2004 = vmatpush1.bf16.msra.mxu1 %v7109_v17  ;;  %v7201_v16 = vld [vmem:[#allocation9 + $0x16c] ss:$16 sps:$4 sm:$0xff]   ;;  %v7196_v17 = vld [vmem:[#allocation9 + $0x160] ss:$16 sps:$4 sm:$0xff]  }
 0x288   : > { %1964 = vmatprep.subr.bf16.mxu0 %v7114_v18  ;;  %2005 = vmatprep.subr.bf16.mxu1 %v7117_v19  ;;  %v7199_v18 = vld [vmem:[#allocation9 + $0x168] ss:$16 sps:$4 sm:$0xff]   ;;  %v7204_v19 = vld [vmem:[#allocation9 + $0x184] ss:$16 sps:$4 sm:$0xff]  }
 0x28b   : > { %1965 = vmatpush1.bf16.msra.mxu0 %v7112_v20  ;;  %2006 = vmatpush1.bf16.msra.mxu1 %v7115_v22  ;;  %v7207_v20 = vld [vmem:[#allocation9 + $0x18c] ss:$16 sps:$4 sm:$0xff]   ;;  %v7202_v22 = vld [vmem:[#allocation9 + $0x180] ss:$16 sps:$4 sm:$0xff]  }
 0x28c   : > { %1966 = vmatprep.subr.bf16.mxu0 %v7120_v24  ;;  %2007 = vmatprep.subr.bf16.mxu1 %v7123_v25  ;;  %v7205_v24 = vld [vmem:[#allocation9 + $0x188] ss:$16 sps:$4 sm:$0xff]   ;;  %v7208_v25 = vld [vmem:[#allocation9 + $0x1a0] ss:$16 sps:$4 sm:$0xff]  }
 0x28f   : > { %1967 = vmatpush1.bf16.msra.mxu0 %v7118_v26  ;;  %2008 = vmatpush1.bf16.msra.mxu1 %v7121_v27  ;;  %v7210_v26 = vld [vmem:[#allocation9 + $0x1a4] ss:$16 sps:$4 sm:$0xff]   ;;  %v7211_v27 = vld [vmem:[#allocation9 + $0x1a8] ss:$16 sps:$4 sm:$0xff]  }
 0x290   : > { %1968 = vmatprep.subr.bf16.mxu0 %v7126_v28  ;;  %2009 = vmatprep.subr.bf16.mxu1 %v7129_v30  ;;  %v7213_v28 = vld [vmem:[#allocation9 + $0x1ac] ss:$16 sps:$4 sm:$0xff]   ;;  %v7216_v30 = vld [vmem:[#allocation9 + $0x1c4] ss:$16 sps:$4 sm:$0xff]  }
 0x293   : > { %1969 = vmatpush1.bf16.msra.mxu0 %v7124_v31  ;;  %2010 = vmatpush1.bf16.msra.mxu1 %v7127_v32  ;;  %v7219_v31 = vld [vmem:[#allocation9 + $0x1cc] ss:$16 sps:$4 sm:$0xff]   ;;  %v7214_v32 = vld [vmem:[#allocation9 + $0x1c0] ss:$16 sps:$4 sm:$0xff]  }
 0x294   : > { %2476 = vmatprep.subr.bf16.mxu0 %v7132_v33  ;;  %2517 = vmatprep.subr.bf16.mxu1 %v7135_v34  ;;  %v7217_v33 = vld [vmem:[#allocation9 + $0x1c8] ss:$16 sps:$4 sm:$0xff]   ;;  %v7222_v34 = vld [vmem:[#allocation9 + $0x1e4] ss:$16 sps:$4 sm:$0xff]  }
 0x296   : > { %1987 = vmatmul.mubr.bf16.vlgmr.msra.gmra.mrb[12].mxu0 %v8335_v15  ;;  %2028 = vmatmul.mubr.bf16.vlgmr.msra.gmra.mrb[12].mxu1 %v8335_v15  ;;  %v7144_v15 = vld [vmem:[#allocation9 + $0x44] ss:$16 sps:$4 sm:$0xff]  }
 0x297   : > { %2508 = vmatprep.mubr.bf16.mxu0 %v8367_v63  ;;  %2549 = vmatprep.mubr.bf16.mxu1 %v8367_v63  ;;  %v7172_v63 = vld [vmem:[#allocation9 + $0xe0] ss:$16 sps:$4 sm:$0xff]  }
 0x298   : > { %2477 = vmatpush1.bf16.msra.mxu0 %v7130_v35  ;;  %2518 = vmatpush1.bf16.msra.mxu1 %v7133_v36  ;;  %v7225_v35 = vld [vmem:[#allocation9 + $0x1ec] ss:$16 sps:$4 sm:$0xff]   ;;  %v7220_v36 = vld [vmem:[#allocation9 + $0x1e0] ss:$16 sps:$4 sm:$0xff]  }
 0x299   : > { %2478 = vmatprep.subr.bf16.mxu0 %v7138_v37  ;;  %2519 = vmatprep.subr.bf16.mxu1 %v7141_v38  ;;  %v7223_v37 = vld [vmem:[#allocation9 + $0x1e8] ss:$16 sps:$4 sm:$0xff]   ;;  %v7228_v38 = vld [vmem:[#allocation11 + $0x4] ss:$16 sps:$4 sm:$0xff]  }
 0x29c   : > { %2479 = vmatpush1.bf16.msra.mxu0 %v7136_v40  ;;  %2520 = vmatpush1.bf16.msra.mxu1 %v7139_v41  ;;  %v7231_v40 = vld [vmem:[#allocation11 + $0xc] ss:$16 sps:$4 sm:$0xff]   ;;  %v1301_v41 = vld [vmem:[%s8808_s6] sm:$0xf] }
 0x29d   : > { %2480 = vmatprep.subr.bf16.mxu0 %v7144_v15  ;;  %2521 = vmatprep.subr.bf16.mxu1 %v7147_v42  ;;  %v1306_v15 = vrot.slane %v1301_v41, %v8346_v21  ;;  %v1310_v42 = vrot.slane %v1301_v41, %v8351_v23 }
 0x2a0   : > { %2481 = vmatpush1.bf16.msra.mxu0 %v7142_v43  ;;  %2522 = vmatpush1.bf16.msra.mxu1 %v7145_v44 }
 0x2a1   : > { %2482 = vmatprep.subr.bf16.mxu0 %v7150_v45  ;;  %2523 = vmatprep.subr.bf16.mxu1 %v7153_v46 }
 0x2a4   : > { %2483 = vmatpush1.bf16.msra.mxu0 %v7148_v47  ;;  %2524 = vmatpush1.bf16.msra.mxu1 %v7151_v48 }
 0x2a5   : > { %2484 = vmatprep.subr.bf16.mxu0 %v7156_v49  ;;  %2525 = vmatprep.subr.bf16.mxu1 %v7159_v52 }
 0x2a8   : > { %2485 = vmatpush1.bf16.msra.mxu0 %v7154_v50  ;;  %2526 = vmatpush1.bf16.msra.mxu1 %v7157_v51 }
 0x2a9   : > { %2486 = vmatprep.subr.bf16.mxu0 %v7162_v53  ;;  %2527 = vmatprep.subr.bf16.mxu1 %v7165_v54 }
 0x2ac   : > { %2487 = vmatpush1.bf16.msra.mxu0 %v7160_v55  ;;  %2528 = vmatpush1.bf16.msra.mxu1 %v7163_v56  ;;  %v1314_v55 = vrot.slane %v1301_v41, %v8355_v29  ;;  %v1318_v56 = vrot.slane %v1301_v41, %v8357_v39 }
 0x2ad   : > { %2488 = vmatprep.subr.bf16.mxu0 %v7168_v57  ;;  %2529 = vmatprep.subr.bf16.mxu1 %v7171_v58 }
 0x2b0   : > { %2489 = vmatpush1.bf16.msra.mxu0 %v7166_v59  ;;  %2530 = vmatpush1.bf16.msra.mxu1 %v7169_v60 }
 0x2b1   : > { %2490 = vmatprep.subr.bf16.mxu0 %v7174_v61  ;;  %2531 = vmatprep.subr.bf16.mxu1 %v7177_v62 }
 0x2b4   : > { %2491 = vmatpush1.bf16.msra.mxu0 %v7172_v63  ;;  %2532 = vmatpush1.bf16.msra.mxu1 %v7175_v0 }
 0x2b5   : > { %2492 = vmatprep.subr.bf16.mxu0 %v7180_v1  ;;  %2533 = vmatprep.subr.bf16.mxu1 %v7183_v2 }
 0x2b8   : > { %2493 = vmatpush1.bf16.msra.mxu0 %v7178_v4  ;;  %2534 = vmatpush1.bf16.msra.mxu1 %v7181_v5  ;;  %v1725_v4 = vld [vmem:[#allocation8] sm:$0xff] }
 0x2b9   : > { %2494 = vmatprep.subr.bf16.mxu0 %v7186_v6  ;;  %2535 = vmatprep.subr.bf16.mxu1 %v7189_v7 }
 0x2bc   : > { %2495 = vmatpush1.bf16.msra.mxu0 %v7184_v8  ;;  %2536 = vmatpush1.bf16.msra.mxu1 %v7187_v9  ;;  %v6246_v8 = vld [vmem:[%s8217_s25 + $0x20] sm:$0xff] }
 0x2bd   : > { %2496 = vmatprep.subr.bf16.mxu0 %v7192_v10  ;;  %2537 = vmatprep.subr.bf16.mxu1 %v7195_v11  ;;  %v6247_v10 = vld [vmem:[%s8217_s25 + $0x28] sm:$0xff] }
 0x2c0   : > { %2497 = vmatpush1.bf16.msra.mxu0 %v7190_v12  ;;  %2538 = vmatpush1.bf16.msra.mxu1 %v7193_v13 }
 0x2c1   : > { %2498 = vmatprep.subr.bf16.mxu0 %v7198_v14  ;;  %2539 = vmatprep.subr.bf16.mxu1 %v7201_v16 }
 0x2c4   : > { %2499 = vmatpush1.bf16.msra.mxu0 %v7196_v17  ;;  %2540 = vmatpush1.bf16.msra.mxu1 %v7199_v18 }
 0x2c5   : > { %2500 = vmatprep.subr.bf16.mxu0 %v7204_v19  ;;  %2541 = vmatprep.subr.bf16.mxu1 %v7207_v20 }
 0x2c8   : > { %2501 = vmatpush1.bf16.msra.mxu0 %v7202_v22  ;;  %2542 = vmatpush1.bf16.msra.mxu1 %v7205_v24 }
 0x2c9   : > { %2502 = vmatprep.subr.bf16.mxu0 %v7210_v26  ;;  %2543 = vmatprep.subr.bf16.mxu1 %v7213_v28 }
 0x2cc   : > { %2503 = vmatpush1.bf16.msra.mxu0 %v7208_v25  ;;  %2544 = vmatpush1.bf16.msra.mxu1 %v7211_v27  ;;  %v6248_v27 = vld [vmem:[%s8217_s25 + $0x30] sm:$0xff] }
 0x2cd   : > { %2504 = vmatprep.subr.bf16.mxu0 %v7216_v30  ;;  %2545 = vmatprep.subr.bf16.mxu1 %v7219_v31  ;;  %v6249_v30 = vld [vmem:[%s8217_s25 + $0x38] sm:$0xff] }
 0x2d0   : > { %2505 = vmatpush1.bf16.msra.mxu0 %v7214_v32  ;;  %2546 = vmatpush1.bf16.msra.mxu1 %v7217_v33 }
 0x2d1   : > { %2506 = vmatprep.subr.bf16.mxu0 %v7222_v34  ;;  %2547 = vmatprep.subr.bf16.mxu1 %v7225_v35 }
 0x2d4   : > { %2507 = vmatpush1.bf16.msra.mxu0 %v7220_v36  ;;  %2548 = vmatpush1.bf16.msra.mxu1 %v7223_v37 }
 0x2d5   : > { %2994 = vmatprep.subr.bf16.mxu0 %v7228_v38  ;;  %3035 = vmatprep.subr.bf16.mxu1 %v7231_v40 }
 0x349   : > { %v1677_v43 = vpop.f32.mrb[8].mxu0  ;;  %v1718_v44 = vpop.f32.mrb[8].mxu1 }
 0x34a   : > { %v1678_v45 = vadd.f32 %v1677_v43, %v1306_v15  ;;  %v1679_v46 = vpop.f32.mrb[9].mxu0  ;;  %v1720_v47 = vpop.f32.mrb[9].mxu1  ;;  %v1719_v57 = vadd.f32 %v1718_v44, %v1314_v55 }
 0x34b   : > { %v1680_v48 = vadd.f32 %v1679_v46, %v1310_v42  ;;  %v1681_v49 = vpop.f32.mrb[10].mxu0  ;;  %v1722_v50 = vpop.f32.mrb[10].mxu1  ;;  %v1721_v58 = vadd.f32 %v1720_v47, %v1318_v56  ;;  %v2040_v46 = vld [vmem:[#allocation4] sm:$0xff]  ;;  %v7234_v56 = vld [vmem:[#allocation11 + $0x24] ss:$16 sps:$4 sm:$0xff]  }
 0x34c   : > { %v6243_v51 = vmul.f32 -1.442695, %v1678_v45  ;;  %v1682_v52 = vpop.f32.mrb[11].mxu0  ;;  %v1723_v53 = vpop.f32.mrb[11].mxu1  ;;  %v6245_v59 = vmul.f32 -1.442695, %v1719_v57 }
 0x34d   : > { %v6244_v54 = vmul.f32 -1.442695, %v1680_v48  ;;  %v7226_v53 = vld [vmem:[#allocation11] ss:$16 sps:$4 sm:$0xff]   ;;  %v7237_v57 = vld [vmem:[#allocation11 + $0x2c] ss:$16 sps:$4 sm:$0xff]  }
 0x34e   : > { %7842 = vpow2.f32 %v6243_v51 }
 0x34f   : > { %7844 = vpow2.f32 %v6244_v54  ;;  %v7229_v54 = vld [vmem:[#allocation11 + $0x8] ss:$16 sps:$4 sm:$0xff]  }
 0x350   : > { %7846 = vtanh.f32 %v1721_v58  ;;  %v7232_v58 = vld [vmem:[#allocation11 + $0x20] ss:$16 sps:$4 sm:$0xff]  }
 0x351   : > { %7848 = vpow2.f32 %v6245_v59  ;;  %v7235_v59 = vld [vmem:[#allocation11 + $0x28] ss:$16 sps:$4 sm:$0xff]  }
 0x358   : > { %v7843_v60 = vpop.eup %7842 }
 0x359   : > { %v1735_v61 = vadd.f32 1.0, %v7843_v60  ;;  %v7845_v62 = vpop.eup %7844  ;;  %v7240_v60 = vld [vmem:[#allocation11 + $0x44] ss:$16 sps:$4 sm:$0xff]  }
 0x35a   : > { %v1736_v63 = vadd.f32 1.0, %v7845_v62  ;;  %v7847_v0 = vpop.eup %7846  ;;  %v7238_v62 = vld [vmem:[#allocation11 + $0x40] ss:$16 sps:$4 sm:$0xff]  }
 0x35b   : > { %7850 = vrcp.f32 %v1735_v61  ;;  %v7849_v1 = vpop.eup %7848  ;;  %v7243_v61 = vld [vmem:[#allocation11 + $0x4c] ss:$16 sps:$4 sm:$0xff]  }
 0x35c   : > { %7852 = vrcp.f32 %v1736_v63  ;;  %v1737_v7 = vadd.f32 1.0, %v7849_v1  ;;  %v7241_v63 = vld [vmem:[#allocation11 + $0x48] ss:$16 sps:$4 sm:$0xff]   ;;  %v7249_v1 = vld [vmem:[#allocation11 + $0x6c] ss:$16 sps:$4 sm:$0xff]  }
 0x35e   : > { %7854 = vrcp.f32 %v1737_v7  ;;  %v7250_v7 = vld [vmem:[#allocation11 + $0x80] ss:$16 sps:$4 sm:$0xff]  }
 0x365   : > { %v7851_v2 = vpop.eup %7850 }
 0x366   : > { %v1746_v5 = vmul.f32 %v7851_v2, %v7847_v0  ;;  %v7853_v6 = vpop.eup %7852  ;;  %v7246_v0 = vld [vmem:[#allocation11 + $0x64] ss:$16 sps:$4 sm:$0xff]   ;;  %v7244_v2 = vld [vmem:[#allocation11 + $0x60] ss:$16 sps:$4 sm:$0xff]  }
 0x367   : > { %v1745_v9 = vmul.f32 %v7853_v6, %v1725_v4  ;;  %v7247_v4 = vld [vmem:[#allocation11 + $0x68] ss:$16 sps:$4 sm:$0xff]   ;;  %v7255_v6 = vld [vmem:[#allocation11 + $0x8c] ss:$16 sps:$4 sm:$0xff]  }
 0x368   : > { %v7855_v31 = vpop.eup %7854 }
 0x369   : > { %v1988_v11 = vpop.f32.mrb[12].mxu0  ;;  %v2029_v12 = vpop.f32.mrb[12].mxu1  ;;  %v1747_v13 = vadd.f32 %v1746_v5, %v1745_v9  ;;  %v7252_v5 = vld [vmem:[#allocation11 + $0x84] ss:$16 sps:$4 sm:$0xff]  }
 0x36a   : > { %v2036_v14 = vadd.f32 %v6246_v8, %v1988_v11  ;;  %v1990_v16 = vpop.f32.mrb[13].mxu0  ;;  %v2031_v17 = vpop.f32.mrb[13].mxu1  ;;  %v2038_v28 = vadd.f32 %v6248_v27, %v2029_v12  ;;  %v7253_v8 = vld [vmem:[#allocation11 + $0x88] ss:$16 sps:$4 sm:$0xff]   ;;  %v7258_v9 = vld [vmem:[#allocation11 + $0xa4] ss:$16 sps:$4 sm:$0xff]  }
 0x36b   : > { %v2037_v18 = vadd.f32 %v6247_v10, %v1990_v16  ;;  %v1992_v19 = vpop.f32.mrb[14].mxu0  ;;  %v2033_v20 = vpop.f32.mrb[14].mxu1  ;;  %1751 = vst [vmem:[#allocation8] sm:$0xff] %v1747_v13  ;;  %7856 = vtanh.f32 %v1747_v13  ;;  %v2039_v32 = vadd.f32 %v6249_v30, %v2031_v17  ;;  %v7261_v10 = vld [vmem:[#allocation11 + $0xac] ss:$16 sps:$4 sm:$0xff]  }
 0x36c   : > { %v6282_v22 = vmul.f32 -1.442695, %v2036_v14  ;;  %v1993_v24 = vpop.f32.mrb[15].mxu0  ;;  %v2034_v25 = vpop.f32.mrb[15].mxu1  ;;  %v6284_v34 = vmul.f32 -1.442695, %v2038_v28 }
 0x36d   : > { %v6283_v26 = vmul.f32 -1.442695, %v2037_v18  ;;  %v7256_v11 = vld [vmem:[#allocation11 + $0xa0] ss:$16 sps:$4 sm:$0xff]   ;;  %v7259_v12 = vld [vmem:[#allocation11 + $0xa8] ss:$16 sps:$4 sm:$0xff]  }
 0x36e   : > { %7858 = vpow2.f32 %v6282_v22  ;;  %v7264_v13 = vld [vmem:[#allocation11 + $0xc4] ss:$16 sps:$4 sm:$0xff]   ;;  %v7267_v14 = vld [vmem:[#allocation11 + $0xcc] ss:$16 sps:$4 sm:$0xff]   ;;  %v7262_v16 = vld [vmem:[#allocation11 + $0xc0] ss:$16 sps:$4 sm:$0xff]  }
 0x36f   : > { %7860 = vpow2.f32 %v6283_v26  ;;  %v7265_v17 = vld [vmem:[#allocation11 + $0xc8] ss:$16 sps:$4 sm:$0xff]   ;;  %v7270_v18 = vld [vmem:[#allocation11 + $0xe4] ss:$16 sps:$4 sm:$0xff]   ;;  %v7273_v19 = vld [vmem:[#allocation11 + $0xec] ss:$16 sps:$4 sm:$0xff]  }
 0x370   : > { %7862 = vtanh.f32 %v2039_v32  ;;  %v7268_v20 = vld [vmem:[#allocation11 + $0xe0] ss:$16 sps:$4 sm:$0xff]   ;;  %v7271_v22 = vld [vmem:[#allocation11 + $0xe8] ss:$16 sps:$4 sm:$0xff]   ;;  %v7276_v24 = vld [vmem:[#allocation11 + $0x104] ss:$16 sps:$4 sm:$0xff]  }
 0x371   : > { %7864 = vpow2.f32 %v6284_v34  ;;  %v7279_v25 = vld [vmem:[#allocation11 + $0x10c] ss:$16 sps:$4 sm:$0xff]   ;;  %v7274_v26 = vld [vmem:[#allocation11 + $0x100] ss:$16 sps:$4 sm:$0xff]   ;;  %v7277_v27 = vld [vmem:[#allocation11 + $0x108] ss:$16 sps:$4 sm:$0xff]  }
 0x372   : > { %v7282_v28 = vld [vmem:[#allocation11 + $0x124] ss:$16 sps:$4 sm:$0xff]   ;;  %v7285_v30 = vld [vmem:[#allocation11 + $0x12c] ss:$16 sps:$4 sm:$0xff]   ;;  %v7283_v32 = vld [vmem:[#allocation11 + $0x128] ss:$16 sps:$4 sm:$0xff]  }
 0x373   : > { %v7291_v34 = vld [vmem:[#allocation11 + $0x14c] ss:$16 sps:$4 sm:$0xff]  }
 0x375   : > { %v7857_v33 = vpop.eup %7856 }
 0x376   : > { %v8472_v35 = vmul.f32 %v7857_v33, %v7855_v31  ;;  %v7280_v31 = vld [vmem:[#allocation11 + $0x120] ss:$16 sps:$4 sm:$0xff]   ;;  %v7288_v33 = vld [vmem:[#allocation11 + $0x144] ss:$16 sps:$4 sm:$0xff]  }
 0x378   : > { %v7859_v36 = vpop.eup %7858  ;;  %v2587_v55 = vpack.c.bf16 %v8472_v35, %v8472_v35 }
 0x379   : > { %v2050_v37 = vadd.f32 1.0, %v7859_v36  ;;  %v7861_v38 = vpop.eup %7860  ;;  %v7286_v36 = vld [vmem:[#allocation11 + $0x140] ss:$16 sps:$4 sm:$0xff]  }
 0x37a   : > { %v2051_v40 = vadd.f32 1.0, %v7861_v38  ;;  %v7863_v41 = vpop.eup %7862  ;;  %v7294_v38 = vld [vmem:[#allocation11 + $0x164] ss:$16 sps:$4 sm:$0xff]  }
 0x37b   : > { %7866 = vrcp.f32 %v2050_v37  ;;  %v7865_v15 = vpop.eup %7864  ;;  %v7289_v37 = vld [vmem:[#allocation11 + $0x148] ss:$16 sps:$4 sm:$0xff]  }
 0x37c   : > { %7868 = vrcp.f32 %v2051_v40  ;;  %v2052_v45 = vadd.f32 1.0, %v7865_v15  ;;  %v7297_v40 = vld [vmem:[#allocation11 + $0x16c] ss:$16 sps:$4 sm:$0xff]   ;;  %v7295_v15 = vld [vmem:[#allocation11 + $0x168] ss:$16 sps:$4 sm:$0xff]  }
 0x37e   : > { %7870 = vrcp.f32 %v2052_v45  ;;  %v7301_v45 = vld [vmem:[#allocation11 + $0x188] ss:$16 sps:$4 sm:$0xff]  }
 0x385   : > { %v7867_v42 = vpop.eup %7866 }
 0x386   : > { %v2061_v43 = vmul.f32 %v7867_v42, %v7863_v41  ;;  %v7869_v44 = vpop.eup %7868  ;;  %v7292_v41 = vld [vmem:[#allocation11 + $0x160] ss:$16 sps:$4 sm:$0xff]   ;;  %v7300_v42 = vld [vmem:[#allocation11 + $0x184] ss:$16 sps:$4 sm:$0xff]  }
 0x387   : > { %v2060_v47 = vmul.f32 %v7869_v44, %v2040_v46  ;;  %v7298_v44 = vld [vmem:[#allocation11 + $0x180] ss:$16 sps:$4 sm:$0xff]  }
 0x388   : > { %v7871_v49 = vpop.eup %7870  ;;  %v7304_v46 = vld [vmem:[#allocation11 + $0x1a0] ss:$16 sps:$4 sm:$0xff]  }
 0x389   : > { %v2062_v48 = vadd.f32 %v2061_v43, %v2060_v47  ;;  %v7303_v43 = vld [vmem:[#allocation11 + $0x18c] ss:$16 sps:$4 sm:$0xff]   ;;  %v7306_v47 = vld [vmem:[#allocation11 + $0x1a4] ss:$16 sps:$4 sm:$0xff]  }
 0x38b   : > { %7872 = vtanh.f32 %v2062_v48  ;;  %2066 = vst [vmem:[#allocation4] sm:$0xff] %v2062_v48  ;;  %v7307_v48 = vld [vmem:[#allocation11 + $0x1a8] ss:$16 sps:$4 sm:$0xff]  }
 0x395   : > { %v7873_v50 = vpop.eup %7872 }
 0x396   : > { %v2064_v51 = vmul.f32 %v7873_v50, %v7871_v49  ;;  %v7309_v49 = vld [vmem:[#allocation11 + $0x1ac] ss:$16 sps:$4 sm:$0xff]   ;;  %v7312_v50 = vld [vmem:[#allocation11 + $0x1c4] ss:$16 sps:$4 sm:$0xff]  }
 0x398   : > { %v8474_v52 = vpack.c.bf16 %v2064_v51, %v2064_v51  ;;  %v7315_v51 = vld [vmem:[#allocation11 + $0x1cc] ss:$16 sps:$4 sm:$0xff]  }
 0x39a   : > { %2509 = vmatmul.mubr.bf16.vlgmr.msra.gmra.mrb[16].mxu0 %v8474_v52  ;;  %2550 = vmatmul.mubr.bf16.vlgmr.msra.gmra.mrb[16].mxu1 %v8474_v52 }
 0x39b   : > { %3026 = vmatprep.mubr.bf16.mxu0 %v2587_v55  ;;  %3067 = vmatprep.mubr.bf16.mxu1 %v2587_v55  ;;  %v7318_v55 = vld [vmem:[#allocation11 + $0x1e4] ss:$16 sps:$4 sm:$0xff]  }
 0x39c   : > { %2995 = vmatpush1.bf16.msra.mxu0 %v7226_v53  ;;  %3036 = vmatpush1.bf16.msra.mxu1 %v7229_v54  ;;  %v7310_v53 = vld [vmem:[#allocation11 + $0x1c0] ss:$16 sps:$4 sm:$0xff]   ;;  %v7313_v54 = vld [vmem:[#allocation11 + $0x1c8] ss:$16 sps:$4 sm:$0xff]  }
 0x39d   : > { %2996 = vmatprep.subr.bf16.mxu0 %v7234_v56  ;;  %3037 = vmatprep.subr.bf16.mxu1 %v7237_v57  ;;  %v7321_v56 = vld [vmem:[#allocation11 + $0x1ec] ss:$16 sps:$4 sm:$0xff]   ;;  %v7316_v57 = vld [vmem:[#allocation11 + $0x1e0] ss:$16 sps:$4 sm:$0xff]  }
 0x3a0   : > { %2997 = vmatpush1.bf16.msra.mxu0 %v7232_v58  ;;  %3038 = vmatpush1.bf16.msra.mxu1 %v7235_v59  ;;  %v7319_v58 = vld [vmem:[#allocation11 + $0x1e8] ss:$16 sps:$4 sm:$0xff]   ;;  %v7324_v59 = vld [vmem:[%s8804_s2 + $0x4] ss:$16 sps:$4 sm:$0xff]  }
 0x3a1   : > { %2998 = vmatprep.subr.bf16.mxu0 %v7240_v60  ;;  %3039 = vmatprep.subr.bf16.mxu1 %v7243_v61  ;;  %v7327_v60 = vld [vmem:[%s8804_s2 + $0xc] ss:$16 sps:$4 sm:$0xff]  }
 0x3a2   : > { %v5814_v61 = vld [vmem:[%s8222_s28 + $0x8] sm:$0xff] }
 0x3a3   : > { %5824 = vperm.xlu0 %6840, %v5814_v61   ;;  %v7357_v61 = vld [vmem:[%s8804_s2 + $0xac] ss:$16 sps:$4 sm:$0xff]  }
 0x3a4   : > { %2999 = vmatpush1.bf16.msra.mxu0 %v7238_v62  ;;  %3040 = vmatpush1.bf16.msra.mxu1 %v7241_v63  ;;  %v2134_v62 = vld [vmem:[%s8806_s4] sm:$0xf] }
 0x3a5   : > { %3000 = vmatprep.subr.bf16.mxu0 %v7246_v0  ;;  %3041 = vmatprep.subr.bf16.mxu1 %v7249_v1  ;;  %v2139_v63 = vrot.slane %v2134_v62, %v8346_v21  ;;  %v2143_v0 = vrot.slane %v2134_v62, %v8351_v23 }
 0x3a8   : > { %3001 = vmatpush1.bf16.msra.mxu0 %v7244_v2  ;;  %3042 = vmatpush1.bf16.msra.mxu1 %v7247_v4 }
 0x3a9   : > { %3002 = vmatprep.subr.bf16.mxu0 %v7252_v5  ;;  %3043 = vmatprep.subr.bf16.mxu1 %v7255_v6 }
 0x3ac   : > { %3003 = vmatpush1.bf16.msra.mxu0 %v7250_v7  ;;  %3044 = vmatpush1.bf16.msra.mxu1 %v7253_v8 }
 0x3ad   : > { %3004 = vmatprep.subr.bf16.mxu0 %v7258_v9  ;;  %3045 = vmatprep.subr.bf16.mxu1 %v7261_v10 }
 0x3b0   : > { %3005 = vmatpush1.bf16.msra.mxu0 %v7256_v11  ;;  %3046 = vmatpush1.bf16.msra.mxu1 %v7259_v12 }
 0x3b1   : > { %3006 = vmatprep.subr.bf16.mxu0 %v7264_v13  ;;  %3047 = vmatprep.subr.bf16.mxu1 %v7267_v14  ;;  %v2147_v14 = vrot.slane %v2134_v62, %v8355_v29 }
 0x3b4   : > { %3007 = vmatpush1.bf16.msra.mxu0 %v7262_v16  ;;  %3048 = vmatpush1.bf16.msra.mxu1 %v7265_v17  ;;  %v2151_v16 = vrot.slane %v2134_v62, %v8357_v39  ;;  %v7352_v62 = vld [vmem:[%s8804_s2 + $0xa0] ss:$16 sps:$4 sm:$0xff]  }
 0x3b5   : > { %3008 = vmatprep.subr.bf16.mxu0 %v7270_v18  ;;  %3049 = vmatprep.subr.bf16.mxu1 %v7273_v19 }
 0x3b8   : > { %3009 = vmatpush1.bf16.msra.mxu0 %v7268_v20  ;;  %3050 = vmatpush1.bf16.msra.mxu1 %v7271_v22 }
 0x3b9   : > { %3010 = vmatprep.subr.bf16.mxu0 %v7276_v24  ;;  %3051 = vmatprep.subr.bf16.mxu1 %v7279_v25 }
 0x3bc   : > { %3011 = vmatpush1.bf16.msra.mxu0 %v7274_v26  ;;  %3052 = vmatpush1.bf16.msra.mxu1 %v7277_v27 }
 0x3bd   : > { %3012 = vmatprep.subr.bf16.mxu0 %v7282_v28  ;;  %3053 = vmatprep.subr.bf16.mxu1 %v7285_v30 }
 0x3c0   : > { %3013 = vmatpush1.bf16.msra.mxu0 %v7280_v31  ;;  %3054 = vmatpush1.bf16.msra.mxu1 %v7283_v32 }
 0x3c1   : > { %3014 = vmatprep.subr.bf16.mxu0 %v7288_v33  ;;  %3055 = vmatprep.subr.bf16.mxu1 %v7291_v34  ;;  %v2558_v33 = vld [vmem:[#allocation6] sm:$0xff] }
 0x3c4   : > { %3015 = vmatpush1.bf16.msra.mxu0 %v7286_v36  ;;  %3056 = vmatpush1.bf16.msra.mxu1 %v7289_v37 }
 0x3c5   : > { %3016 = vmatprep.subr.bf16.mxu0 %v7294_v38  ;;  %3057 = vmatprep.subr.bf16.mxu1 %v7297_v40 }
 0x3c8   : > { %3017 = vmatpush1.bf16.msra.mxu0 %v7292_v41  ;;  %3058 = vmatpush1.bf16.msra.mxu1 %v7295_v15  ;;  %v7322_v41 = vld [vmem:[%s8804_s2] ss:$16 sps:$4 sm:$0xff]   ;;  %v7325_v15 = vld [vmem:[%s8804_s2 + $0x8] ss:$16 sps:$4 sm:$0xff]  }
 0x3c9   : > { %3018 = vmatprep.subr.bf16.mxu0 %v7300_v42  ;;  %3059 = vmatprep.subr.bf16.mxu1 %v7303_v43  ;;  %v7330_v43 = vld [vmem:[%s8804_s2 + $0x24] ss:$16 sps:$4 sm:$0xff]  }
 0x3cc   : > { %3019 = vmatpush1.bf16.msra.mxu0 %v7298_v44  ;;  %3060 = vmatpush1.bf16.msra.mxu1 %v7301_v45  ;;  %v7333_v44 = vld [vmem:[%s8804_s2 + $0x2c] ss:$16 sps:$4 sm:$0xff]   ;;  %v7328_v45 = vld [vmem:[%s8804_s2 + $0x20] ss:$16 sps:$4 sm:$0xff]  }
 0x3cd   : > { %3020 = vmatprep.subr.bf16.mxu0 %v7306_v47  ;;  %3061 = vmatprep.subr.bf16.mxu1 %v7309_v49  ;;  %v7336_v47 = vld [vmem:[%s8804_s2 + $0x44] ss:$16 sps:$4 sm:$0xff]   ;;  %v7334_v49 = vld [vmem:[%s8804_s2 + $0x40] ss:$16 sps:$4 sm:$0xff]  }
 0x3d0   : > { %3021 = vmatpush1.bf16.msra.mxu0 %v7304_v46  ;;  %3062 = vmatpush1.bf16.msra.mxu1 %v7307_v48  ;;  %v7331_v46 = vld [vmem:[%s8804_s2 + $0x28] ss:$16 sps:$4 sm:$0xff]   ;;  %v7339_v48 = vld [vmem:[%s8804_s2 + $0x4c] ss:$16 sps:$4 sm:$0xff]  }
 0x3d1   : > { %3022 = vmatprep.subr.bf16.mxu0 %v7312_v50  ;;  %3063 = vmatprep.subr.bf16.mxu1 %v7315_v51  ;;  %v7337_v50 = vld [vmem:[%s8804_s2 + $0x48] ss:$16 sps:$4 sm:$0xff]   ;;  %v7342_v51 = vld [vmem:[%s8804_s2 + $0x64] ss:$16 sps:$4 sm:$0xff]  }
 0x3d4   : > { %3023 = vmatpush1.bf16.msra.mxu0 %v7310_v53  ;;  %3064 = vmatpush1.bf16.msra.mxu1 %v7313_v54  ;;  %v7345_v53 = vld [vmem:[%s8804_s2 + $0x6c] ss:$16 sps:$4 sm:$0xff]   ;;  %v7340_v54 = vld [vmem:[%s8804_s2 + $0x60] ss:$16 sps:$4 sm:$0xff]  }
 0x3d5   : > { %3024 = vmatprep.subr.bf16.mxu0 %v7318_v55  ;;  %3065 = vmatprep.subr.bf16.mxu1 %v7321_v56  ;;  %v7343_v55 = vld [vmem:[%s8804_s2 + $0x68] ss:$16 sps:$4 sm:$0xff]   ;;  %v7348_v56 = vld [vmem:[%s8804_s2 + $0x84] ss:$16 sps:$4 sm:$0xff]  }
 0x3d8   : > { %3025 = vmatpush1.bf16.msra.mxu0 %v7316_v57  ;;  %3066 = vmatpush1.bf16.msra.mxu1 %v7319_v58  ;;  %v7351_v57 = vld [vmem:[%s8804_s2 + $0x8c] ss:$16 sps:$4 sm:$0xff]   ;;  %v7346_v58 = vld [vmem:[%s8804_s2 + $0x80] ss:$16 sps:$4 sm:$0xff]  }
 0x3d9   : > { %3306 = vmatprep.subr.bf16.mxu0 %v7324_v59  ;;  %3347 = vmatprep.subr.bf16.mxu1 %v7327_v60  ;;  %v7349_v59 = vld [vmem:[%s8804_s2 + $0x88] ss:$16 sps:$4 sm:$0xff]   ;;  %v7354_v60 = vld [vmem:[%s8804_s2 + $0xa4] ss:$16 sps:$4 sm:$0xff]  }
 0x46d   : > { %v2510_v1 = vpop.f32.mrb[16].mxu0  ;;  %v2551_v2 = vpop.f32.mrb[16].mxu1 }
 0x46e   : > { %v2511_v4 = vadd.f32 %v2510_v1, %v2139_v63  ;;  %v2512_v5 = vpop.f32.mrb[17].mxu0  ;;  %v2553_v6 = vpop.f32.mrb[17].mxu1  ;;  %v2552_v17 = vadd.f32 %v2551_v2, %v2147_v14  ;;  %v7355_v63 = vld [vmem:[%s8804_s2 + $0xa8] ss:$16 sps:$4 sm:$0xff]   ;;  %v7363_v1 = vld [vmem:[%s8804_s2 + $0xcc] ss:$16 sps:$4 sm:$0xff]  }
 0x46f   : > { %v2513_v7 = vadd.f32 %v2512_v5, %v2143_v0  ;;  %v2514_v8 = vpop.f32.mrb[18].mxu0  ;;  %v2555_v9 = vpop.f32.mrb[18].mxu1  ;;  %v2554_v18 = vadd.f32 %v2553_v6, %v2151_v16  ;;  %v7360_v0 = vld [vmem:[%s8804_s2 + $0xc4] ss:$16 sps:$4 sm:$0xff]   ;;  %v7358_v2 = vld [vmem:[%s8804_s2 + $0xc0] ss:$16 sps:$4 sm:$0xff]  }
 0x470   : > { %v6349_v10 = vmul.f32 -1.442695, %v2511_v4  ;;  %v2515_v11 = vpop.f32.mrb[19].mxu0  ;;  %v2556_v12 = vpop.f32.mrb[19].mxu1  ;;  %v6351_v19 = vmul.f32 -1.442695, %v2552_v17 }
 0x471   : > { %v6350_v13 = vmul.f32 -1.442695, %v2513_v7  ;;  %v7361_v4 = vld [vmem:[%s8804_s2 + $0xc8] ss:$16 sps:$4 sm:$0xff]   ;;  %v7366_v5 = vld [vmem:[%s8804_s2 + $0xe4] ss:$16 sps:$4 sm:$0xff]  }
 0x472   : > { %7874 = vpow2.f32 %v6349_v10  ;;  %v7369_v6 = vld [vmem:[%s8804_s2 + $0xec] ss:$16 sps:$4 sm:$0xff]   ;;  %v7364_v7 = vld [vmem:[%s8804_s2 + $0xe0] ss:$16 sps:$4 sm:$0xff]   ;;  %v7367_v8 = vld [vmem:[%s8804_s2 + $0xe8] ss:$16 sps:$4 sm:$0xff]  }
 0x473   : > { %7876 = vpow2.f32 %v6350_v13  ;;  %v7372_v9 = vld [vmem:[#allocation9 + $0x4] ss:$16 sps:$4 sm:$0xff]   ;;  %v7375_v10 = vld [vmem:[#allocation9 + $0xc] ss:$16 sps:$4 sm:$0xff]   ;;  %v7370_v11 = vld [vmem:[#allocation9] ss:$16 sps:$4 sm:$0xff]  }
 0x474   : > { %7878 = vtanh.f32 %v2554_v18  ;;  %v7373_v12 = vld [vmem:[#allocation9 + $0x8] ss:$16 sps:$4 sm:$0xff]   ;;  %v7378_v13 = vld [vmem:[#allocation9 + $0x24] ss:$16 sps:$4 sm:$0xff]   ;;  %v7381_v14 = vld [vmem:[#allocation9 + $0x2c] ss:$16 sps:$4 sm:$0xff]  }
 0x475   : > { %7880 = vpow2.f32 %v6351_v19  ;;  %v7376_v16 = vld [vmem:[#allocation9 + $0x20] ss:$16 sps:$4 sm:$0xff]   ;;  %v7379_v17 = vld [vmem:[#allocation9 + $0x28] ss:$16 sps:$4 sm:$0xff]   ;;  %v7387_v18 = vld [vmem:[#allocation9 + $0x4c] ss:$16 sps:$4 sm:$0xff]  }
 0x476   : > { %v7382_v19 = vld [vmem:[#allocation9 + $0x40] ss:$16 sps:$4 sm:$0xff]  }
 0x47c   : > { %v7875_v20 = vpop.eup %7874 }
 0x47d   : > { %v2568_v22 = vadd.f32 1.0, %v7875_v20  ;;  %v7877_v24 = vpop.eup %7876  ;;  %v7385_v20 = vld [vmem:[#allocation9 + $0x48] ss:$16 sps:$4 sm:$0xff]  }
 0x47e   : > { %v2569_v25 = vadd.f32 1.0, %v7877_v24  ;;  %v7879_v26 = vpop.eup %7878  ;;  %v7393_v24 = vld [vmem:[#allocation9 + $0x6c] ss:$16 sps:$4 sm:$0xff]  }
 0x47f   : > { %7882 = vrcp.f32 %v2568_v22  ;;  %v7881_v27 = vpop.eup %7880  ;;  %v7390_v22 = vld [vmem:[#allocation9 + $0x64] ss:$16 sps:$4 sm:$0xff]  }
 0x480   : > { %7884 = vrcp.f32 %v2569_v25  ;;  %v2570_v32 = vadd.f32 1.0, %v7881_v27  ;;  %v7388_v25 = vld [vmem:[#allocation9 + $0x60] ss:$16 sps:$4 sm:$0xff]   ;;  %v7396_v27 = vld [vmem:[#allocation9 + $0x84] ss:$16 sps:$4 sm:$0xff]  }
 0x482   : > { %7886 = vrcp.f32 %v2570_v32  ;;  %v7402_v32 = vld [vmem:[#allocation9 + $0xa4] ss:$16 sps:$4 sm:$0xff]  }
 0x489   : > { %v7883_v28 = vpop.eup %7882 }
 0x48a   : > { %v2579_v30 = vmul.f32 %v7883_v28, %v7879_v26  ;;  %v7885_v31 = vpop.eup %7884  ;;  %v7391_v26 = vld [vmem:[#allocation9 + $0x68] ss:$16 sps:$4 sm:$0xff]   ;;  %v7394_v28 = vld [vmem:[#allocation9 + $0x80] ss:$16 sps:$4 sm:$0xff]  }
 0x48b   : > { %v2578_v34 = vmul.f32 %v7885_v31, %v2558_v33  ;;  %v7399_v31 = vld [vmem:[#allocation9 + $0x8c] ss:$16 sps:$4 sm:$0xff]  }
 0x48c   : > { %v7887_v37 = vpop.eup %7886  ;;  %v7405_v33 = vld [vmem:[#allocation9 + $0xac] ss:$16 sps:$4 sm:$0xff]  }
 0x48d   : > { %v2580_v36 = vadd.f32 %v2579_v30, %v2578_v34  ;;  %v7397_v30 = vld [vmem:[#allocation9 + $0x88] ss:$16 sps:$4 sm:$0xff]   ;;  %v7400_v34 = vld [vmem:[#allocation9 + $0xa0] ss:$16 sps:$4 sm:$0xff]  }
 0x48f   : > { %7888 = vtanh.f32 %v2580_v36  ;;  %2584 = vst [vmem:[#allocation6] sm:$0xff] %v2580_v36  ;;  %v7403_v36 = vld [vmem:[#allocation9 + $0xa8] ss:$16 sps:$4 sm:$0xff]  }
 0x499   : > { %v7889_v38 = vpop.eup %7888 }
 0x49a   : > { %v2582_v40 = vmul.f32 %v7889_v38, %v7887_v37  ;;  %v7408_v37 = vld [vmem:[#allocation9 + $0xc4] ss:$16 sps:$4 sm:$0xff]   ;;  %v7411_v38 = vld [vmem:[#allocation9 + $0xcc] ss:$16 sps:$4 sm:$0xff]  }
 0x49c   : > { %v8500_v42 = vpack.c.bf16 %v2582_v40, %v2582_v40  ;;  %v7406_v40 = vld [vmem:[#allocation9 + $0xc0] ss:$16 sps:$4 sm:$0xff]  }
 0x49e   : > { %3027 = vmatmul.mubr.bf16.vlgmr.msra.gmra.mrb[20].mxu0 %v8500_v42  ;;  %3068 = vmatmul.mubr.bf16.vlgmr.msra.gmra.mrb[20].mxu1 %v8500_v42 }
 0x49f   : > { %3307 = vmatpush1.bf16.msra.mxu0 %v7322_v41  ;;  %3348 = vmatpush1.bf16.msra.mxu1 %v7325_v15  ;;  %v7409_v41 = vld [vmem:[#allocation9 + $0xc8] ss:$16 sps:$4 sm:$0xff]   ;;  %v7414_v15 = vld [vmem:[#allocation9 + $0xe4] ss:$16 sps:$4 sm:$0xff]  }
 0x4a0   : > { %3308 = vmatprep.subr.bf16.mxu0 %v7330_v43  ;;  %3349 = vmatprep.subr.bf16.mxu1 %v7333_v44  ;;  %v7412_v43 = vld [vmem:[#allocation9 + $0xe0] ss:$16 sps:$4 sm:$0xff]   ;;  %v7415_v44 = vld [vmem:[#allocation9 + $0xe8] ss:$16 sps:$4 sm:$0xff]  }
 0x4a1   : > { %3338 = vmatprep.mubr.bf16.mxu0 %v8079_v3  ;;  %3379 = vmatprep.mubr.bf16.mxu1 %v8079_v3 }
 0x4a3   : > { %3309 = vmatpush1.bf16.msra.mxu0 %v7328_v45  ;;  %3350 = vmatpush1.bf16.msra.mxu1 %v7331_v46  ;;  %v7420_v45 = vld [vmem:[#allocation9 + $0x104] ss:$16 sps:$4 sm:$0xff]   ;;  %v7423_v46 = vld [vmem:[#allocation9 + $0x10c] ss:$16 sps:$4 sm:$0xff]  }
 0x4a4   : > { %3310 = vmatprep.subr.bf16.mxu0 %v7336_v47  ;;  %3351 = vmatprep.subr.bf16.mxu1 %v7339_v48  ;;  %v7418_v47 = vld [vmem:[#allocation9 + $0x100] ss:$16 sps:$4 sm:$0xff]   ;;  %v7421_v48 = vld [vmem:[#allocation9 + $0x108] ss:$16 sps:$4 sm:$0xff]  }
 0x4a7   : > { %3311 = vmatpush1.bf16.msra.mxu0 %v7334_v49  ;;  %3352 = vmatpush1.bf16.msra.mxu1 %v7337_v50  ;;  %v7426_v49 = vld [vmem:[#allocation9 + $0x124] ss:$16 sps:$4 sm:$0xff]   ;;  %v7429_v50 = vld [vmem:[#allocation9 + $0x12c] ss:$16 sps:$4 sm:$0xff]  }
 0x4a8   : > { %3312 = vmatprep.subr.bf16.mxu0 %v7342_v51  ;;  %3353 = vmatprep.subr.bf16.mxu1 %v7345_v53  ;;  %v7424_v51 = vld [vmem:[#allocation9 + $0x120] ss:$16 sps:$4 sm:$0xff]   ;;  %v7427_v53 = vld [vmem:[#allocation9 + $0x128] ss:$16 sps:$4 sm:$0xff]  }
 0x4ab   : > { %3313 = vmatpush1.bf16.msra.mxu0 %v7340_v54  ;;  %3354 = vmatpush1.bf16.msra.mxu1 %v7343_v55  ;;  %v7432_v54 = vld [vmem:[#allocation9 + $0x144] ss:$16 sps:$4 sm:$0xff]   ;;  %v7435_v55 = vld [vmem:[#allocation9 + $0x14c] ss:$16 sps:$4 sm:$0xff]  }
 0x4ac   : > { %3314 = vmatprep.subr.bf16.mxu0 %v7348_v56  ;;  %3355 = vmatprep.subr.bf16.mxu1 %v7351_v57  ;;  %v7430_v56 = vld [vmem:[#allocation9 + $0x140] ss:$16 sps:$4 sm:$0xff]   ;;  %v7433_v57 = vld [vmem:[#allocation9 + $0x148] ss:$16 sps:$4 sm:$0xff]  }
 0x4af   : > { %3315 = vmatpush1.bf16.msra.mxu0 %v7346_v58  ;;  %3356 = vmatpush1.bf16.msra.mxu1 %v7349_v59  ;;  %v7438_v58 = vld [vmem:[#allocation9 + $0x164] ss:$16 sps:$4 sm:$0xff]   ;;  %v7441_v59 = vld [vmem:[#allocation9 + $0x16c] ss:$16 sps:$4 sm:$0xff]  }
 0x4b0   : > { %3316 = vmatprep.subr.bf16.mxu0 %v7354_v60  ;;  %3357 = vmatprep.subr.bf16.mxu1 %v7357_v61  ;;  %v7436_v60 = vld [vmem:[#allocation9 + $0x160] ss:$16 sps:$4 sm:$0xff]   ;;  %v7439_v61 = vld [vmem:[#allocation9 + $0x168] ss:$16 sps:$4 sm:$0xff]  }
 0x4b3   : > { %3317 = vmatpush1.bf16.msra.mxu0 %v7352_v62  ;;  %3358 = vmatpush1.bf16.msra.mxu1 %v7355_v63  ;;  %v7444_v62 = vld [vmem:[#allocation9 + $0x184] ss:$16 sps:$4 sm:$0xff]   ;;  %v7447_v63 = vld [vmem:[#allocation9 + $0x18c] ss:$16 sps:$4 sm:$0xff]  }
 0x4b4   : > { %3318 = vmatprep.subr.bf16.mxu0 %v7360_v0  ;;  %3359 = vmatprep.subr.bf16.mxu1 %v7363_v1  ;;  %v7442_v0 = vld [vmem:[#allocation9 + $0x180] ss:$16 sps:$4 sm:$0xff]   ;;  %v7445_v1 = vld [vmem:[#allocation9 + $0x188] ss:$16 sps:$4 sm:$0xff]  }
 0x4b7   : > { %3319 = vmatpush1.bf16.msra.mxu0 %v7358_v2  ;;  %3360 = vmatpush1.bf16.msra.mxu1 %v7361_v4  ;;  %v7448_v2 = vld [vmem:[#allocation9 + $0x1a0] ss:$16 sps:$4 sm:$0xff]   ;;  %v7450_v4 = vld [vmem:[#allocation9 + $0x1a4] ss:$16 sps:$4 sm:$0xff]  }
 0x4b8   : > { %3320 = vmatprep.subr.bf16.mxu0 %v7366_v5  ;;  %3361 = vmatprep.subr.bf16.mxu1 %v7369_v6  ;;  %v7451_v5 = vld [vmem:[#allocation9 + $0x1a8] ss:$16 sps:$4 sm:$0xff]   ;;  %v7453_v6 = vld [vmem:[#allocation9 + $0x1ac] ss:$16 sps:$4 sm:$0xff]  }
 0x4bb   : > { %3321 = vmatpush1.bf16.msra.mxu0 %v7364_v7  ;;  %3362 = vmatpush1.bf16.msra.mxu1 %v7367_v8  ;;  %v7456_v7 = vld [vmem:[#allocation9 + $0x1c4] ss:$16 sps:$4 sm:$0xff]   ;;  %v7459_v8 = vld [vmem:[#allocation9 + $0x1cc] ss:$16 sps:$4 sm:$0xff]  }
 0x4bc   : > { %3828 = vmatprep.subr.bf16.mxu0 %v7372_v9  ;;  %3869 = vmatprep.subr.bf16.mxu1 %v7375_v10  ;;  %v7454_v9 = vld [vmem:[#allocation9 + $0x1c0] ss:$16 sps:$4 sm:$0xff]   ;;  %v7457_v10 = vld [vmem:[#allocation9 + $0x1c8] ss:$16 sps:$4 sm:$0xff]  }
 0x4be   : > { %3339 = vmatmul.mubr.bf16.vlgmr.msra.gmra.mrb[24].mxu0 %v8474_v52  ;;  %3380 = vmatmul.mubr.bf16.vlgmr.msra.gmra.mrb[24].mxu1 %v8474_v52  ;;  %v7384_v52 = vld [vmem:[#allocation9 + $0x44] ss:$16 sps:$4 sm:$0xff]  }
 0x4bf   : > { %3860 = vmatprep.mubr.bf16.mxu0 %v8500_v42  ;;  %3901 = vmatprep.mubr.bf16.mxu1 %v8500_v42  ;;  %v7417_v42 = vld [vmem:[#allocation9 + $0xec] ss:$16 sps:$4 sm:$0xff]  }
 0x4c0   : > { %3829 = vmatpush1.bf16.msra.mxu0 %v7370_v11  ;;  %3870 = vmatpush1.bf16.msra.mxu1 %v7373_v12  ;;  %v7462_v11 = vld [vmem:[#allocation9 + $0x1e4] ss:$16 sps:$4 sm:$0xff]   ;;  %v7465_v12 = vld [vmem:[#allocation9 + $0x1ec] ss:$16 sps:$4 sm:$0xff]  }
 0x4c1   : > { %3830 = vmatprep.subr.bf16.mxu0 %v7378_v13  ;;  %3871 = vmatprep.subr.bf16.mxu1 %v7381_v14  ;;  %v7460_v13 = vld [vmem:[#allocation9 + $0x1e0] ss:$16 sps:$4 sm:$0xff]   ;;  %v7463_v14 = vld [vmem:[#allocation9 + $0x1e8] ss:$16 sps:$4 sm:$0xff]  }
 0x4c4   : > { %3831 = vmatpush1.bf16.msra.mxu0 %v7376_v16  ;;  %3872 = vmatpush1.bf16.msra.mxu1 %v7379_v17  ;;  %v7468_v16 = vld [vmem:[#allocation11 + $0x4] ss:$16 sps:$4 sm:$0xff]   ;;  %v7471_v17 = vld [vmem:[#allocation11 + $0xc] ss:$16 sps:$4 sm:$0xff]  }
 0x4c5   : > { %3832 = vmatprep.subr.bf16.mxu0 %v7384_v52  ;;  %3873 = vmatprep.subr.bf16.mxu1 %v7387_v18  ;;  %v2652_v52 = vld [vmem:[%s8808_s6] sm:$0xf] }
 0x4c6   : > { %v2657_v18 = vrot.slane %v2652_v52, %v8346_v21 }
 0x4c8   : > { %3833 = vmatpush1.bf16.msra.mxu0 %v7382_v19  ;;  %3874 = vmatpush1.bf16.msra.mxu1 %v7385_v20  ;;  %v2661_v19 = vrot.slane %v2652_v52, %v8351_v23 }
 0x4c9   : > { %3834 = vmatprep.subr.bf16.mxu0 %v7390_v22  ;;  %3875 = vmatprep.subr.bf16.mxu1 %v7393_v24 }
 0x4cc   : > { %3835 = vmatpush1.bf16.msra.mxu0 %v7388_v25  ;;  %3876 = vmatpush1.bf16.msra.mxu1 %v7391_v26 }
 0x4cd   : > { %3836 = vmatprep.subr.bf16.mxu0 %v7396_v27  ;;  %3877 = vmatprep.subr.bf16.mxu1 %v7399_v31 }
 0x4d0   : > { %3837 = vmatpush1.bf16.msra.mxu0 %v7394_v28  ;;  %3878 = vmatpush1.bf16.msra.mxu1 %v7397_v30 }
 0x4d1   : > { %3838 = vmatprep.subr.bf16.mxu0 %v7402_v32  ;;  %3879 = vmatprep.subr.bf16.mxu1 %v7405_v33 }
 0x4d4   : > { %3839 = vmatpush1.bf16.msra.mxu0 %v7400_v34  ;;  %3880 = vmatpush1.bf16.msra.mxu1 %v7403_v36  ;;  %v2665_v36 = vrot.slane %v2652_v52, %v8355_v29 }
 0x4d5   : > { %3840 = vmatprep.subr.bf16.mxu0 %v7408_v37  ;;  %3881 = vmatprep.subr.bf16.mxu1 %v7411_v38  ;;  %v2669_v37 = vrot.slane %v2652_v52, %v8357_v39 }
 0x4d8   : > { %3841 = vmatpush1.bf16.msra.mxu0 %v7406_v40  ;;  %3882 = vmatpush1.bf16.msra.mxu1 %v7409_v41 }
 0x4d9   : > { %3842 = vmatprep.subr.bf16.mxu0 %v7414_v15  ;;  %3883 = vmatprep.subr.bf16.mxu1 %v7417_v42 }
 0x4dc   : > { %3843 = vmatpush1.bf16.msra.mxu0 %v7412_v43  ;;  %3884 = vmatpush1.bf16.msra.mxu1 %v7415_v44 }
 0x4dd   : > { %3844 = vmatprep.subr.bf16.mxu0 %v7420_v45  ;;  %3885 = vmatprep.subr.bf16.mxu1 %v7423_v46 }
 0x4e0   : > { %3845 = vmatpush1.bf16.msra.mxu0 %v7418_v47  ;;  %3886 = vmatpush1.bf16.msra.mxu1 %v7421_v48 }
 0x4e1   : > { %3846 = vmatprep.subr.bf16.mxu0 %v7426_v49  ;;  %3887 = vmatprep.subr.bf16.mxu1 %v7429_v50 }
 0x4e4   : > { %3847 = vmatpush1.bf16.msra.mxu0 %v7424_v51  ;;  %3888 = vmatpush1.bf16.msra.mxu1 %v7427_v53  ;;  %v3076_v51 = vld [vmem:[#allocation8] sm:$0xff]  ;;  %v6419_v53 = vld [vmem:[%s8217_s25 + $0x40] sm:$0xff] }
 0x4e5   : > { %3848 = vmatprep.subr.bf16.mxu0 %v7432_v54  ;;  %3889 = vmatprep.subr.bf16.mxu1 %v7435_v55  ;;  %v6420_v55 = vld [vmem:[%s8217_s25 + $0x48] sm:$0xff] }
 0x4e8   : > { %3849 = vmatpush1.bf16.msra.mxu0 %v7430_v56  ;;  %3890 = vmatpush1.bf16.msra.mxu1 %v7433_v57 }
 0x4e9   : > { %3850 = vmatprep.subr.bf16.mxu0 %v7438_v58  ;;  %3891 = vmatprep.subr.bf16.mxu1 %v7441_v59 }
 0x4ec   : > { %3851 = vmatpush1.bf16.msra.mxu0 %v7436_v60  ;;  %3892 = vmatpush1.bf16.msra.mxu1 %v7439_v61 }
 0x4ed   : > { %3852 = vmatprep.subr.bf16.mxu0 %v7444_v62  ;;  %3893 = vmatprep.subr.bf16.mxu1 %v7447_v63 }
 0x4f0   : > { %3853 = vmatpush1.bf16.msra.mxu0 %v7442_v0  ;;  %3894 = vmatpush1.bf16.msra.mxu1 %v7445_v1 }
 0x4f1   : > { %3854 = vmatprep.subr.bf16.mxu0 %v7450_v4  ;;  %3895 = vmatprep.subr.bf16.mxu1 %v7453_v6  ;;  %v6421_v6 = vld [vmem:[%s8217_s25 + $0x50] sm:$0xff] }
 0x4f4   : > { %3855 = vmatpush1.bf16.msra.mxu0 %v7448_v2  ;;  %3896 = vmatpush1.bf16.msra.mxu1 %v7451_v5 }
 0x4f5   : > { %3856 = vmatprep.subr.bf16.mxu0 %v7456_v7  ;;  %3897 = vmatprep.subr.bf16.mxu1 %v7459_v8  ;;  %v5820_v7 = vpop.permute.xlu0 %5819 }
 0x4f6   : > { %v8606_v52 = vmul.f32 %v5820_v7, %v8472_v35  ;;  %v3392_v35 = vld [vmem:[#allocation4] sm:$0xff] }
 0x4f7   : > { %v7511_v7 = vld [vmem:[#allocation11 + $0xe8] ss:$16 sps:$4 sm:$0xff]  }
 0x4f8   : > { %3857 = vmatpush1.bf16.msra.mxu0 %v7454_v9  ;;  %3898 = vmatpush1.bf16.msra.mxu1 %v7457_v10  ;;  %v6422_v9 = vld [vmem:[%s8217_s25 + $0x58] sm:$0xff] }
 0x4f9   : > { %3858 = vmatprep.subr.bf16.mxu0 %v7462_v11  ;;  %3899 = vmatprep.subr.bf16.mxu1 %v7465_v12 }
 0x4fc   : > { %3859 = vmatpush1.bf16.msra.mxu0 %v7460_v13  ;;  %3900 = vmatpush1.bf16.msra.mxu1 %v7463_v14  ;;  %v5825_v14 = vpop.permute.xlu0 %5824 }
 0x4fd   : > { %4346 = vmatprep.subr.bf16.mxu0 %v7468_v16  ;;  %4387 = vmatprep.subr.bf16.mxu1 %v7471_v17 }
 0x571   : > { %v3028_v20 = vpop.f32.mrb[20].mxu0  ;;  %v3069_v22 = vpop.f32.mrb[20].mxu1 }
 0x572   : > { %v3029_v24 = vadd.f32 %v3028_v20, %v2657_v18  ;;  %v3030_v25 = vpop.f32.mrb[21].mxu0  ;;  %v3071_v26 = vpop.f32.mrb[21].mxu1  ;;  %v3070_v38 = vadd.f32 %v3069_v22, %v2665_v36 }
 0x573   : > { %v3031_v27 = vadd.f32 %v3030_v25, %v2661_v19  ;;  %v3032_v28 = vpop.f32.mrb[22].mxu0  ;;  %v3073_v30 = vpop.f32.mrb[22].mxu1  ;;  %v3072_v40 = vadd.f32 %v3071_v26, %v2669_v37 }
 0x574   : > { %v6416_v31 = vmul.f32 -1.442695, %v3029_v24  ;;  %v3033_v32 = vpop.f32.mrb[23].mxu0  ;;  %v3074_v33 = vpop.f32.mrb[23].mxu1  ;;  %v6418_v41 = vmul.f32 -1.442695, %v3070_v38 }
 0x575   : > { %v6417_v34 = vmul.f32 -1.442695, %v3031_v27 }
 0x576   : > { %7890 = vpow2.f32 %v6416_v31 }
 0x577   : > { %7892 = vpow2.f32 %v6417_v34 }
 0x578   : > { %7894 = vtanh.f32 %v3072_v40  ;;  %v7466_v40 = vld [vmem:[#allocation11] ss:$16 sps:$4 sm:$0xff]  }
 0x579   : > { %7896 = vpow2.f32 %v6418_v41  ;;  %v7469_v41 = vld [vmem:[#allocation11 + $0x8] ss:$16 sps:$4 sm:$0xff]  }
 0x580   : > { %v7891_v15 = vpop.eup %7890 }
 0x581   : > { %v3086_v42 = vadd.f32 1.0, %v7891_v15  ;;  %v7893_v43 = vpop.eup %7892 }
 0x582   : > { %v3087_v44 = vadd.f32 1.0, %v7893_v43  ;;  %v7895_v45 = vpop.eup %7894  ;;  %v7477_v43 = vld [vmem:[#allocation11 + $0x2c] ss:$16 sps:$4 sm:$0xff]  }
 0x583   : > { %7898 = vrcp.f32 %v3086_v42  ;;  %v7897_v46 = vpop.eup %7896  ;;  %v7474_v42 = vld [vmem:[#allocation11 + $0x24] ss:$16 sps:$4 sm:$0xff]  }
 0x584   : > { %7900 = vrcp.f32 %v3087_v44  ;;  %v3088_v50 = vadd.f32 1.0, %v7897_v46  ;;  %v7472_v44 = vld [vmem:[#allocation11 + $0x20] ss:$16 sps:$4 sm:$0xff]   ;;  %v7480_v46 = vld [vmem:[#allocation11 + $0x44] ss:$16 sps:$4 sm:$0xff]  }
 0x586   : > { %7902 = vrcp.f32 %v3088_v50  ;;  %v7486_v50 = vld [vmem:[#allocation11 + $0x64] ss:$16 sps:$4 sm:$0xff]  }
 0x58d   : > { %v7899_v47 = vpop.eup %7898 }
 0x58e   : > { %v3097_v48 = vmul.f32 %v7899_v47, %v7895_v45  ;;  %v7901_v49 = vpop.eup %7900  ;;  %v7475_v45 = vld [vmem:[#allocation11 + $0x28] ss:$16 sps:$4 sm:$0xff]   ;;  %v7483_v47 = vld [vmem:[#allocation11 + $0x4c] ss:$16 sps:$4 sm:$0xff]  }
 0x58f   : > { %v3096_v54 = vmul.f32 %v7901_v49, %v3076_v51  ;;  %v7481_v49 = vld [vmem:[#allocation11 + $0x48] ss:$16 sps:$4 sm:$0xff]   ;;  %v7489_v51 = vld [vmem:[#allocation11 + $0x6c] ss:$16 sps:$4 sm:$0xff]  }
 0x590   : > { %v7903_v10 = vpop.eup %7902 }
 0x591   : > { %v3340_v56 = vpop.f32.mrb[24].mxu0  ;;  %v3381_v57 = vpop.f32.mrb[24].mxu1  ;;  %v3098_v58 = vadd.f32 %v3097_v48, %v3096_v54  ;;  %v7478_v48 = vld [vmem:[#allocation11 + $0x40] ss:$16 sps:$4 sm:$0xff]   ;;  %v7487_v54 = vld [vmem:[#allocation11 + $0x68] ss:$16 sps:$4 sm:$0xff]  }
 0x592   : > { %v3388_v59 = vadd.f32 %v6419_v53, %v3340_v56  ;;  %v3342_v60 = vpop.f32.mrb[25].mxu0  ;;  %v3383_v61 = vpop.f32.mrb[25].mxu1  ;;  %v3390_v8 = vadd.f32 %v6421_v6, %v3381_v57  ;;  %v7484_v53 = vld [vmem:[#allocation11 + $0x60] ss:$16 sps:$4 sm:$0xff]   ;;  %v7495_v56 = vld [vmem:[#allocation11 + $0x8c] ss:$16 sps:$4 sm:$0xff]  }
 0x593   : > { %v3389_v62 = vadd.f32 %v6420_v55, %v3342_v60  ;;  %v3344_v63 = vpop.f32.mrb[26].mxu0  ;;  %v3385_v0 = vpop.f32.mrb[26].mxu1  ;;  %3102 = vst [vmem:[#allocation8] sm:$0xff] %v3098_v58  ;;  %7904 = vtanh.f32 %v3098_v58  ;;  %v3391_v11 = vadd.f32 %v6422_v9, %v3383_v61  ;;  %v7492_v55 = vld [vmem:[#allocation11 + $0x84] ss:$16 sps:$4 sm:$0xff]  }
 0x594   : > { %v6455_v1 = vmul.f32 -1.442695, %v3388_v59  ;;  %v3345_v2 = vpop.f32.mrb[27].mxu0  ;;  %v3386_v4 = vpop.f32.mrb[27].mxu1  ;;  %v6457_v13 = vmul.f32 -1.442695, %v3390_v8 }
 0x595   : > { %v6456_v5 = vmul.f32 -1.442695, %v3389_v62  ;;  %v7490_v57 = vld [vmem:[#allocation11 + $0x80] ss:$16 sps:$4 sm:$0xff]   ;;  %v7493_v58 = vld [vmem:[#allocation11 + $0x88] ss:$16 sps:$4 sm:$0xff]  }
 0x596   : > { %7906 = vpow2.f32 %v6455_v1  ;;  %v7498_v59 = vld [vmem:[#allocation11 + $0xa4] ss:$16 sps:$4 sm:$0xff]   ;;  %v7501_v60 = vld [vmem:[#allocation11 + $0xac] ss:$16 sps:$4 sm:$0xff]   ;;  %v7496_v61 = vld [vmem:[#allocation11 + $0xa0] ss:$16 sps:$4 sm:$0xff]  }
 0x597   : > { %7908 = vpow2.f32 %v6456_v5  ;;  %v7499_v62 = vld [vmem:[#allocation11 + $0xa8] ss:$16 sps:$4 sm:$0xff]   ;;  %v7504_v63 = vld [vmem:[#allocation11 + $0xc4] ss:$16 sps:$4 sm:$0xff]   ;;  %v7507_v0 = vld [vmem:[#allocation11 + $0xcc] ss:$16 sps:$4 sm:$0xff]  }
 0x598   : > { %7910 = vtanh.f32 %v3391_v11  ;;  %v7502_v1 = vld [vmem:[#allocation11 + $0xc0] ss:$16 sps:$4 sm:$0xff]   ;;  %v7505_v2 = vld [vmem:[#allocation11 + $0xc8] ss:$16 sps:$4 sm:$0xff]   ;;  %v7510_v4 = vld [vmem:[#allocation11 + $0xe4] ss:$16 sps:$4 sm:$0xff]  }
 0x599   : > { %7912 = vpow2.f32 %v6457_v13  ;;  %v7513_v5 = vld [vmem:[#allocation11 + $0xec] ss:$16 sps:$4 sm:$0xff]   ;;  %v7508_v6 = vld [vmem:[#allocation11 + $0xe0] ss:$16 sps:$4 sm:$0xff]   ;;  %v7516_v8 = vld [vmem:[#allocation11 + $0x104] ss:$16 sps:$4 sm:$0xff]  }
 0x59a   : > { %v7519_v9 = vld [vmem:[#allocation11 + $0x10c] ss:$16 sps:$4 sm:$0xff]   ;;  %v7517_v11 = vld [vmem:[#allocation11 + $0x108] ss:$16 sps:$4 sm:$0xff]  }
 0x59b   : > { %v7525_v13 = vld [vmem:[#allocation11 + $0x12c] ss:$16 sps:$4 sm:$0xff]  }
 0x59d   : > { %v7905_v12 = vpop.eup %7904 }
 0x59e   : > { %v3100_v16 = vmul.f32 %v7905_v12, %v7903_v10  ;;  %v7514_v10 = vld [vmem:[#allocation11 + $0x100] ss:$16 sps:$4 sm:$0xff]   ;;  %v7522_v12 = vld [vmem:[#allocation11 + $0x124] ss:$16 sps:$4 sm:$0xff]  }
 0x5a0   : > { %v7907_v17 = vpop.eup %7906  ;;  %v8608_v19 = vmul.f32 %v5825_v14, %v3100_v16  ;;  %v3939_v15 = vpack.c.bf16 %v3100_v16, %v3100_v16  ;;  %v7520_v14 = vld [vmem:[#allocation11 + $0x120] ss:$16 sps:$4 sm:$0xff]   ;;  %v7523_v16 = vld [vmem:[#allocation11 + $0x128] ss:$16 sps:$4 sm:$0xff]  }
 0x5a1   : > { %v3402_v18 = vadd.f32 1.0, %v7907_v17  ;;  %v7909_v20 = vpop.eup %7908  ;;  %v7528_v17 = vld [vmem:[#allocation11 + $0x144] ss:$16 sps:$4 sm:$0xff]  }
 0x5a2   : > { %v3403_v22 = vadd.f32 1.0, %v7909_v20  ;;  %v5841_v24 = vpack.c.bf16 %v8608_v19, %v8606_v52  ;;  %v7911_v25 = vpop.eup %7910  ;;  %v7526_v20 = vld [vmem:[#allocation11 + $0x140] ss:$16 sps:$4 sm:$0xff]   ;;  %v7805_v52 = vld [vmem:[%s8809_s7 + $0x18] sm:$0xff]  }
 0x5a3   : > { %7914 = vrcp.f32 %v3402_v18  ;;  %v7913_v26 = vpop.eup %7912  ;;  %v7531_v18 = vld [vmem:[#allocation11 + $0x14c] ss:$16 sps:$4 sm:$0xff]   ;;  %v7806_v19 = vld [vmem:[%s8809_s7 + $0x20] sm:$0xff]  }
 0x5a4   : > { %7916 = vrcp.f32 %v3403_v22  ;;  %v3404_v31 = vadd.f32 1.0, %v7913_v26  ;;  %v7529_v22 = vld [vmem:[#allocation11 + $0x148] ss:$16 sps:$4 sm:$0xff]   ;;  %v7537_v26 = vld [vmem:[#allocation11 + $0x16c] ss:$16 sps:$4 sm:$0xff]  }
 0x5a6   : > { %7918 = vrcp.f32 %v3404_v31  ;;  %v7543_v31 = vld [vmem:[#allocation11 + $0x18c] ss:$16 sps:$4 sm:$0xff]  }
 0x5ad   : > { %v7915_v27 = vpop.eup %7914 }
 0x5ae   : > { %v3413_v28 = vmul.f32 %v7915_v27, %v7911_v25  ;;  %v7917_v30 = vpop.eup %7916  ;;  %v7534_v25 = vld [vmem:[#allocation11 + $0x164] ss:$16 sps:$4 sm:$0xff]   ;;  %v7532_v27 = vld [vmem:[#allocation11 + $0x160] ss:$16 sps:$4 sm:$0xff]  }
 0x5af   : > { %v3412_v32 = vmul.f32 %v7917_v30, %v3392_v35  ;;  %v7540_v30 = vld [vmem:[#allocation11 + $0x184] ss:$16 sps:$4 sm:$0xff]   ;;  %v7538_v35 = vld [vmem:[#allocation11 + $0x180] ss:$16 sps:$4 sm:$0xff]  }
 0x5b0   : > { %v7919_v34 = vpop.eup %7918 }
 0x5b1   : > { %v3414_v33 = vadd.f32 %v3413_v28, %v3412_v32  ;;  %v7535_v28 = vld [vmem:[#allocation11 + $0x168] ss:$16 sps:$4 sm:$0xff]  }
 0x5b2   : > { %v7541_v32 = vld [vmem:[#allocation11 + $0x188] ss:$16 sps:$4 sm:$0xff]  }
 0x5b3   : > { %7920 = vtanh.f32 %v3414_v33  ;;  %3418 = vst [vmem:[#allocation4] sm:$0xff] %v3414_v33  ;;  %v7544_v33 = vld [vmem:[#allocation11 + $0x1a0] ss:$16 sps:$4 sm:$0xff]  }
 0x5bd   : > { %v7921_v36 = vpop.eup %7920 }
 0x5be   : > { %v3416_v37 = vmul.f32 %v7921_v36, %v7919_v34  ;;  %v7546_v34 = vld [vmem:[#allocation11 + $0x1a4] ss:$16 sps:$4 sm:$0xff]   ;;  %v7547_v36 = vld [vmem:[#allocation11 + $0x1a8] ss:$16 sps:$4 sm:$0xff]  }
 0x5c0   : > { %v8612_v38 = vpack.c.bf16 %v3416_v37, %v3416_v37  ;;  %v7549_v37 = vld [vmem:[#allocation11 + $0x1ac] ss:$16 sps:$4 sm:$0xff]  }
 0x5c2   : > { %3861 = vmatmul.mubr.bf16.vlgmr.msra.gmra.mrb[28].mxu0 %v8612_v38  ;;  %3902 = vmatmul.mubr.bf16.vlgmr.msra.gmra.mrb[28].mxu1 %v8612_v38 }
 0x5c3   : > { %4378 = vmatprep.mubr.bf16.mxu0 %v3939_v15  ;;  %4419 = vmatprep.mubr.bf16.mxu1 %v3939_v15  ;;  %v7550_v15 = vld [vmem:[#allocation11 + $0x1c0] ss:$16 sps:$4 sm:$0xff]  }
 0x5c4   : > { %4347 = vmatpush1.bf16.msra.mxu0 %v7466_v40  ;;  %4388 = vmatpush1.bf16.msra.mxu1 %v7469_v41  ;;  %v7552_v40 = vld [vmem:[#allocation11 + $0x1c4] ss:$16 sps:$4 sm:$0xff]   ;;  %v7555_v41 = vld [vmem:[#allocation11 + $0x1cc] ss:$16 sps:$4 sm:$0xff]  }
 0x5c5   : > { %4348 = vmatprep.subr.bf16.mxu0 %v7474_v42  ;;  %4389 = vmatprep.subr.bf16.mxu1 %v7477_v43  ;;  %v7553_v42 = vld [vmem:[#allocation11 + $0x1c8] ss:$16 sps:$4 sm:$0xff]   ;;  %v7558_v43 = vld [vmem:[#allocation11 + $0x1e4] ss:$16 sps:$4 sm:$0xff]  }
 0x5c8   : > { %4349 = vmatpush1.bf16.msra.mxu0 %v7472_v44  ;;  %4390 = vmatpush1.bf16.msra.mxu1 %v7475_v45  ;;  %v7561_v44 = vld [vmem:[#allocation11 + $0x1ec] ss:$16 sps:$4 sm:$0xff]   ;;  %v7556_v45 = vld [vmem:[#allocation11 + $0x1e0] ss:$16 sps:$4 sm:$0xff]  }
 0x5c9   : > { %4350 = vmatprep.subr.bf16.mxu0 %v7480_v46  ;;  %4391 = vmatprep.subr.bf16.mxu1 %v7483_v47  ;;  %v7559_v46 = vld [vmem:[#allocation11 + $0x1e8] ss:$16 sps:$4 sm:$0xff]   ;;  %v7564_v47 = vld [vmem:[%s8804_s2 + $0x4] ss:$16 sps:$4 sm:$0xff]  }
 0x5cc   : > { %4351 = vmatpush1.bf16.msra.mxu0 %v7478_v48  ;;  %4392 = vmatpush1.bf16.msra.mxu1 %v7481_v49  ;;  %v7567_v48 = vld [vmem:[%s8804_s2 + $0xc] ss:$16 sps:$4 sm:$0xff]   ;;  %v5815_v49 = vld [vmem:[%s8222_s28 + $0x10] sm:$0xff] }
 0x5cd   : > { %4352 = vmatprep.subr.bf16.mxu0 %v7486_v50  ;;  %4393 = vmatprep.subr.bf16.mxu1 %v7489_v51  ;;  %v3486_v50 = vld [vmem:[%s8806_s4] sm:$0xf] }
 0x5ce   : > { %5829 = vperm.xlu1 %6841, %v5815_v49   ;;  %v3491_v51 = vrot.slane %v3486_v50, %v8346_v21  ;;  %v7594_v49 = vld [vmem:[%s8804_s2 + $0xa4] ss:$16 sps:$4 sm:$0xff]  }
 0x5d0   : > { %4353 = vmatpush1.bf16.msra.mxu0 %v7484_v53  ;;  %4394 = vmatpush1.bf16.msra.mxu1 %v7487_v54  ;;  %v3495_v53 = vrot.slane %v3486_v50, %v8351_v23 }
 0x5d1   : > { %4354 = vmatprep.subr.bf16.mxu0 %v7492_v55  ;;  %4395 = vmatprep.subr.bf16.mxu1 %v7495_v56 }
 0x5d4   : > { %4355 = vmatpush1.bf16.msra.mxu0 %v7490_v57  ;;  %4396 = vmatpush1.bf16.msra.mxu1 %v7493_v58 }
 0x5d5   : > { %4356 = vmatprep.subr.bf16.mxu0 %v7498_v59  ;;  %4397 = vmatprep.subr.bf16.mxu1 %v7501_v60 }
 0x5d8   : > { %4357 = vmatpush1.bf16.msra.mxu0 %v7496_v61  ;;  %4398 = vmatpush1.bf16.msra.mxu1 %v7499_v62 }
 0x5d9   : > { %4358 = vmatprep.subr.bf16.mxu0 %v7504_v63  ;;  %4399 = vmatprep.subr.bf16.mxu1 %v7507_v0 }
 0x5dc   : > { %4359 = vmatpush1.bf16.msra.mxu0 %v7502_v1  ;;  %4400 = vmatpush1.bf16.msra.mxu1 %v7505_v2  ;;  %v3499_v2 = vrot.slane %v3486_v50, %v8355_v29 }
 0x5dd   : > { %4360 = vmatprep.subr.bf16.mxu0 %v7510_v4  ;;  %4401 = vmatprep.subr.bf16.mxu1 %v7513_v5  ;;  %v3503_v4 = vrot.slane %v3486_v50, %v8357_v39  ;;  %v7597_v50 = vld [vmem:[%s8804_s2 + $0xac] ss:$16 sps:$4 sm:$0xff]  }
 0x5e0   : > { %4361 = vmatpush1.bf16.msra.mxu0 %v7508_v6  ;;  %4402 = vmatpush1.bf16.msra.mxu1 %v7511_v7 }
 0x5e1   : > { %4362 = vmatprep.subr.bf16.mxu0 %v7516_v8  ;;  %4403 = vmatprep.subr.bf16.mxu1 %v7519_v9 }
 0x5e4   : > { %4363 = vmatpush1.bf16.msra.mxu0 %v7514_v10  ;;  %4404 = vmatpush1.bf16.msra.mxu1 %v7517_v11 }
 0x5e5   : > { %4364 = vmatprep.subr.bf16.mxu0 %v7522_v12  ;;  %4405 = vmatprep.subr.bf16.mxu1 %v7525_v13 }
 0x5e8   : > { %4365 = vmatpush1.bf16.msra.mxu0 %v7520_v14  ;;  %4406 = vmatpush1.bf16.msra.mxu1 %v7523_v16 }
 0x5e9   : > { %4366 = vmatprep.subr.bf16.mxu0 %v7528_v17  ;;  %4407 = vmatprep.subr.bf16.mxu1 %v7531_v18 }
 0x5ec   : > { %4367 = vmatpush1.bf16.msra.mxu0 %v7526_v20  ;;  %4408 = vmatpush1.bf16.msra.mxu1 %v7529_v22  ;;  %v3910_v20 = vld [vmem:[#allocation6] sm:$0xff] }
 0x5ed   : > { %4368 = vmatprep.subr.bf16.mxu0 %v7534_v25  ;;  %4409 = vmatprep.subr.bf16.mxu1 %v7537_v26 }
 0x5f0   : > { %4369 = vmatpush1.bf16.msra.mxu0 %v7532_v27  ;;  %4410 = vmatpush1.bf16.msra.mxu1 %v7535_v28 }
 0x5f1   : > { %4370 = vmatprep.subr.bf16.mxu0 %v7540_v30  ;;  %4411 = vmatprep.subr.bf16.mxu1 %v7543_v31  ;;  %v7562_v30 = vld [vmem:[%s8804_s2] ss:$16 sps:$4 sm:$0xff]   ;;  %v7565_v31 = vld [vmem:[%s8804_s2 + $0x8] ss:$16 sps:$4 sm:$0xff]  }
 0x5f4   : > { %4371 = vmatpush1.bf16.msra.mxu0 %v7538_v35  ;;  %4412 = vmatpush1.bf16.msra.mxu1 %v7541_v32  ;;  %v7570_v32 = vld [vmem:[%s8804_s2 + $0x24] ss:$16 sps:$4 sm:$0xff]  }
 0x5f5   : > { %4372 = vmatprep.subr.bf16.mxu0 %v7546_v34  ;;  %4413 = vmatprep.subr.bf16.mxu1 %v7549_v37  ;;  %v7568_v34 = vld [vmem:[%s8804_s2 + $0x20] ss:$16 sps:$4 sm:$0xff]   ;;  %v7576_v37 = vld [vmem:[%s8804_s2 + $0x44] ss:$16 sps:$4 sm:$0xff]  }
 0x5f8   : > { %4373 = vmatpush1.bf16.msra.mxu0 %v7544_v33  ;;  %4414 = vmatpush1.bf16.msra.mxu1 %v7547_v36  ;;  %v7573_v33 = vld [vmem:[%s8804_s2 + $0x2c] ss:$16 sps:$4 sm:$0xff]   ;;  %v7571_v36 = vld [vmem:[%s8804_s2 + $0x28] ss:$16 sps:$4 sm:$0xff]  }
 0x5f9   : > { %4374 = vmatprep.subr.bf16.mxu0 %v7552_v40  ;;  %4415 = vmatprep.subr.bf16.mxu1 %v7555_v41  ;;  %v7579_v40 = vld [vmem:[%s8804_s2 + $0x4c] ss:$16 sps:$4 sm:$0xff]   ;;  %v7574_v41 = vld [vmem:[%s8804_s2 + $0x40] ss:$16 sps:$4 sm:$0xff]  }
 0x5fc   : > { %4375 = vmatpush1.bf16.msra.mxu0 %v7550_v15  ;;  %4416 = vmatpush1.bf16.msra.mxu1 %v7553_v42  ;;  %v7577_v15 = vld [vmem:[%s8804_s2 + $0x48] ss:$16 sps:$4 sm:$0xff]   ;;  %v7582_v42 = vld [vmem:[%s8804_s2 + $0x64] ss:$16 sps:$4 sm:$0xff]  }
 0x5fd   : > { %4376 = vmatprep.subr.bf16.mxu0 %v7558_v43  ;;  %4417 = vmatprep.subr.bf16.mxu1 %v7561_v44  ;;  %v7580_v43 = vld [vmem:[%s8804_s2 + $0x60] ss:$16 sps:$4 sm:$0xff]   ;;  %v7583_v44 = vld [vmem:[%s8804_s2 + $0x68] ss:$16 sps:$4 sm:$0xff]  }
 0x600   : > { %4377 = vmatpush1.bf16.msra.mxu0 %v7556_v45  ;;  %4418 = vmatpush1.bf16.msra.mxu1 %v7559_v46  ;;  %v7588_v45 = vld [vmem:[%s8804_s2 + $0x84] ss:$16 sps:$4 sm:$0xff]   ;;  %v7591_v46 = vld [vmem:[%s8804_s2 + $0x8c] ss:$16 sps:$4 sm:$0xff]  }
 0x601   : > { %4658 = vmatprep.subr.bf16.mxu0 %v7564_v47  ;;  %4699 = vmatprep.subr.bf16.mxu1 %v7567_v48  ;;  %v7586_v47 = vld [vmem:[%s8804_s2 + $0x80] ss:$16 sps:$4 sm:$0xff]   ;;  %v7589_v48 = vld [vmem:[%s8804_s2 + $0x88] ss:$16 sps:$4 sm:$0xff]  }
 0x695   : > { %v3862_v54 = vpop.f32.mrb[28].mxu0  ;;  %v3903_v55 = vpop.f32.mrb[28].mxu1 }
 0x696   : > { %v3863_v56 = vadd.f32 %v3862_v54, %v3491_v51  ;;  %v3864_v57 = vpop.f32.mrb[29].mxu0  ;;  %v3905_v58 = vpop.f32.mrb[29].mxu1  ;;  %v3904_v5 = vadd.f32 %v3903_v55, %v3499_v2  ;;  %v7592_v51 = vld [vmem:[%s8804_s2 + $0xa0] ss:$16 sps:$4 sm:$0xff]   ;;  %v7600_v54 = vld [vmem:[%s8804_s2 + $0xc4] ss:$16 sps:$4 sm:$0xff]  }
 0x697   : > { %v3865_v59 = vadd.f32 %v3864_v57, %v3495_v53  ;;  %v3866_v60 = vpop.f32.mrb[30].mxu0  ;;  %v3907_v61 = vpop.f32.mrb[30].mxu1  ;;  %v3906_v6 = vadd.f32 %v3905_v58, %v3503_v4  ;;  %v7595_v53 = vld [vmem:[%s8804_s2 + $0xa8] ss:$16 sps:$4 sm:$0xff]   ;;  %v7603_v55 = vld [vmem:[%s8804_s2 + $0xcc] ss:$16 sps:$4 sm:$0xff]  }
 0x698   : > { %v6522_v62 = vmul.f32 -1.442695, %v3863_v56  ;;  %v3867_v63 = vpop.f32.mrb[31].mxu0  ;;  %v3908_v0 = vpop.f32.mrb[31].mxu1  ;;  %v6524_v7 = vmul.f32 -1.442695, %v3904_v5 }
 0x699   : > { %v6523_v1 = vmul.f32 -1.442695, %v3865_v59  ;;  %v7598_v56 = vld [vmem:[%s8804_s2 + $0xc0] ss:$16 sps:$4 sm:$0xff]   ;;  %v7601_v57 = vld [vmem:[%s8804_s2 + $0xc8] ss:$16 sps:$4 sm:$0xff]  }
 0x69a   : > { %7922 = vpow2.f32 %v6522_v62  ;;  %v7606_v58 = vld [vmem:[%s8804_s2 + $0xe4] ss:$16 sps:$4 sm:$0xff]   ;;  %v7609_v59 = vld [vmem:[%s8804_s2 + $0xec] ss:$16 sps:$4 sm:$0xff]   ;;  %v7604_v60 = vld [vmem:[%s8804_s2 + $0xe0] ss:$16 sps:$4 sm:$0xff]  }
 0x69b   : > { %7924 = vpow2.f32 %v6523_v1  ;;  %v7607_v61 = vld [vmem:[%s8804_s2 + $0xe8] ss:$16 sps:$4 sm:$0xff]   ;;  %v7612_v62 = vld [vmem:[#allocation9 + $0x4] ss:$16 sps:$4 sm:$0xff]   ;;  %v7615_v63 = vld [vmem:[#allocation9 + $0xc] ss:$16 sps:$4 sm:$0xff]  }
 0x69c   : > { %7926 = vtanh.f32 %v3906_v6  ;;  %v7610_v0 = vld [vmem:[#allocation9] ss:$16 sps:$4 sm:$0xff]   ;;  %v7613_v1 = vld [vmem:[#allocation9 + $0x8] ss:$16 sps:$4 sm:$0xff]   ;;  %v7618_v2 = vld [vmem:[#allocation9 + $0x24] ss:$16 sps:$4 sm:$0xff]  }
 0x69d   : > { %7928 = vpow2.f32 %v6524_v7  ;;  %v7621_v4 = vld [vmem:[#allocation9 + $0x2c] ss:$16 sps:$4 sm:$0xff]   ;;  %v7616_v5 = vld [vmem:[#allocation9 + $0x20] ss:$16 sps:$4 sm:$0xff]   ;;  %v7619_v6 = vld [vmem:[#allocation9 + $0x28] ss:$16 sps:$4 sm:$0xff]  }
 0x69e   : > { %v7627_v7 = vld [vmem:[#allocation9 + $0x4c] ss:$16 sps:$4 sm:$0xff]  }
 0x6a4   : > { %v7923_v8 = vpop.eup %7922 }
 0x6a5   : > { %v3920_v9 = vadd.f32 1.0, %v7923_v8  ;;  %v7925_v10 = vpop.eup %7924  ;;  %v7622_v8 = vld [vmem:[#allocation9 + $0x40] ss:$16 sps:$4 sm:$0xff]  }
 0x6a6   : > { %v3921_v11 = vadd.f32 1.0, %v7925_v10  ;;  %v7927_v12 = vpop.eup %7926  ;;  %v7630_v10 = vld [vmem:[#allocation9 + $0x64] ss:$16 sps:$4 sm:$0xff]  }
 0x6a7   : > { %7930 = vrcp.f32 %v3920_v9  ;;  %v7929_v13 = vpop.eup %7928  ;;  %v7625_v9 = vld [vmem:[#allocation9 + $0x48] ss:$16 sps:$4 sm:$0xff]  }
 0x6a8   : > { %7932 = vrcp.f32 %v3921_v11  ;;  %v3922_v18 = vadd.f32 1.0, %v7929_v13  ;;  %v7633_v11 = vld [vmem:[#allocation9 + $0x6c] ss:$16 sps:$4 sm:$0xff]   ;;  %v7631_v13 = vld [vmem:[#allocation9 + $0x68] ss:$16 sps:$4 sm:$0xff]  }
 0x6aa   : > { %7934 = vrcp.f32 %v3922_v18  ;;  %v7639_v18 = vld [vmem:[#allocation9 + $0x8c] ss:$16 sps:$4 sm:$0xff]  }
 0x6b1   : > { %v7931_v14 = vpop.eup %7930 }
 0x6b2   : > { %v3931_v16 = vmul.f32 %v7931_v14, %v7927_v12  ;;  %v7933_v17 = vpop.eup %7932  ;;  %v7628_v12 = vld [vmem:[#allocation9 + $0x60] ss:$16 sps:$4 sm:$0xff]   ;;  %v7636_v14 = vld [vmem:[#allocation9 + $0x84] ss:$16 sps:$4 sm:$0xff]  }
 0x6b3   : > { %v3930_v22 = vmul.f32 %v7933_v17, %v3910_v20  ;;  %v7637_v17 = vld [vmem:[#allocation9 + $0x88] ss:$16 sps:$4 sm:$0xff]   ;;  %v7642_v20 = vld [vmem:[#allocation9 + $0xa4] ss:$16 sps:$4 sm:$0xff]  }
 0x6b4   : > { %v7935_v26 = vpop.eup %7934 }
 0x6b5   : > { %v3932_v25 = vadd.f32 %v3931_v16, %v3930_v22  ;;  %v7634_v16 = vld [vmem:[#allocation9 + $0x80] ss:$16 sps:$4 sm:$0xff]   ;;  %v7645_v22 = vld [vmem:[#allocation9 + $0xac] ss:$16 sps:$4 sm:$0xff]  }
 0x6b7   : > { %7936 = vtanh.f32 %v3932_v25  ;;  %3936 = vst [vmem:[#allocation6] sm:$0xff] %v3932_v25  ;;  %v7640_v25 = vld [vmem:[#allocation9 + $0xa0] ss:$16 sps:$4 sm:$0xff]  }
 0x6c1   : > { %v7937_v27 = vpop.eup %7936 }
 0x6c2   : > { %v3934_v28 = vmul.f32 %v7937_v27, %v7935_v26  ;;  %v7643_v26 = vld [vmem:[#allocation9 + $0xa8] ss:$16 sps:$4 sm:$0xff]   ;;  %v7648_v27 = vld [vmem:[#allocation9 + $0xc4] ss:$16 sps:$4 sm:$0xff]  }
 0x6c4   : > { %v8636_v35 = vpack.c.bf16 %v3934_v28, %v3934_v28  ;;  %v7651_v28 = vld [vmem:[#allocation9 + $0xcc] ss:$16 sps:$4 sm:$0xff]  }
 0x6c6   : > { %4379 = vmatmul.mubr.bf16.vlgmr.msra.gmra.mrb[32].mxu0 %v8636_v35  ;;  %4420 = vmatmul.mubr.bf16.vlgmr.msra.gmra.mrb[32].mxu1 %v8636_v35 }
 0x6c7   : > { %4659 = vmatpush1.bf16.msra.mxu0 %v7562_v30  ;;  %4700 = vmatpush1.bf16.msra.mxu1 %v7565_v31  ;;  %v7646_v30 = vld [vmem:[#allocation9 + $0xc0] ss:$16 sps:$4 sm:$0xff]   ;;  %v7649_v31 = vld [vmem:[#allocation9 + $0xc8] ss:$16 sps:$4 sm:$0xff]  }
 0x6c8   : > { %4660 = vmatprep.subr.bf16.mxu0 %v7570_v32  ;;  %4701 = vmatprep.subr.bf16.mxu1 %v7573_v33  ;;  %v7657_v32 = vld [vmem:[#allocation9 + $0xec] ss:$16 sps:$4 sm:$0xff]   ;;  %v7652_v33 = vld [vmem:[#allocation9 + $0xe0] ss:$16 sps:$4 sm:$0xff]  }
 0x6c9   : > { %4690 = vmatprep.mubr.bf16.mxu0 %v8079_v3  ;;  %4731 = vmatprep.mubr.bf16.mxu1 %v8079_v3  ;;  %v7585_v3 = vld [vmem:[%s8804_s2 + $0x6c] ss:$16 sps:$4 sm:$0xff]  }
 0x6cb   : > { %4661 = vmatpush1.bf16.msra.mxu0 %v7568_v34  ;;  %4702 = vmatpush1.bf16.msra.mxu1 %v7571_v36  ;;  %v7655_v34 = vld [vmem:[#allocation9 + $0xe8] ss:$16 sps:$4 sm:$0xff]   ;;  %v7660_v36 = vld [vmem:[#allocation9 + $0x104] ss:$16 sps:$4 sm:$0xff]  }
 0x6cc   : > { %4662 = vmatprep.subr.bf16.mxu0 %v7576_v37  ;;  %4703 = vmatprep.subr.bf16.mxu1 %v7579_v40  ;;  %v7663_v37 = vld [vmem:[#allocation9 + $0x10c] ss:$16 sps:$4 sm:$0xff]   ;;  %v7658_v40 = vld [vmem:[#allocation9 + $0x100] ss:$16 sps:$4 sm:$0xff]  }
 0x6cf   : > { %4663 = vmatpush1.bf16.msra.mxu0 %v7574_v41  ;;  %4704 = vmatpush1.bf16.msra.mxu1 %v7577_v15  ;;  %v7661_v41 = vld [vmem:[#allocation9 + $0x108] ss:$16 sps:$4 sm:$0xff]   ;;  %v7666_v15 = vld [vmem:[#allocation9 + $0x124] ss:$16 sps:$4 sm:$0xff]  }
 0x6d0   : > { %4664 = vmatprep.subr.bf16.mxu0 %v7582_v42  ;;  %4705 = vmatprep.subr.bf16.mxu1 %v7585_v3  ;;  %v7669_v42 = vld [vmem:[#allocation9 + $0x12c] ss:$16 sps:$4 sm:$0xff]   ;;  %v7664_v3 = vld [vmem:[#allocation9 + $0x120] ss:$16 sps:$4 sm:$0xff]  }
 0x6d3   : > { %4665 = vmatpush1.bf16.msra.mxu0 %v7580_v43  ;;  %4706 = vmatpush1.bf16.msra.mxu1 %v7583_v44  ;;  %v7667_v43 = vld [vmem:[#allocation9 + $0x128] ss:$16 sps:$4 sm:$0xff]   ;;  %v7672_v44 = vld [vmem:[#allocation9 + $0x144] ss:$16 sps:$4 sm:$0xff]  }
 0x6d4   : > { %4666 = vmatprep.subr.bf16.mxu0 %v7588_v45  ;;  %4707 = vmatprep.subr.bf16.mxu1 %v7591_v46  ;;  %v7675_v45 = vld [vmem:[#allocation9 + $0x14c] ss:$16 sps:$4 sm:$0xff]   ;;  %v7670_v46 = vld [vmem:[#allocation9 + $0x140] ss:$16 sps:$4 sm:$0xff]  }
 0x6d7   : > { %4667 = vmatpush1.bf16.msra.mxu0 %v7586_v47  ;;  %4708 = vmatpush1.bf16.msra.mxu1 %v7589_v48  ;;  %v7673_v47 = vld [vmem:[#allocation9 + $0x148] ss:$16 sps:$4 sm:$0xff]   ;;  %v7678_v48 = vld [vmem:[#allocation9 + $0x164] ss:$16 sps:$4 sm:$0xff]  }
 0x6d8   : > { %4668 = vmatprep.subr.bf16.mxu0 %v7594_v49  ;;  %4709 = vmatprep.subr.bf16.mxu1 %v7597_v50  ;;  %v7681_v49 = vld [vmem:[#allocation9 + $0x16c] ss:$16 sps:$4 sm:$0xff]   ;;  %v7676_v50 = vld [vmem:[#allocation9 + $0x160] ss:$16 sps:$4 sm:$0xff]  }
 0x6db   : > { %4669 = vmatpush1.bf16.msra.mxu0 %v7592_v51  ;;  %4710 = vmatpush1.bf16.msra.mxu1 %v7595_v53  ;;  %v7679_v51 = vld [vmem:[#allocation9 + $0x168] ss:$16 sps:$4 sm:$0xff]   ;;  %v7684_v53 = vld [vmem:[#allocation9 + $0x184] ss:$16 sps:$4 sm:$0xff]  }
 0x6dc   : > { %4670 = vmatprep.subr.bf16.mxu0 %v7600_v54  ;;  %4711 = vmatprep.subr.bf16.mxu1 %v7603_v55  ;;  %v7687_v54 = vld [vmem:[#allocation9 + $0x18c] ss:$16 sps:$4 sm:$0xff]   ;;  %v7682_v55 = vld [vmem:[#allocation9 + $0x180] ss:$16 sps:$4 sm:$0xff]  }
 0x6df   : > { %4671 = vmatpush1.bf16.msra.mxu0 %v7598_v56  ;;  %4712 = vmatpush1.bf16.msra.mxu1 %v7601_v57  ;;  %v7685_v56 = vld [vmem:[#allocation9 + $0x188] ss:$16 sps:$4 sm:$0xff]   ;;  %v7688_v57 = vld [vmem:[#allocation9 + $0x1a0] ss:$16 sps:$4 sm:$0xff]  }
 0x6e0   : > { %4672 = vmatprep.subr.bf16.mxu0 %v7606_v58  ;;  %4713 = vmatprep.subr.bf16.mxu1 %v7609_v59  ;;  %v7690_v58 = vld [vmem:[#allocation9 + $0x1a4] ss:$16 sps:$4 sm:$0xff]   ;;  %v7691_v59 = vld [vmem:[#allocation9 + $0x1a8] ss:$16 sps:$4 sm:$0xff]  }
 0x6e3   : > { %4673 = vmatpush1.bf16.msra.mxu0 %v7604_v60  ;;  %4714 = vmatpush1.bf16.msra.mxu1 %v7607_v61  ;;  %v7693_v60 = vld [vmem:[#allocation9 + $0x1ac] ss:$16 sps:$4 sm:$0xff]   ;;  %v7696_v61 = vld [vmem:[#allocation9 + $0x1c4] ss:$16 sps:$4 sm:$0xff]  }
 0x6e4   : > { %5180 = vmatprep.subr.bf16.mxu0 %v7612_v62  ;;  %5221 = vmatprep.subr.bf16.mxu1 %v7615_v63  ;;  %v7699_v62 = vld [vmem:[#allocation9 + $0x1cc] ss:$16 sps:$4 sm:$0xff]   ;;  %v7694_v63 = vld [vmem:[#allocation9 + $0x1c0] ss:$16 sps:$4 sm:$0xff]  }
 0x6e6   : > { %4691 = vmatmul.mubr.bf16.vlgmr.msra.gmra.mrb[36].mxu0 %v8612_v38  ;;  %4732 = vmatmul.mubr.bf16.vlgmr.msra.gmra.mrb[36].mxu1 %v8612_v38  ;;  %v7624_v38 = vld [vmem:[#allocation9 + $0x44] ss:$16 sps:$4 sm:$0xff]  }
 0x6e7   : > { %5212 = vmatprep.mubr.bf16.mxu0 %v8636_v35  ;;  %5253 = vmatprep.mubr.bf16.mxu1 %v8636_v35  ;;  %v7654_v35 = vld [vmem:[#allocation9 + $0xe4] ss:$16 sps:$4 sm:$0xff]  }
 0x6e8   : > { %5181 = vmatpush1.bf16.msra.mxu0 %v7610_v0  ;;  %5222 = vmatpush1.bf16.msra.mxu1 %v7613_v1  ;;  %v7697_v0 = vld [vmem:[#allocation9 + $0x1c8] ss:$16 sps:$4 sm:$0xff]   ;;  %v7702_v1 = vld [vmem:[#allocation9 + $0x1e4] ss:$16 sps:$4 sm:$0xff]  }
 0x6e9   : > { %5182 = vmatprep.subr.bf16.mxu0 %v7618_v2  ;;  %5223 = vmatprep.subr.bf16.mxu1 %v7621_v4  ;;  %v7705_v2 = vld [vmem:[#allocation9 + $0x1ec] ss:$16 sps:$4 sm:$0xff]   ;;  %v7700_v4 = vld [vmem:[#allocation9 + $0x1e0] ss:$16 sps:$4 sm:$0xff]  }
 0x6ec   : > { %5183 = vmatpush1.bf16.msra.mxu0 %v7616_v5  ;;  %5224 = vmatpush1.bf16.msra.mxu1 %v7619_v6  ;;  %v7703_v5 = vld [vmem:[#allocation9 + $0x1e8] ss:$16 sps:$4 sm:$0xff]   ;;  %v7708_v6 = vld [vmem:[#allocation11 + $0x4] ss:$16 sps:$4 sm:$0xff]  }
 0x6ed   : > { %5184 = vmatprep.subr.bf16.mxu0 %v7624_v38  ;;  %5225 = vmatprep.subr.bf16.mxu1 %v7627_v7  ;;  %v7711_v38 = vld [vmem:[#allocation11 + $0xc] ss:$16 sps:$4 sm:$0xff]   ;;  %v4004_v7 = vld [vmem:[%s8808_s6] sm:$0xf] }
 0x6f0   : > { %5185 = vmatpush1.bf16.msra.mxu0 %v7622_v8  ;;  %5226 = vmatpush1.bf16.msra.mxu1 %v7625_v9  ;;  %v4009_v8 = vrot.slane %v4004_v7, %v8346_v21  ;;  %v4013_v9 = vrot.slane %v4004_v7, %v8351_v23 }
 0x6f1   : > { %5186 = vmatprep.subr.bf16.mxu0 %v7630_v10  ;;  %5227 = vmatprep.subr.bf16.mxu1 %v7633_v11 }
 0x6f4   : > { %5187 = vmatpush1.bf16.msra.mxu0 %v7628_v12  ;;  %5228 = vmatpush1.bf16.msra.mxu1 %v7631_v13 }
 0x6f5   : > { %5188 = vmatprep.subr.bf16.mxu0 %v7636_v14  ;;  %5229 = vmatprep.subr.bf16.mxu1 %v7639_v18 }
 0x6f8   : > { %5189 = vmatpush1.bf16.msra.mxu0 %v7634_v16  ;;  %5230 = vmatpush1.bf16.msra.mxu1 %v7637_v17 }
 0x6f9   : > { %5190 = vmatprep.subr.bf16.mxu0 %v7642_v20  ;;  %5231 = vmatprep.subr.bf16.mxu1 %v7645_v22 }
 0x6fc   : > { %5191 = vmatpush1.bf16.msra.mxu0 %v7640_v25  ;;  %5232 = vmatpush1.bf16.msra.mxu1 %v7643_v26 }
 0x6fd   : > { %5192 = vmatprep.subr.bf16.mxu0 %v7648_v27  ;;  %5233 = vmatprep.subr.bf16.mxu1 %v7651_v28  ;;  %v4021_v27 = vrot.slane %v4004_v7, %v8357_v39 }
 0x700   : > { %5193 = vmatpush1.bf16.msra.mxu0 %v7646_v30  ;;  %5234 = vmatpush1.bf16.msra.mxu1 %v7649_v31 }
 0x701   : > { %5194 = vmatprep.subr.bf16.mxu0 %v7654_v35  ;;  %5235 = vmatprep.subr.bf16.mxu1 %v7657_v32 }
 0x704   : > { %5195 = vmatpush1.bf16.msra.mxu0 %v7652_v33  ;;  %5236 = vmatpush1.bf16.msra.mxu1 %v7655_v34 }
 0x705   : > { %5196 = vmatprep.subr.bf16.mxu0 %v7660_v36  ;;  %5237 = vmatprep.subr.bf16.mxu1 %v7663_v37 }
 0x708   : > { %5197 = vmatpush1.bf16.msra.mxu0 %v7658_v40  ;;  %5238 = vmatpush1.bf16.msra.mxu1 %v7661_v41  ;;  %v4428_v40 = vld [vmem:[#allocation8] sm:$0xff]  ;;  %v6592_v41 = vld [vmem:[%s8217_s25 + $0x60] sm:$0xff] }
 0x709   : > { %5198 = vmatprep.subr.bf16.mxu0 %v7666_v15  ;;  %5239 = vmatprep.subr.bf16.mxu1 %v7669_v42  ;;  %v6593_v42 = vld [vmem:[%s8217_s25 + $0x68] sm:$0xff] }
 0x70c   : > { %5199 = vmatpush1.bf16.msra.mxu0 %v7664_v3  ;;  %5240 = vmatpush1.bf16.msra.mxu1 %v7667_v43 }
 0x70d   : > { %5200 = vmatprep.subr.bf16.mxu0 %v7672_v44  ;;  %5241 = vmatprep.subr.bf16.mxu1 %v7675_v45 }
 0x710   : > { %5201 = vmatpush1.bf16.msra.mxu0 %v7670_v46  ;;  %5242 = vmatpush1.bf16.msra.mxu1 %v7673_v47 }
 0x711   : > { %5202 = vmatprep.subr.bf16.mxu0 %v7678_v48  ;;  %5243 = vmatprep.subr.bf16.mxu1 %v7681_v49 }
 0x714   : > { %5203 = vmatpush1.bf16.msra.mxu0 %v7676_v50  ;;  %5244 = vmatpush1.bf16.msra.mxu1 %v7679_v51  ;;  %v4017_v51 = vrot.slane %v4004_v7, %v8355_v29 }
 0x715   : > { %5204 = vmatprep.subr.bf16.mxu0 %v7684_v53  ;;  %5245 = vmatprep.subr.bf16.mxu1 %v7687_v54 }
 0x718   : > { %5205 = vmatpush1.bf16.msra.mxu0 %v7682_v55  ;;  %5246 = vmatpush1.bf16.msra.mxu1 %v7685_v56 }
 0x719   : > { %5206 = vmatprep.subr.bf16.mxu0 %v7690_v58  ;;  %5247 = vmatprep.subr.bf16.mxu1 %v7693_v60  ;;  %v6595_v60 = vld [vmem:[%s8217_s25 + $0x78] sm:$0xff] }
 0x71c   : > { %5207 = vmatpush1.bf16.msra.mxu0 %v7688_v57  ;;  %5248 = vmatpush1.bf16.msra.mxu1 %v7691_v59  ;;  %v6594_v57 = vld [vmem:[%s8217_s25 + $0x70] sm:$0xff] }
 0x71d   : > { %5208 = vmatprep.subr.bf16.mxu0 %v7696_v61  ;;  %5249 = vmatprep.subr.bf16.mxu1 %v7699_v62 }
 0x720   : > { %5209 = vmatpush1.bf16.msra.mxu0 %v7694_v63  ;;  %5250 = vmatpush1.bf16.msra.mxu1 %v7697_v0 }
 0x721   : > { %5210 = vmatprep.subr.bf16.mxu0 %v7702_v1  ;;  %5251 = vmatprep.subr.bf16.mxu1 %v7705_v2 }
 0x724   : > { %5211 = vmatpush1.bf16.msra.mxu0 %v7700_v4  ;;  %5252 = vmatpush1.bf16.msra.mxu1 %v7703_v5 }
 0x725   : > { %5698 = vmatprep.subr.bf16.mxu0 %v7708_v6  ;;  %5739 = vmatprep.subr.bf16.mxu1 %v7711_v38 }
 0x799   : > { %v4380_v10 = vpop.f32.mrb[32].mxu0  ;;  %v4421_v11 = vpop.f32.mrb[32].mxu1 }
 0x79a   : > { %v4381_v12 = vadd.f32 %v4380_v10, %v4009_v8  ;;  %v4382_v13 = vpop.f32.mrb[33].mxu0  ;;  %v4423_v14 = vpop.f32.mrb[33].mxu1  ;;  %v4422_v58 = vadd.f32 %v4421_v11, %v4017_v51  ;;  %v7739_v51 = vld [vmem:[#allocation11 + $0xa8] ss:$16 sps:$4 sm:$0xff]  }
 0x79b   : > { %v4383_v16 = vadd.f32 %v4382_v13, %v4013_v9  ;;  %v4384_v17 = vpop.f32.mrb[34].mxu0  ;;  %v4425_v18 = vpop.f32.mrb[34].mxu1  ;;  %v4424_v28 = vadd.f32 %v4423_v14, %v4021_v27  ;;  %v7706_v27 = vld [vmem:[#allocation11] ss:$16 sps:$4 sm:$0xff]  }
 0x79c   : > { %v6589_v20 = vmul.f32 -1.442695, %v4381_v12  ;;  %v4385_v22 = vpop.f32.mrb[35].mxu0  ;;  %v4426_v25 = vpop.f32.mrb[35].mxu1  ;;  %v6591_v61 = vmul.f32 -1.442695, %v4422_v58 }
 0x79d   : > { %v6590_v26 = vmul.f32 -1.442695, %v4383_v16  ;;  %v4744_v12 = vld [vmem:[#allocation4] sm:$0xff] }
 0x79e   : > { %7938 = vpow2.f32 %v6589_v20  ;;  %v7753_v58 = vld [vmem:[#allocation11 + $0xec] ss:$16 sps:$4 sm:$0xff]  }
 0x79f   : > { %7940 = vpow2.f32 %v6590_v26 }
 0x7a0   : > { %7942 = vtanh.f32 %v4424_v28  ;;  %v7709_v28 = vld [vmem:[#allocation11 + $0x8] ss:$16 sps:$4 sm:$0xff]  }
 0x7a8   : > { %v7939_v30 = vpop.eup %7938 }
 0x7a9   : > { %v4438_v31 = vadd.f32 1.0, %v7939_v30  ;;  %v7941_v35 = vpop.eup %7940 }
 0x7aa   : > { %v4439_v32 = vadd.f32 1.0, %v7941_v35  ;;  %v7943_v33 = vpop.eup %7942  ;;  %v7717_v35 = vld [vmem:[#allocation11 + $0x2c] ss:$16 sps:$4 sm:$0xff]  }
 0x7ab   : > { %7944 = vrcp.f32 %v4438_v31  ;;  %v7714_v31 = vld [vmem:[#allocation11 + $0x24] ss:$16 sps:$4 sm:$0xff]  }
 0x7ac   : > { %7946 = vrcp.f32 %v4439_v32  ;;  %v7712_v32 = vld [vmem:[#allocation11 + $0x20] ss:$16 sps:$4 sm:$0xff]  }
 0x7b5   : > { %v7945_v34 = vpop.eup %7944 }
 0x7b6   : > { %v4449_v36 = vmul.f32 %v7945_v34, %v7943_v33  ;;  %v7947_v37 = vpop.eup %7946  ;;  %v7715_v33 = vld [vmem:[#allocation11 + $0x28] ss:$16 sps:$4 sm:$0xff]   ;;  %v7720_v34 = vld [vmem:[#allocation11 + $0x44] ss:$16 sps:$4 sm:$0xff]  }
 0x7b7   : > { %v4448_v15 = vmul.f32 %v7947_v37, %v4428_v40  ;;  %v7718_v37 = vld [vmem:[#allocation11 + $0x40] ss:$16 sps:$4 sm:$0xff]   ;;  %v7721_v40 = vld [vmem:[#allocation11 + $0x48] ss:$16 sps:$4 sm:$0xff]  }
 0x7b9   : > { %v4692_v3 = vpop.f32.mrb[36].mxu0  ;;  %v4733_v43 = vpop.f32.mrb[36].mxu1  ;;  %v8738_v44 = vadd.f32 %v4449_v36, %v4448_v15  ;;  %v7723_v36 = vld [vmem:[#allocation11 + $0x4c] ss:$16 sps:$4 sm:$0xff]  }
 0x7ba   : > { %v4740_v45 = vadd.f32 %v6592_v41, %v4692_v3  ;;  %v4694_v46 = vpop.f32.mrb[37].mxu0  ;;  %v4735_v47 = vpop.f32.mrb[37].mxu1  ;;  %v4742_v59 = vadd.f32 %v6594_v57, %v4733_v43  ;;  %v7726_v41 = vld [vmem:[#allocation11 + $0x64] ss:$16 sps:$4 sm:$0xff]   ;;  %v7729_v15 = vld [vmem:[#allocation11 + $0x6c] ss:$16 sps:$4 sm:$0xff]  }
 0x7bb   : > { %v4741_v48 = vadd.f32 %v6593_v42, %v4694_v46  ;;  %v4696_v49 = vpop.f32.mrb[38].mxu0  ;;  %v4737_v50 = vpop.f32.mrb[38].mxu1  ;;  %v4743_v62 = vadd.f32 %v6595_v60, %v4735_v47  ;;  %v7724_v42 = vld [vmem:[#allocation11 + $0x60] ss:$16 sps:$4 sm:$0xff]   ;;  %v7727_v3 = vld [vmem:[#allocation11 + $0x68] ss:$16 sps:$4 sm:$0xff]  }
 0x7bc   : > { %v6628_v53 = vmul.f32 -1.442695, %v4740_v45  ;;  %v4697_v54 = vpop.f32.mrb[39].mxu0  ;;  %v4738_v55 = vpop.f32.mrb[39].mxu1  ;;  %v6630_v63 = vmul.f32 -1.442695, %v4742_v59 }
 0x7bd   : > { %v6629_v56 = vmul.f32 -1.442695, %v4741_v48  ;;  %v7732_v43 = vld [vmem:[#allocation11 + $0x84] ss:$16 sps:$4 sm:$0xff]   ;;  %v7735_v45 = vld [vmem:[#allocation11 + $0x8c] ss:$16 sps:$4 sm:$0xff]  }
 0x7be   : > { %7948 = vpow2.f32 %v6628_v53  ;;  %v7730_v46 = vld [vmem:[#allocation11 + $0x80] ss:$16 sps:$4 sm:$0xff]   ;;  %v7733_v47 = vld [vmem:[#allocation11 + $0x88] ss:$16 sps:$4 sm:$0xff]   ;;  %v7738_v48 = vld [vmem:[#allocation11 + $0xa4] ss:$16 sps:$4 sm:$0xff]  }
 0x7bf   : > { %7950 = vpow2.f32 %v6629_v56  ;;  %v7741_v49 = vld [vmem:[#allocation11 + $0xac] ss:$16 sps:$4 sm:$0xff]   ;;  %v7736_v50 = vld [vmem:[#allocation11 + $0xa0] ss:$16 sps:$4 sm:$0xff]   ;;  %v7744_v53 = vld [vmem:[#allocation11 + $0xc4] ss:$16 sps:$4 sm:$0xff]  }
 0x7c0   : > { %7952 = vpow2.f32 %v6591_v61  ;;  %v7747_v54 = vld [vmem:[#allocation11 + $0xcc] ss:$16 sps:$4 sm:$0xff]   ;;  %v7742_v55 = vld [vmem:[#allocation11 + $0xc0] ss:$16 sps:$4 sm:$0xff]   ;;  %v7745_v56 = vld [vmem:[#allocation11 + $0xc8] ss:$16 sps:$4 sm:$0xff]  }
 0x7c1   : > { %7954 = vtanh.f32 %v4743_v62  ;;  %v7750_v57 = vld [vmem:[#allocation11 + $0xe4] ss:$16 sps:$4 sm:$0xff]   ;;  %v7748_v59 = vld [vmem:[#allocation11 + $0xe0] ss:$16 sps:$4 sm:$0xff]   ;;  %v7751_v60 = vld [vmem:[#allocation11 + $0xe8] ss:$16 sps:$4 sm:$0xff]  }
 0x7c2   : > { %7956 = vpow2.f32 %v6630_v63  ;;  %v7756_v61 = vld [vmem:[#allocation11 + $0x104] ss:$16 sps:$4 sm:$0xff]   ;;  %v7759_v62 = vld [vmem:[#allocation11 + $0x10c] ss:$16 sps:$4 sm:$0xff]   ;;  %v7754_v63 = vld [vmem:[#allocation11 + $0x100] ss:$16 sps:$4 sm:$0xff]  }
 0x7c8   : > { %v7949_v0 = vpop.eup %7948 }
 0x7c9   : > { %v4754_v1 = vadd.f32 1.0, %v7949_v0  ;;  %v7951_v2 = vpop.eup %7950  ;;  %v7757_v0 = vld [vmem:[#allocation11 + $0x108] ss:$16 sps:$4 sm:$0xff]  }
 0x7ca   : > { %v4755_v4 = vadd.f32 1.0, %v7951_v2  ;;  %v7953_v5 = vpop.eup %7952  ;;  %v7765_v2 = vld [vmem:[#allocation11 + $0x12c] ss:$16 sps:$4 sm:$0xff]  }
 0x7cb   : > { %7958 = vrcp.f32 %v4754_v1  ;;  %v7955_v6 = vpop.eup %7954  ;;  %v4440_v8 = vadd.f32 1.0, %v7953_v5  ;;  %v7762_v1 = vld [vmem:[#allocation11 + $0x124] ss:$16 sps:$4 sm:$0xff]   ;;  %v7763_v5 = vld [vmem:[#allocation11 + $0x128] ss:$16 sps:$4 sm:$0xff]  }
 0x7cc   : > { %7960 = vrcp.f32 %v4755_v4  ;;  %v7957_v38 = vpop.eup %7956  ;;  %v7760_v4 = vld [vmem:[#allocation11 + $0x120] ss:$16 sps:$4 sm:$0xff]  }
 0x7cd   : > { %v4756_v11 = vadd.f32 1.0, %v7957_v38  ;;  %7962 = vtanh.f32 %v8738_v44  ;;  %v7771_v38 = vld [vmem:[#allocation11 + $0x14c] ss:$16 sps:$4 sm:$0xff]  }
 0x7ce   : > { %7964 = vrcp.f32 %v4440_v8  ;;  %v7769_v8 = vld [vmem:[#allocation11 + $0x148] ss:$16 sps:$4 sm:$0xff]  }
 0x7cf   : > { %7966 = vrcp.f32 %v4756_v11  ;;  %v7772_v11 = vld [vmem:[#allocation11 + $0x160] ss:$16 sps:$4 sm:$0xff]  }
 0x7d5   : > { %v7959_v7 = vpop.eup %7958 }
 0x7d6   : > { %v4765_v9 = vmul.f32 %v7959_v7, %v7955_v6  ;;  %v7961_v10 = vpop.eup %7960  ;;  %v7768_v6 = vld [vmem:[#allocation11 + $0x144] ss:$16 sps:$4 sm:$0xff]   ;;  %v7766_v7 = vld [vmem:[#allocation11 + $0x140] ss:$16 sps:$4 sm:$0xff]  }
 0x7d7   : > { %v4764_v13 = vmul.f32 %v7961_v10, %v4744_v12  ;;  %v7963_v16 = vpop.eup %7962  ;;  %v7777_v10 = vld [vmem:[#allocation11 + $0x16c] ss:$16 sps:$4 sm:$0xff]   ;;  %v7775_v12 = vld [vmem:[#allocation11 + $0x168] ss:$16 sps:$4 sm:$0xff]  }
 0x7d8   : > { %v7965_v17 = vpop.eup %7964 }
 0x7d9   : > { %v4766_v14 = vadd.f32 %v4765_v9, %v4764_v13  ;;  %v7967_v18 = vpop.eup %7966  ;;  %v8744_v22 = vmul.f32 %v7965_v17, %v7963_v16  ;;  %v7774_v9 = vld [vmem:[#allocation11 + $0x164] ss:$16 sps:$4 sm:$0xff]   ;;  %v7778_v16 = vld [vmem:[#allocation11 + $0x180] ss:$16 sps:$4 sm:$0xff]   ;;  %v7781_v17 = vld [vmem:[#allocation11 + $0x188] ss:$16 sps:$4 sm:$0xff]  }
 0x7da   : > { %v7780_v13 = vld [vmem:[#allocation11 + $0x184] ss:$16 sps:$4 sm:$0xff]  }
 0x7db   : > { %7968 = vtanh.f32 %v4766_v14  ;;  %4770 = vst [vmem:[#allocation4] sm:$0xff] %v4766_v14  ;;  %v5291_v30 = vpack.c.bf16 %v8744_v22, %v8744_v22  ;;  %v7783_v14 = vld [vmem:[#allocation11 + $0x18c] ss:$16 sps:$4 sm:$0xff]  }
 0x7e5   : > { %v7969_v20 = vpop.eup %7968 }
 0x7e6   : > { %v4768_v25 = vmul.f32 %v7969_v20, %v7967_v18  ;;  %v7784_v18 = vld [vmem:[#allocation11 + $0x1a0] ss:$16 sps:$4 sm:$0xff]   ;;  %v7786_v20 = vld [vmem:[#allocation11 + $0x1a4] ss:$16 sps:$4 sm:$0xff]  }
 0x7e8   : > { %4769 = vst [vmem:[#allocation3] sm:$0xff] %v4768_v25  ;;  %v4772_v26 = vpack.c.bf16 %v4768_v25, %v4768_v25  ;;  %v7787_v25 = vld [vmem:[#allocation11 + $0x1a8] ss:$16 sps:$4 sm:$0xff]  }
 0x7ea   : > { %5213 = vmatmul.mubr.bf16.vlgmr.msra.gmra.mrb[40].mxu0 %v4772_v26  ;;  %5254 = vmatmul.mubr.bf16.vlgmr.msra.gmra.mrb[40].mxu1 %v4772_v26  ;;  %v7789_v26 = vld [vmem:[#allocation11 + $0x1ac] ss:$16 sps:$4 sm:$0xff]  }
 0x7eb   : > { %5730 = vmatprep.mubr.bf16.mxu0 %v5291_v30  ;;  %5771 = vmatprep.mubr.bf16.mxu1 %v5291_v30  ;;  %v7790_v30 = vld [vmem:[#allocation11 + $0x1c0] ss:$16 sps:$4 sm:$0xff]  }
 0x7ec   : > { %5699 = vmatpush1.bf16.msra.mxu0 %v7706_v27  ;;  %5740 = vmatpush1.bf16.msra.mxu1 %v7709_v28  ;;  %v7792_v27 = vld [vmem:[#allocation11 + $0x1c4] ss:$16 sps:$4 sm:$0xff]   ;;  %v7795_v28 = vld [vmem:[#allocation11 + $0x1cc] ss:$16 sps:$4 sm:$0xff]  }
 0x7ed   : > { %5700 = vmatprep.subr.bf16.mxu0 %v7714_v31  ;;  %5741 = vmatprep.subr.bf16.mxu1 %v7717_v35  ;;  %v7793_v31 = vld [vmem:[#allocation11 + $0x1c8] ss:$16 sps:$4 sm:$0xff]   ;;  %v7798_v35 = vld [vmem:[#allocation11 + $0x1e4] ss:$16 sps:$4 sm:$0xff]  }
 0x7f0   : > { %5701 = vmatpush1.bf16.msra.mxu0 %v7712_v32  ;;  %5742 = vmatpush1.bf16.msra.mxu1 %v7715_v33  ;;  %v7801_v32 = vld [vmem:[#allocation11 + $0x1ec] ss:$16 sps:$4 sm:$0xff]   ;;  %v7796_v33 = vld [vmem:[#allocation11 + $0x1e0] ss:$16 sps:$4 sm:$0xff]  }
 0x7f1   : > { %5702 = vmatprep.subr.bf16.mxu0 %v7720_v34  ;;  %5743 = vmatprep.subr.bf16.mxu1 %v7723_v36  ;;  %v7799_v34 = vld [vmem:[#allocation11 + $0x1e8] ss:$16 sps:$4 sm:$0xff]  }
 0x7f2   : > { %v5816_v36 = vld [vmem:[%s8222_s28 + $0x18] sm:$0xff] }
 0x7f3   : > { %5834 = vperm.xlu1 %6841, %v5816_v36  }
 0x7f4   : > { %5703 = vmatpush1.bf16.msra.mxu0 %v7718_v37  ;;  %5744 = vmatpush1.bf16.msra.mxu1 %v7721_v40  ;;  %v4838_v37 = vld [vmem:[%s8806_s4] sm:$0xf] }
 0x7f5   : > { %5704 = vmatprep.subr.bf16.mxu0 %v7726_v41  ;;  %5745 = vmatprep.subr.bf16.mxu1 %v7729_v15  ;;  %v4843_v40 = vrot.slane %v4838_v37, %v8346_v21  ;;  %v4847_v41 = vrot.slane %v4838_v37, %v8351_v23 }
 0x7f8   : > { %5705 = vmatpush1.bf16.msra.mxu0 %v7724_v42  ;;  %5746 = vmatpush1.bf16.msra.mxu1 %v7727_v3 }
 0x7f9   : > { %5706 = vmatprep.subr.bf16.mxu0 %v7732_v43  ;;  %5747 = vmatprep.subr.bf16.mxu1 %v7735_v45 }
 0x7fc   : > { %5707 = vmatpush1.bf16.msra.mxu0 %v7730_v46  ;;  %5748 = vmatpush1.bf16.msra.mxu1 %v7733_v47 }
 0x7fd   : > { %5708 = vmatprep.subr.bf16.mxu0 %v7738_v48  ;;  %5749 = vmatprep.subr.bf16.mxu1 %v7741_v49 }
 0x800   : > { %5709 = vmatpush1.bf16.msra.mxu0 %v7736_v50  ;;  %5750 = vmatpush1.bf16.msra.mxu1 %v7739_v51 }
 0x801   : > { %5710 = vmatprep.subr.bf16.mxu0 %v7744_v53  ;;  %5751 = vmatprep.subr.bf16.mxu1 %v7747_v54  ;;  %v4851_v54 = vrot.slane %v4838_v37, %v8355_v29 }
 0x804   : > { %5711 = vmatpush1.bf16.msra.mxu0 %v7742_v55  ;;  %5752 = vmatpush1.bf16.msra.mxu1 %v7745_v56  ;;  %v4855_v55 = vrot.slane %v4838_v37, %v8357_v39 }
 0x805   : > { %5712 = vmatprep.subr.bf16.mxu0 %v7750_v57  ;;  %5753 = vmatprep.subr.bf16.mxu1 %v7753_v58 }
 0x808   : > { %5713 = vmatpush1.bf16.msra.mxu0 %v7748_v59  ;;  %5754 = vmatpush1.bf16.msra.mxu1 %v7751_v60 }
 0x809   : > { %5714 = vmatprep.subr.bf16.mxu0 %v7756_v61  ;;  %5755 = vmatprep.subr.bf16.mxu1 %v7759_v62 }
 0x80c   : > { %5715 = vmatpush1.bf16.msra.mxu0 %v7754_v63  ;;  %5756 = vmatpush1.bf16.msra.mxu1 %v7757_v0 }
 0x80d   : > { %5716 = vmatprep.subr.bf16.mxu0 %v7762_v1  ;;  %5757 = vmatprep.subr.bf16.mxu1 %v7765_v2 }
 0x810   : > { %5717 = vmatpush1.bf16.msra.mxu0 %v7760_v4  ;;  %5758 = vmatpush1.bf16.msra.mxu1 %v7763_v5 }
 0x811   : > { %5718 = vmatprep.subr.bf16.mxu0 %v7768_v6  ;;  %5759 = vmatprep.subr.bf16.mxu1 %v7771_v38  ;;  %v5262_v6 = vld [vmem:[#allocation6] sm:$0xff] }
 0x814   : > { %5719 = vmatpush1.bf16.msra.mxu0 %v7766_v7  ;;  %5760 = vmatpush1.bf16.msra.mxu1 %v7769_v8 }
 0x815   : > { %5720 = vmatprep.subr.bf16.mxu0 %v7774_v9  ;;  %5761 = vmatprep.subr.bf16.mxu1 %v7777_v10 }
 0x818   : > { %5721 = vmatpush1.bf16.msra.mxu0 %v7772_v11  ;;  %5762 = vmatpush1.bf16.msra.mxu1 %v7775_v12  ;;  %v7802_v12 = vld [vmem:[%s8809_s7] sm:$0xff]  }
 0x819   : > { %5722 = vmatprep.subr.bf16.mxu0 %v7780_v13  ;;  %5763 = vmatprep.subr.bf16.mxu1 %v7783_v14  ;;  %v7803_v13 = vld [vmem:[%s8809_s7 + $0x8] sm:$0xff]   ;;  %v7804_v14 = vld [vmem:[%s8809_s7 + $0x10] sm:$0xff]  }
 0x81c   : > { %5723 = vmatpush1.bf16.msra.mxu0 %v7778_v16  ;;  %5764 = vmatpush1.bf16.msra.mxu1 %v7781_v17  ;;  %v7808_v16 = vld [vmem:[%s8809_s7 + $0x30] sm:$0xff]   ;;  %v7809_v17 = vld [vmem:[%s8809_s7 + $0x38] sm:$0xff]  }
 0x81d   : > { %5724 = vmatprep.subr.bf16.mxu0 %v7786_v20  ;;  %5765 = vmatprep.subr.bf16.mxu1 %v7789_v26 }
 0x820   : > { %5725 = vmatpush1.bf16.msra.mxu0 %v7784_v18  ;;  %5766 = vmatpush1.bf16.msra.mxu1 %v7787_v25  ;;  %v5356_v18 = vld [vmem:[%s8808_s6] sm:$0xf] }
 0x821   : > { %5726 = vmatprep.subr.bf16.mxu0 %v7792_v27  ;;  %5767 = vmatprep.subr.bf16.mxu1 %v7795_v28  ;;  %v5361_v20 = vrot.slane %v5356_v18, %v8346_v21  ;;  %v5365_v25 = vrot.slane %v5356_v18, %v8351_v23  ;;  %v5373_v21 = vrot.slane %v5356_v18, %v8357_v39 }
 0x824   : > { %5727 = vmatpush1.bf16.msra.mxu0 %v7790_v30  ;;  %5768 = vmatpush1.bf16.msra.mxu1 %v7793_v31 }
 0x825   : > { %5728 = vmatprep.subr.bf16.mxu0 %v7798_v35  ;;  %5769 = vmatprep.subr.bf16.mxu1 %v7801_v32 }
 0x828   : > { %5729 = vmatpush1.bf16.msra.mxu0 %v7796_v33  ;;  %5770 = vmatpush1.bf16.msra.mxu1 %v7799_v34 }
 0x829   : > { %6787 = vmatprep.subr.bf16.mxu0 %v7802_v12 }
 0x8bd   : > { %v5214_v15 = vpop.f32.mrb[40].mxu0  ;;  %v5255_v42 = vpop.f32.mrb[40].mxu1 }
 0x8be   : > { %v5215_v3 = vadd.f32 %v5214_v15, %v4843_v40  ;;  %v5216_v43 = vpop.f32.mrb[41].mxu0  ;;  %v5257_v45 = vpop.f32.mrb[41].mxu1  ;;  %v5256_v56 = vadd.f32 %v5255_v42, %v4851_v54 }
 0x8bf   : > { %v5217_v46 = vadd.f32 %v5216_v43, %v4847_v41  ;;  %v5218_v47 = vpop.f32.mrb[42].mxu0  ;;  %v5259_v48 = vpop.f32.mrb[42].mxu1  ;;  %v5258_v57 = vadd.f32 %v5257_v45, %v4855_v55  ;;  %v5369_v41 = vrot.slane %v5356_v18, %v8355_v29 }
 0x8c0   : > { %v6695_v49 = vmul.f32 -1.442695, %v5215_v3  ;;  %v5219_v50 = vpop.f32.mrb[43].mxu0  ;;  %v5260_v51 = vpop.f32.mrb[43].mxu1  ;;  %v6697_v58 = vmul.f32 -1.442695, %v5256_v56 }
 0x8c1   : > { %v6696_v53 = vmul.f32 -1.442695, %v5217_v46  ;;  %v5830_v54 = vpop.permute.xlu1 %5829 }
 0x8c2   : > { %7970 = vpow2.f32 %v6695_v49 }
 0x8c3   : > { %7972 = vpow2.f32 %v6696_v53 }
 0x8c4   : > { %7974 = vtanh.f32 %v5258_v57 }
 0x8c5   : > { %7976 = vpow2.f32 %v6697_v58  ;;  %v5835_v58 = vpop.permute.xlu1 %5834 }
 0x8cc   : > { %v7971_v59 = vpop.eup %7970 }
 0x8cd   : > { %v5272_v60 = vadd.f32 1.0, %v7971_v59  ;;  %v7973_v61 = vpop.eup %7972  ;;  %v5839_v59 = vmul.f32 %v5830_v54, %v8744_v22 }
 0x8ce   : > { %v5273_v62 = vadd.f32 1.0, %v7973_v61  ;;  %v7975_v63 = vpop.eup %7974 }
 0x8cf   : > { %7978 = vrcp.f32 %v5272_v60  ;;  %v7977_v0 = vpop.eup %7976 }
 0x8d0   : > { %7980 = vrcp.f32 %v5273_v62  ;;  %v5274_v5 = vadd.f32 1.0, %v7977_v0 }
 0x8d2   : > { %7982 = vrcp.f32 %v5274_v5 }
 0x8d9   : > { %v7979_v1 = vpop.eup %7978 }
 0x8da   : > { %v5283_v2 = vmul.f32 %v7979_v1, %v7975_v63  ;;  %v7981_v4 = vpop.eup %7980 }
 0x8db   : > { %v5282_v38 = vmul.f32 %v7981_v4, %v5262_v6 }
 0x8dc   : > { %v7983_v8 = vpop.eup %7982 }
 0x8dd   : > { %v5284_v7 = vadd.f32 %v5283_v2, %v5282_v38 }
 0x8df   : > { %7984 = vtanh.f32 %v5284_v7  ;;  %5288 = vst [vmem:[#allocation6] sm:$0xff] %v5284_v7 }
 0x8e9   : > { %v7985_v9 = vpop.eup %7984 }
 0x8ea   : > { %v5286_v10 = vmul.f32 %v7985_v9, %v7983_v8 }
 0x8ec   : > { %5287 = vst [vmem:[#allocation5] sm:$0xff] %v5286_v10  ;;  %v5290_v11 = vpack.c.bf16 %v5286_v10, %v5286_v10 }
 0x8ee   : > { %5731 = vmatmul.mubr.bf16.vlgmr.msra.gmra.mrb[44].mxu0 %v5290_v11  ;;  %5772 = vmatmul.mubr.bf16.vlgmr.msra.gmra.mrb[44].mxu1 %v5290_v11 }
 0x8ef   : > { %6803 = vmatprep.mubr.bf16.mxu0 %v5841_v24  ;;  %6788 = vmatpush3.bf16.msra.mxu0 %v7802_v12  ;;  %v7807_v24 = vld [vmem:[%s8809_s7 + $0x28] sm:$0xff]  }
 0x8f0   : > { %6789 = vmatprep.subr.bf16.mxu0 %v7803_v13 }
 0x8f3   : > { %6790 = vmatpush3.bf16.msra.mxu0 %v7803_v13 }
 0x8f4   : > { %6791 = vmatprep.subr.bf16.mxu0 %v7804_v14 }
 0x8f7   : > { %6792 = vmatpush3.bf16.msra.mxu0 %v7804_v14 }
 0x8f8   : > { %6793 = vmatprep.subr.bf16.mxu0 %v7805_v52 }
 0x8fb   : > { %6794 = vmatpush3.bf16.msra.mxu0 %v7805_v52 }
 0x8fc   : > { %6795 = vmatprep.subr.bf16.mxu0 %v7806_v19 }
 0x8ff   : > { %6796 = vmatpush3.bf16.msra.mxu0 %v7806_v19 }
 0x900   : > { %6797 = vmatprep.subr.bf16.mxu0 %v7807_v24 }
 0x903   : > { %6798 = vmatpush3.bf16.msra.mxu0 %v7807_v24 }
 0x904   : > { %6799 = vmatprep.subr.bf16.mxu0 %v7808_v16 }
 0x907   : > { %6800 = vmatpush3.bf16.msra.mxu0 %v7808_v16 }
 0x908   : > { %6801 = vmatprep.subr.bf16.mxu0 %v7809_v17 }
 0x90b   : > { %6802 = vmatpush3.bf16.msra.mxu0 %v7809_v17 }
 0x9c1   : > { %v5732_v26 = vpop.f32.mrb[44].mxu0  ;;  %v5773_v27 = vpop.f32.mrb[44].mxu1 }
 0x9c2   : > { %v5733_v28 = vadd.f32 %v5732_v26, %v5361_v20  ;;  %v5734_v30 = vpop.f32.mrb[45].mxu0  ;;  %v5775_v31 = vpop.f32.mrb[45].mxu1  ;;  %v5774_v15 = vadd.f32 %v5773_v27, %v5369_v41 }
 0x9c3   : > { %v5735_v35 = vadd.f32 %v5734_v30, %v5365_v25  ;;  %v5736_v32 = vpop.f32.mrb[46].mxu0  ;;  %v5777_v33 = vpop.f32.mrb[46].mxu1  ;;  %v5776_v23 = vadd.f32 %v5775_v31, %v5373_v21 }
 0x9c4   : > { %v6762_v34 = vmul.f32 -1.442695, %v5733_v28  ;;  %v5737_v36 = vpop.f32.mrb[47].mxu0  ;;  %v5778_v37 = vpop.f32.mrb[47].mxu1  ;;  %v6764_v42 = vmul.f32 -1.442695, %v5774_v15 }
 0x9c5   : > { %v6763_v40 = vmul.f32 -1.442695, %v5735_v35 }
 0x9c6   : > { %7986 = vpow2.f32 %v6762_v34 }
 0x9c7   : > { %7988 = vpow2.f32 %v6763_v40 }
 0x9c8   : > { %7990 = vtanh.f32 %v5776_v23 }
 0x9c9   : > { %7992 = vpow2.f32 %v6764_v42 }
 0x9d0   : > { %v7987_v3 = vpop.eup %7986 }
 0x9d1   : > { %v5790_v43 = vadd.f32 1.0, %v7987_v3  ;;  %v7989_v45 = vpop.eup %7988 }
 0x9d2   : > { %v5791_v46 = vadd.f32 1.0, %v7989_v45  ;;  %v7991_v47 = vpop.eup %7990 }
 0x9d3   : > { %7994 = vrcp.f32 %v5790_v43  ;;  %v7993_v48 = vpop.eup %7992 }
 0x9d4   : > { %7996 = vrcp.f32 %v5791_v46  ;;  %v5792_v29 = vadd.f32 1.0, %v7993_v48 }
 0x9d6   : > { %7998 = vrcp.f32 %v5792_v29 }
 0x9dd   : > { %v7995_v49 = vpop.eup %7994 }
 0x9de   : > { %v5801_v50 = vmul.f32 %v7995_v49, %v7991_v47  ;;  %v7997_v51 = vpop.eup %7996 }
 0x9df   : > { %v5800_v53 = vmul.f32 %v7997_v51, %v8738_v44  ;;  %v6765_v44 = vld [vmem:[%s8810_s8] ss:$0 sm:$0xff] }
 0x9e0   : > { %v7999_v55 = vpop.eup %7998 }
 0x9e1   : > { %v5802_v39 = vadd.f32 %v5801_v50, %v5800_v53 }
 0x9e3   : > { %5806 = vst [vmem:[#allocation8] sm:$0xff] %v5802_v39  ;;  %8000 = vtanh.f32 %v5802_v39 }
 0x9ed   : > { %v8001_v56 = vpop.eup %8000 }
 0x9ee   : > { %v5804_v57 = vmul.f32 %v8001_v56, %v7999_v55 }
 0x9f0   : > { %5805 = vst [vmem:[#allocation7] sm:$0xff] %v5804_v57  ;;  %v5840_v60 = vmul.f32 %v5835_v58, %v5804_v57 }
 0x9f2   : > { %v5842_v61 = vpack.c.bf16 %v5840_v60, %v5839_v59 }
 0x9f4   : > { %6804 = vmatmul.mubr.bf16.vlgmr.msra.gmra.mrb[48].mxu0 %v5842_v61 }
 0xac7   : > { %v6805_v62 = vpop.f32.mrb[48].mxu0 }
 0xac8   : > { %v5948_v63 = vpop.f32.mrb[49].mxu0  ;;  %v5957_v5 = vadd.f32 %v6805_v62, %v6765_v44 }
 0xac9   : > { %v5949_v0 = vadd.f32 %v6765_v44, %v5948_v63  ;;  %v6806_v1 = vpop.f32.mrb[50].mxu0 }
 0xaca   : > { %v5951_v2 = vpop.f32.mrb[51].mxu0  ;;  %v5960_v6 = vadd.f32 %v6806_v1, %v6765_v44  ;;  %5965 = vst [vmem:[%s8227_s14 + $0x10] sm:$0xff] %v5957_v5 }
 0xacb   : > { %5963 = vst [vmem:[%s8227_s14] sm:$0xff] %v5949_v0  ;;  %v5952_v4 = vadd.f32 %v6765_v44, %v5951_v2 }
 0xacc   : > { %5966 = vst [vmem:[%s8227_s14 + $0x18] sm:$0xff] %v5960_v6 }
 0xacd   : > { %5964 = vst [vmem:[%s8227_s14 + $0x8] sm:$0xff] %v5952_v4 }
 0xace PF: > { %s21_s30 = sadd.s32 1, %s8072_s30  }
 0xacf   : > { %p18_p10 = scmp.ge.s32.totalorder %s21_s30, 4  }
 0xad1   :  { %20 = sbr.rel (!%p18_p10) target bundleno = 2 (0x2), region = 109 }
 0xad8   :  { %5989 = vsyncpa [#allocation10], 1 }
 0xad9   :  { %5991 = vsyncpa [#allocation10 + $0x1], 1 }
 0xada   :  { %5992 = vsyncpa [#allocation12], 1 }

</bundles_post_ra>
